<compile_context>
chip_gen: v5e
topology: v5e:2x2
jax: 0.10.0
libtpu: 0.0.40
codegen_flags: <defaults>
</compile_context>

<pallas_src>
import functools

import jax
import jax.numpy as jnp
from jax.experimental import pallas as pl
from jax.experimental.pallas import tpu as pltpu

# Fixed CDQN architecture constants (match the PyTorch module).
C1, C2, C3 = 32, 64, 64           # conv output channels
K1SZ, S1 = 8, 4                   # conv1 kernel / stride
K2SZ, S2 = 4, 2                   # conv2 kernel / stride
K3SZ, S3 = 3, 1                   # conv3 kernel / stride
HIDDEN = 512                      # fc1 width


def _conv_out(n, k, s):
    return (n - k) // s + 1


def cdqn_geometry(img_size, num_actions, num_cats):
    c, h, w = img_size
    oh1, ow1 = _conv_out(h, K1SZ, S1), _conv_out(w, K1SZ, S1)
    oh2, ow2 = _conv_out(oh1, K2SZ, S2), _conv_out(ow1, K2SZ, S2)
    oh3, ow3 = _conv_out(oh2, K3SZ, S3), _conv_out(ow2, K3SZ, S3)
    return dict(c=c, oh1=oh1, ow1=ow1, oh2=oh2, ow2=ow2, oh3=oh3, ow3=ow3,
                feat=C3 * oh3 * ow3, ac=num_actions * num_cats)


# ----------------------------------------------------------------------------
# Fused kernel: conv1 -> conv2 -> conv3 -> fc1 -> fc2, one sample per grid step
# ----------------------------------------------------------------------------
def _cdqn_fused_kernel(cols1_ref, w1_ref, b1_ref, w2_ref, b2_ref,
                       w3_ref, b3_ref, fc1w_ref, fc1b_ref, fc2w_ref, fc2b_ref,
                       out_ref,
                       act1_ref, act2_ref, stage2_ref, stage3_ref, *, geom):
    oh1, ow1 = geom['oh1'], geom['ow1']
    oh2, ow2 = geom['oh2'], geom['ow2']
    oh3, ow3 = geom['oh3'], geom['ow3']
    m2, m3 = oh2 * ow2, oh3 * ow3
    f32, bf16 = jnp.float32, jnp.bfloat16

    # ---- conv1: one MXU matmul on the pre-built per-sample patch matrix.
    x1 = cols1_ref[0]                                         # (oh1*ow1, k1*k1*c) bf16
    a1 = jnp.dot(x1, w1_ref[...], preferred_element_type=f32)
    act1_ref[...] = jnp.maximum(a1 + b1_ref[...], 0.0)        # (oh1*ow1, C1) f32, VMEM

    # ---- conv2: tap-sum formulation.  For each of the kh*kw taps, gather the
    # contributing act1 rows into a small VMEM staging buffer (simple full-lane
    # row copies, no strided / lane-unaligned stores) and accumulate one
    # (m2, C1) @ (C1, C2) bf16 matmul in f32.
    acc2 = jnp.zeros((m2, C2), f32)
    for dy in range(K2SZ):
        for dx in range(K2SZ):
            for r in range(m2):
                oy, ox = divmod(r, ow2)
                src = (S2 * oy + dy) * ow1 + (S2 * ox + dx)
                stage2_ref[pl.ds(r, 1), :] = act1_ref[pl.ds(src, 1), :]
            acc2 = acc2 + jnp.dot(stage2_ref[...].astype(bf16),
                                  w2_ref[dy * K2SZ + dx],
                                  preferred_element_type=f32)
    act2_ref[...] = jnp.maximum(acc2 + b2_ref[...], 0.0)      # (oh2*ow2, C2)

    # ---- conv3: same tap-sum scheme.
    acc3 = jnp.zeros((m3, C3), f32)
    for dy in range(K3SZ):
        for dx in range(K3SZ):
            for r in range(m3):
                oy, ox = divmod(r, ow3)
                src = (S3 * oy + dy) * ow2 + (S3 * ox + dx)
                stage3_ref[pl.ds(r, 1), :] = act2_ref[pl.ds(src, 1), :]
            acc3 = acc3 + jnp.dot(stage3_ref[...].astype(bf16),
                                  w3_ref[dy * K3SZ + dx],
                                  preferred_element_type=f32)
    a3 = jnp.maximum(acc3 + b3_ref[...], 0.0)                 # (oh3*ow3, C3)

    # ---- flatten into one feature row; fc1 weights were pre-permuted at
    # prepare_params() time to this (y, x, c) feature ordering.
    if m3 == 1:
        feat = a3                                             # (1, feat)
    else:
        feat = jnp.concatenate([a3[p:p + 1, :] for p in range(m3)], axis=1)

    # ---- MLP head (weights already (in, out), bf16).
    h = jnp.dot(feat.astype(bf16), fc1w_ref[...], preferred_element_type=f32)
    h = jnp.maximum(h + fc1b_ref[...], 0.0)                   # (1, HIDDEN)
    logits = jnp.dot(h.astype(bf16), fc2w_ref[...], preferred_element_type=f32)
    out_ref[0] = logits + fc2b_ref[...]                       # (1, A*C)


# ----------------------------------------------------------------------------
# Gather-free im2col for conv1 (JAX glue): kh*kw static strided slices + concat
# ----------------------------------------------------------------------------
def _im2col_strided(x_nhwc, k, stride):
    n, h, w, c = x_nhwc.shape
    oh, ow = _conv_out(h, k, stride), _conv_out(w, k, stride)
    taps = []
    for dy in range(k):
        for dx in range(k):
            taps.append(jax.lax.slice(
                x_nhwc,
                (0, dy, dx, 0),
                (n, dy + (oh - 1) * stride + 1, dx + (ow - 1) * stride + 1, c),
                (1, stride, stride, 1)))                      # (n, oh, ow, c)
    cols = jnp.concatenate(taps, axis=-1)                     # (dy, dx, c) ordering
    return cols.reshape(n, oh * ow, k * k * c)


# ----------------------------------------------------------------------------
# Forward wrapper: ONE pallas_call for the whole network
# ----------------------------------------------------------------------------
def cdqn_forward(kparams, x_nchw, img_size, num_actions, num_cats):
    geom = cdqn_geometry(img_size, num_actions, num_cats)
    n = x_nchw.shape[0]
    ac = geom['ac']
    m1 = geom['oh1'] * geom['ow1']
    m2 = geom['oh2'] * geom['ow2']
    m3 = geom['oh3'] * geom['ow3']
    k1 = K1SZ * K1SZ * geom['c']

    x = jnp.transpose(x_nchw, (0, 2, 3, 1))                   # NCHW -> NHWC
    cols1 = _im2col_strided(x, K1SZ, S1).astype(jnp.bfloat16)  # (n, m1, k1)

    grid_spec = pltpu.PrefetchScalarGridSpec(
        num_scalar_prefetch=0,
        grid=(n,),
        in_specs=[
            pl.BlockSpec((1, m1, k1), lambda i: (i, 0, 0)),            # patches (per sample)
            pl.BlockSpec((k1, C1), lambda i: (0, 0)),                  # w1
            pl.BlockSpec((1, C1), lambda i: (0, 0)),                   # b1
            pl.BlockSpec((K2SZ * K2SZ, C1, C2), lambda i: (0, 0, 0)),  # w2 (taps, ci, co)
            pl.BlockSpec((1, C2), lambda i: (0, 0)),                   # b2
            pl.BlockSpec((K3SZ * K3SZ, C2, C3), lambda i: (0, 0, 0)),  # w3 (taps, ci, co)
            pl.BlockSpec((1, C3), lambda i: (0, 0)),                   # b3
            pl.BlockSpec((geom['feat'], HIDDEN), lambda i: (0, 0)),    # fc1 (in, out)
            pl.BlockSpec((1, HIDDEN), lambda i: (0, 0)),               # fc1 bias
            pl.BlockSpec((HIDDEN, ac), lambda i: (0, 0)),              # fc2 (in, out)
            pl.BlockSpec((1, ac), lambda i: (0, 0)),                   # fc2 bias
        ],
        out_specs=pl.BlockSpec((1, 1, ac), lambda i: (i, 0, 0)),
        scratch_shapes=[
            pltpu.VMEM((m1, C1), jnp.float32),    # act1
            pltpu.VMEM((m2, C2), jnp.float32),    # act2
            pltpu.VMEM((m2, C1), jnp.float32),    # conv2 tap staging
            pltpu.VMEM((m3, C2), jnp.float32),    # conv3 tap staging
        ],
    )

    logits = pl.pallas_call(
        functools.partial(_cdqn_fused_kernel, geom=geom),
        out_shape=jax.ShapeDtypeStruct((n, 1, ac), jnp.float32),
        grid_spec=grid_spec,
        compiler_params=pltpu.CompilerParams(
            dimension_semantics=("parallel",)),   # shard samples across TCs (v7x)
    )(cols1, kparams['w1'], kparams['b1'], kparams['w2'], kparams['b2'],
      kparams['w3'], kparams['b3'], kparams['fc1_w'], kparams['fc1_b'],
      kparams['fc2_w'], kparams['fc2_b'])

    return logits.reshape(n, num_actions, num_cats)
    # TODO(synk): qval()/act() (softmax expectation over vrange + epsilon-greedy
    # host RNG / .item()) are host-side post-processing, not kernel work.


# ----------------------------------------------------------------------------
# Parameter init (PyTorch layout) and one-time conversion to kernel layout
# ----------------------------------------------------------------------------
def init_params(key, img_size, num_actions, num_cats):
    c = img_size[0]
    feat_size = cdqn_geometry(img_size, num_actions, num_cats)['feat']
    ks = jax.random.split(key, 5)

    def conv_p(k, oc, ic, ksz):
        scale = 1.0 / jnp.sqrt(ic * ksz * ksz)
        kw_, kb_ = jax.random.split(k)
        return (jax.random.uniform(kw_, (oc, ic, ksz, ksz), jnp.float32, -scale, scale),
                jax.random.uniform(kb_, (oc,), jnp.float32, -scale, scale))

    def lin_p(k, out_f, in_f):
        scale = 1.0 / jnp.sqrt(in_f)
        kw_, kb_ = jax.random.split(k)
        return (jax.random.uniform(kw_, (out_f, in_f), jnp.float32, -scale, scale),
                jax.random.uniform(kb_, (out_f,), jnp.float32, -scale, scale))

    w1, b1 = conv_p(ks[0], C1, c, K1SZ)
    w2, b2 = conv_p(ks[1], C2, C1, K2SZ)
    w3, b3 = conv_p(ks[2], C3, C2, K3SZ)
    fc1_w, fc1_b = lin_p(ks[3], HIDDEN, feat_size)
    fc2_w, fc2_b = lin_p(ks[4], num_actions * num_cats, HIDDEN)
    return dict(w1=w1, b1=b1, w2=w2, b2=b2, w3=w3, b3=b3,
                fc1_w=fc1_w, fc1_b=fc1_b, fc2_w=fc2_w, fc2_b=fc2_b)


def prepare_params(params, img_size, num_actions, num_cats):
    """One-time (off the hot path) conversion to kernel-ready layout:
       conv1 -> (k*k*cin, C1) matmul matrix matching (dy, dx, c) patch order,
       conv2/conv3 -> (taps, cin, cout), fc1 columns permuted from PyTorch
       (c, y, x) flatten order to the kernel's (y, x, c) order, fc weights
       transposed to (in, out); matmul operands bf16, biases (1, n) f32."""
    g = cdqn_geometry(img_size, num_actions, num_cats)
    c, oh3, ow3 = img_size[0], g['oh3'], g['ow3']
    bf16, f32 = jnp.bfloat16, jnp.float32

    w1 = params['w1'].transpose(2, 3, 1, 0).reshape(K1SZ * K1SZ * c, C1).astype(bf16)
    w2 = params['w2'].transpose(2, 3, 1, 0).reshape(K2SZ * K2SZ, C1, C2).astype(bf16)
    w3 = params['w3'].transpose(2, 3, 1, 0).reshape(K3SZ * K3SZ, C2, C3).astype(bf16)
    fc1 = params['fc1_w'].reshape(HIDDEN, C3, oh3, ow3)
    fc1 = fc1.transpose(0, 2, 3, 1).reshape(HIDDEN, g['feat']).T.astype(bf16)
    fc2 = params['fc2_w'].T.astype(bf16)

    return dict(
        w1=w1, b1=params['b1'].reshape(1, C1).astype(f32),
        w2=w2, b2=params['b2'].reshape(1, C2).astype(f32),
        w3=w3, b3=params['b3'].reshape(1, C3).astype(f32),
        fc1_w=fc1, fc1_b=params['fc1_b'].reshape(1, HIDDEN).astype(f32),
        fc2_w=fc2, fc2_b=params['fc2_b'].reshape(1, g['ac']).astype(f32))


# ----------------------------------------------------------------------------
# Pure-JAX f32 reference (PyTorch-layout params)
# ----------------------------------------------------------------------------
def reference_forward(params, x_nchw, num_actions, num_cats):
    def conv(x, w, b, s):
        y = jax.lax.conv_general_dilated(
            x, w, (s, s), 'VALID', dimension_numbers=('NCHW', 'OIHW', 'NCHW'))
        return jax.nn.relu(y + b[None, :, None, None])
    x = conv(x_nchw, params['w1'], params['b1'], S1)
    x = conv(x, params['w2'], params['b2'], S2)
    x = conv(x, params['w3'], params['b3'], S3)
    feat = x.reshape(x.shape[0], -1)
    h = jax.nn.relu(feat @ params['fc1_w'].T + params['fc1_b'])
    logits = h @ params['fc2_w'].T + params['fc2_b']
    return logits.reshape(-1, num_actions, num_cats)


# ----------------------------------------------------------------------------
if __name__ == "__main__":
    key = jax.random.PRNGKey(0)
    # 36x36 is the smallest spatial size valid for the 8/4 -> 4/2 -> 3/1 stack.
    img_size = (4, 36, 36)
    num_actions, num_cats = 4, 8
    batch = 2

    pkey, xkey = jax.random.split(key)
    params = init_params(pkey, img_size, num_actions, num_cats)
    kparams = prepare_params(params, img_size, num_actions, num_cats)
    x = jax.random.normal(xkey, (batch,) + img_size, dtype=jnp.float32)

    fwd = jax.jit(functools.partial(cdqn_forward, img_size=img_size,
                                    num_actions=num_actions, num_cats=num_cats))
    logits = jax.block_until_ready(fwd(kparams, x))

    ref = jax.block_until_ready(reference_forward(params, x, num_actions, num_cats))
    assert logits.shape == (batch, num_actions, num_cats), logits.shape
    # bf16 MXU operands (f32 accumulation) vs a pure-f32 reference: allow ~1e-2 noise.
    err = float(jnp.max(jnp.abs(logits - ref)))
    assert jnp.allclose(logits, ref, rtol=2e-2, atol=2e-2), f"mismatch vs reference: {err}"

    print("KERNEL_OK")
</pallas_src>

<mosaic_0001>
module attributes {stable_mosaic.version = 11 : i64} {
  func.func @_cdqn_fused_kernel(%arg0: i32, %arg1: memref<1x64x256xbf16, #tpu.memory_space<vmem>>, %arg2: memref<256x32xbf16, #tpu.memory_space<vmem>>, %arg3: memref<1x32xf32, #tpu.memory_space<vmem>>, %arg4: memref<16x32x64xbf16, #tpu.memory_space<vmem>>, %arg5: memref<1x64xf32, #tpu.memory_space<vmem>>, %arg6: memref<9x64x64xbf16, #tpu.memory_space<vmem>>, %arg7: memref<1x64xf32, #tpu.memory_space<vmem>>, %arg8: memref<64x512xbf16, #tpu.memory_space<vmem>>, %arg9: memref<1x512xf32, #tpu.memory_space<vmem>>, %arg10: memref<512x32xbf16, #tpu.memory_space<vmem>>, %arg11: memref<1x32xf32, #tpu.memory_space<vmem>>, %arg12: memref<1x1x32xf32, #tpu.memory_space<vmem>>, %arg13: memref<64x32xf32, #tpu.memory_space<vmem>>, %arg14: memref<9x64xf32, #tpu.memory_space<vmem>>, %arg15: memref<9x32xf32, #tpu.memory_space<vmem>>, %arg16: memref<1x64xf32, #tpu.memory_space<vmem>>) attributes {dimension_semantics = [#tpu.dimension_semantics<parallel>], iteration_bounds = array<i64: 2>, scalar_prefetch = 0 : i64, scratch_operands = 4 : i64, tpu.core_type = #tpu.core_type<tc>, window_params = [{transform_indices = @transform_0, window_bounds = array<i64: 1, 64, 256>}, {pipeline_mode = #tpu.pipeline_mode<synchronous>, transform_indices = @transform_1, window_bounds = array<i64: 256, 32>}, {pipeline_mode = #tpu.pipeline_mode<synchronous>, transform_indices = @transform_2, window_bounds = array<i64: 1, 32>}, {pipeline_mode = #tpu.pipeline_mode<synchronous>, transform_indices = @transform_3, window_bounds = array<i64: 16, 32, 64>}, {pipeline_mode = #tpu.pipeline_mode<synchronous>, transform_indices = @transform_4, window_bounds = array<i64: 1, 64>}, {pipeline_mode = #tpu.pipeline_mode<synchronous>, transform_indices = @transform_5, window_bounds = array<i64: 9, 64, 64>}, {pipeline_mode = #tpu.pipeline_mode<synchronous>, transform_indices = @transform_6, window_bounds = array<i64: 1, 64>}, {pipeline_mode = #tpu.pipeline_mode<synchronous>, transform_indices = @transform_7, window_bounds = array<i64: 64, 512>}, {pipeline_mode = #tpu.pipeline_mode<synchronous>, transform_indices = @transform_8, window_bounds = array<i64: 1, 512>}, {pipeline_mode = #tpu.pipeline_mode<synchronous>, transform_indices = @transform_9, window_bounds = array<i64: 512, 32>}, {pipeline_mode = #tpu.pipeline_mode<synchronous>, transform_indices = @transform_10, window_bounds = array<i64: 1, 32>}, {transform_indices = @transform_11, window_bounds = array<i64: 1, 1, 32>}]} {
    %c0 = arith.constant 0 : index
    %c0_0 = arith.constant 0 : index
    %c0_1 = arith.constant 0 : index
    %0 = vector.load %arg1[%c0, %c0_0, %c0_1] : memref<1x64x256xbf16, #tpu.memory_space<vmem>>, vector<1x64x256xbf16>
    %1 = vector.shape_cast %0 : vector<1x64x256xbf16> to vector<64x256xbf16>
    %c0_2 = arith.constant 0 : index
    %c0_3 = arith.constant 0 : index
    %2 = vector.load %arg2[%c0_2, %c0_3] : memref<256x32xbf16, #tpu.memory_space<vmem>>, vector<256x32xbf16>
    %cst = arith.constant dense<0.000000e+00> : vector<64x32xf32>
    %3 = tpu.matmul %1, %2, %cst {dimension_numbers = #tpu.dot_dimension_numbers<[1], [0], [0], [1], [0, 0, 1, 1], [], []>} : vector<64x256xbf16>, vector<256x32xbf16>, vector<64x32xf32> -> vector<64x32xf32>
    %c0_4 = arith.constant 0 : index
    %c0_5 = arith.constant 0 : index
    %4 = vector.load %arg3[%c0_4, %c0_5] : memref<1x32xf32, #tpu.memory_space<vmem>>, vector<1x32xf32>
    %5 = vector.broadcast %4 : vector<1x32xf32> to vector<64x32xf32>
    %6 = arith.addf %3, %5 : vector<64x32xf32>
    %cst_6 = arith.constant 0.000000e+00 : f32
    %7 = vector.broadcast %cst_6 : f32 to vector<64x32xf32>
    %8 = arith.maximumf %6, %7 : vector<64x32xf32>
    %c0_7 = arith.constant 0 : index
    %c0_8 = arith.constant 0 : index
    %9 = vector.load %arg13[%c0_7, %c0_8] : memref<64x32xf32, #tpu.memory_space<vmem>>, vector<64x32xf32>
    tpu.vector_store %arg13[%c0_7, %c0_8], %8 {strides = array<i32>} : memref<64x32xf32, #tpu.memory_space<vmem>>, vector<64x32xf32>,
    %cst_9 = arith.constant 0.000000e+00 : f32
    %10 = vector.broadcast %cst_9 : f32 to vector<9x64xf32>
    %c0_10 = arith.constant 0 : index
    %c0_11 = arith.constant 0 : index
    %11 = vector.load %arg13[%c0_10, %c0_11] : memref<64x32xf32, #tpu.memory_space<vmem>>, vector<1x32xf32>
    %c0_12 = arith.constant 0 : index
    %c0_13 = arith.constant 0 : index
    %12 = vector.load %arg15[%c0_12, %c0_13] : memref<9x32xf32, #tpu.memory_space<vmem>>, vector<1x32xf32>
    tpu.vector_store %arg15[%c0_12, %c0_13], %11 {strides = array<i32>} : memref<9x32xf32, #tpu.memory_space<vmem>>, vector<1x32xf32>,
    %c2 = arith.constant 2 : index
    %c0_14 = arith.constant 0 : index
    %13 = vector.load %arg13[%c2, %c0_14] : memref<64x32xf32, #tpu.memory_space<vmem>>, vector<1x32xf32>
    %c1 = arith.constant 1 : index
    %c0_15 = arith.constant 0 : index
    %14 = vector.load %arg15[%c1, %c0_15] : memref<9x32xf32, #tpu.memory_space<vmem>>, vector<1x32xf32>
    tpu.vector_store %arg15[%c1, %c0_15], %13 {strides = array<i32>} : memref<9x32xf32, #tpu.memory_space<vmem>>, vector<1x32xf32>,
    %c4 = arith.constant 4 : index
    %c0_16 = arith.constant 0 : index
    %15 = vector.load %arg13[%c4, %c0_16] : memref<64x32xf32, #tpu.memory_space<vmem>>, vector<1x32xf32>
    %c2_17 = arith.constant 2 : index
    %c0_18 = arith.constant 0 : index
    %16 = vector.load %arg15[%c2_17, %c0_18] : memref<9x32xf32, #tpu.memory_space<vmem>>, vector<1x32xf32>
    tpu.vector_store %arg15[%c2_17, %c0_18], %15 {strides = array<i32>} : memref<9x32xf32, #tpu.memory_space<vmem>>, vector<1x32xf32>,
    %c16 = arith.constant 16 : index
    %c0_19 = arith.constant 0 : index
    %17 = vector.load %arg13[%c16, %c0_19] : memref<64x32xf32, #tpu.memory_space<vmem>>, vector<1x32xf32>
    %c3 = arith.constant 3 : index
    %c0_20 = arith.constant 0 : index
    %18 = vector.load %arg15[%c3, %c0_20] : memref<9x32xf32, #tpu.memory_space<vmem>>, vector<1x32xf32>
    tpu.vector_store %arg15[%c3, %c0_20], %17 {strides = array<i32>} : memref<9x32xf32, #tpu.memory_space<vmem>>, vector<1x32xf32>,
    %c18 = arith.constant 18 : index
    %c0_21 = arith.constant 0 : index
    %19 = vector.load %arg13[%c18, %c0_21] : memref<64x32xf32, #tpu.memory_space<vmem>>, vector<1x32xf32>
    %c4_22 = arith.constant 4 : index
    %c0_23 = arith.constant 0 : index
    %20 = vector.load %arg15[%c4_22, %c0_23] : memref<9x32xf32, #tpu.memory_space<vmem>>, vector<1x32xf32>
    tpu.vector_store %arg15[%c4_22, %c0_23], %19 {strides = array<i32>} : memref<9x32xf32, #tpu.memory_space<vmem>>, vector<1x32xf32>,
    %c20 = arith.constant 20 : index
    %c0_24 = arith.constant 0 : index
    %21 = vector.load %arg13[%c20, %c0_24] : memref<64x32xf32, #tpu.memory_space<vmem>>, vector<1x32xf32>
    %c5 = arith.constant 5 : index
    %c0_25 = arith.constant 0 : index
    %22 = vector.load %arg15[%c5, %c0_25] : memref<9x32xf32, #tpu.memory_space<vmem>>, vector<1x32xf32>
    tpu.vector_store %arg15[%c5, %c0_25], %21 {strides = array<i32>} : memref<9x32xf32, #tpu.memory_space<vmem>>, vector<1x32xf32>,
    %c32 = arith.constant 32 : index
    %c0_26 = arith.constant 0 : index
    %23 = vector.load %arg13[%c32, %c0_26] : memref<64x32xf32, #tpu.memory_space<vmem>>, vector<1x32xf32>
    %c6 = arith.constant 6 : index
    %c0_27 = arith.constant 0 : index
    %24 = vector.load %arg15[%c6, %c0_27] : memref<9x32xf32, #tpu.memory_space<vmem>>, vector<1x32xf32>
    tpu.vector_store %arg15[%c6, %c0_27], %23 {strides = array<i32>} : memref<9x32xf32, #tpu.memory_space<vmem>>, vector<1x32xf32>,
    %c34 = arith.constant 34 : index
    %c0_28 = arith.constant 0 : index
    %25 = vector.load %arg13[%c34, %c0_28] : memref<64x32xf32, #tpu.memory_space<vmem>>, vector<1x32xf32>
    %c7 = arith.constant 7 : index
    %c0_29 = arith.constant 0 : index
    %26 = vector.load %arg15[%c7, %c0_29] : memref<9x32xf32, #tpu.memory_space<vmem>>, vector<1x32xf32>
    tpu.vector_store %arg15[%c7, %c0_29], %25 {strides = array<i32>} : memref<9x32xf32, #tpu.memory_space<vmem>>, vector<1x32xf32>,
    %c36 = arith.constant 36 : index
    %c0_30 = arith.constant 0 : index
    %27 = vector.load %arg13[%c36, %c0_30] : memref<64x32xf32, #tpu.memory_space<vmem>>, vector<1x32xf32>
    %c8 = arith.constant 8 : index
    %c0_31 = arith.constant 0 : index
    %28 = vector.load %arg15[%c8, %c0_31] : memref<9x32xf32, #tpu.memory_space<vmem>>, vector<1x32xf32>
    tpu.vector_store %arg15[%c8, %c0_31], %27 {strides = array<i32>} : memref<9x32xf32, #tpu.memory_space<vmem>>, vector<1x32xf32>,
    %c0_32 = arith.constant 0 : index
    %c0_33 = arith.constant 0 : index
    %29 = vector.load %arg15[%c0_32, %c0_33] : memref<9x32xf32, #tpu.memory_space<vmem>>, vector<9x32xf32>
    %30 = arith.truncf %29 : vector<9x32xf32> to vector<9x32xbf16>
    %c0_34 = arith.constant 0 : index
    %c0_35 = arith.constant 0 : index
    %c0_36 = arith.constant 0 : index
    %31 = vector.load %arg4[%c0_34, %c0_35, %c0_36] : memref<16x32x64xbf16, #tpu.memory_space<vmem>>, vector<1x32x64xbf16>
    %32 = vector.shape_cast %31 : vector<1x32x64xbf16> to vector<32x64xbf16>
    %cst_37 = arith.constant dense<0.000000e+00> : vector<9x64xf32>
    %33 = tpu.matmul %30, %32, %cst_37 {dimension_numbers = #tpu.dot_dimension_numbers<[1], [0], [0], [1], [0, 0, 1, 1], [], []>} : vector<9x32xbf16>, vector<32x64xbf16>, vector<9x64xf32> -> vector<9x64xf32>
    %34 = arith.addf %10, %33 : vector<9x64xf32>
    %c1_38 = arith.constant 1 : index
    %c0_39 = arith.constant 0 : index
    %35 = vector.load %arg13[%c1_38, %c0_39] : memref<64x32xf32, #tpu.memory_space<vmem>>, vector<1x32xf32>
    %c0_40 = arith.constant 0 : index
    %c0_41 = arith.constant 0 : index
    %36 = vector.load %arg15[%c0_40, %c0_41] : memref<9x32xf32, #tpu.memory_space<vmem>>, vector<1x32xf32>
    tpu.vector_store %arg15[%c0_40, %c0_41], %35 {strides = array<i32>} : memref<9x32xf32, #tpu.memory_space<vmem>>, vector<1x32xf32>,
    %c3_42 = arith.constant 3 : index
    %c0_43 = arith.constant 0 : index
    %37 = vector.load %arg13[%c3_42, %c0_43] : memref<64x32xf32, #tpu.memory_space<vmem>>, vector<1x32xf32>
    %c1_44 = arith.constant 1 : index
    %c0_45 = arith.constant 0 : index
    %38 = vector.load %arg15[%c1_44, %c0_45] : memref<9x32xf32, #tpu.memory_space<vmem>>, vector<1x32xf32>
    tpu.vector_store %arg15[%c1_44, %c0_45], %37 {strides = array<i32>} : memref<9x32xf32, #tpu.memory_space<vmem>>, vector<1x32xf32>,
    %c5_46 = arith.constant 5 : index
    %c0_47 = arith.constant 0 : index
    %39 = vector.load %arg13[%c5_46, %c0_47] : memref<64x32xf32, #tpu.memory_space<vmem>>, vector<1x32xf32>
    %c2_48 = arith.constant 2 : index
    %c0_49 = arith.constant 0 : index
    %40 = vector.load %arg15[%c2_48, %c0_49] : memref<9x32xf32, #tpu.memory_space<vmem>>, vector<1x32xf32>
    tpu.vector_store %arg15[%c2_48, %c0_49], %39 {strides = array<i32>} : memref<9x32xf32, #tpu.memory_space<vmem>>, vector<1x32xf32>,
    %c17 = arith.constant 17 : index
    %c0_50 = arith.constant 0 : index
    %41 = vector.load %arg13[%c17, %c0_50] : memref<64x32xf32, #tpu.memory_space<vmem>>, vector<1x32xf32>
    %c3_51 = arith.constant 3 : index
    %c0_52 = arith.constant 0 : index
    %42 = vector.load %arg15[%c3_51, %c0_52] : memref<9x32xf32, #tpu.memory_space<vmem>>, vector<1x32xf32>
    tpu.vector_store %arg15[%c3_51, %c0_52], %41 {strides = array<i32>} : memref<9x32xf32, #tpu.memory_space<vmem>>, vector<1x32xf32>,
    %c19 = arith.constant 19 : index
    %c0_53 = arith.constant 0 : index
    %43 = vector.load %arg13[%c19, %c0_53] : memref<64x32xf32, #tpu.memory_space<vmem>>, vector<1x32xf32>
    %c4_54 = arith.constant 4 : index
    %c0_55 = arith.constant 0 : index
    %44 = vector.load %arg15[%c4_54, %c0_55] : memref<9x32xf32, #tpu.memory_space<vmem>>, vector<1x32xf32>
    tpu.vector_store %arg15[%c4_54, %c0_55], %43 {strides = array<i32>} : memref<9x32xf32, #tpu.memory_space<vmem>>, vector<1x32xf32>,
    %c21 = arith.constant 21 : index
    %c0_56 = arith.constant 0 : index
    %45 = vector.load %arg13[%c21, %c0_56] : memref<64x32xf32, #tpu.memory_space<vmem>>, vector<1x32xf32>
    %c5_57 = arith.constant 5 : index
    %c0_58 = arith.constant 0 : index
    %46 = vector.load %arg15[%c5_57, %c0_58] : memref<9x32xf32, #tpu.memory_space<vmem>>, vector<1x32xf32>
    tpu.vector_store %arg15[%c5_57, %c0_58], %45 {strides = array<i32>} : memref<9x32xf32, #tpu.memory_space<vmem>>, vector<1x32xf32>,
    %c33 = arith.constant 33 : index
    %c0_59 = arith.constant 0 : index
    %47 = vector.load %arg13[%c33, %c0_59] : memref<64x32xf32, #tpu.memory_space<vmem>>, vector<1x32xf32>
    %c6_60 = arith.constant 6 : index
    %c0_61 = arith.constant 0 : index
    %48 = vector.load %arg15[%c6_60, %c0_61] : memref<9x32xf32, #tpu.memory_space<vmem>>, vector<1x32xf32>
    tpu.vector_store %arg15[%c6_60, %c0_61], %47 {strides = array<i32>} : memref<9x32xf32, #tpu.memory_space<vmem>>, vector<1x32xf32>,
    %c35 = arith.constant 35 : index
    %c0_62 = arith.constant 0 : index
    %49 = vector.load %arg13[%c35, %c0_62] : memref<64x32xf32, #tpu.memory_space<vmem>>, vector<1x32xf32>
    %c7_63 = arith.constant 7 : index
    %c0_64 = arith.constant 0 : index
    %50 = vector.load %arg15[%c7_63, %c0_64] : memref<9x32xf32, #tpu.memory_space<vmem>>, vector<1x32xf32>
    tpu.vector_store %arg15[%c7_63, %c0_64], %49 {strides = array<i32>} : memref<9x32xf32, #tpu.memory_space<vmem>>, vector<1x32xf32>,
    %c37 = arith.constant 37 : index
    %c0_65 = arith.constant 0 : index
    %51 = vector.load %arg13[%c37, %c0_65] : memref<64x32xf32, #tpu.memory_space<vmem>>, vector<1x32xf32>
    %c8_66 = arith.constant 8 : index
    %c0_67 = arith.constant 0 : index
    %52 = vector.load %arg15[%c8_66, %c0_67] : memref<9x32xf32, #tpu.memory_space<vmem>>, vector<1x32xf32>
    tpu.vector_store %arg15[%c8_66, %c0_67], %51 {strides = array<i32>} : memref<9x32xf32, #tpu.memory_space<vmem>>, vector<1x32xf32>,
    %c0_68 = arith.constant 0 : index
    %c0_69 = arith.constant 0 : index
    %53 = vector.load %arg15[%c0_68, %c0_69] : memref<9x32xf32, #tpu.memory_space<vmem>>, vector<9x32xf32>
    %54 = arith.truncf %53 : vector<9x32xf32> to vector<9x32xbf16>
    %c1_70 = arith.constant 1 : index
    %c0_71 = arith.constant 0 : index
    %c0_72 = arith.constant 0 : index
    %55 = vector.load %arg4[%c1_70, %c0_71, %c0_72] : memref<16x32x64xbf16, #tpu.memory_space<vmem>>, vector<1x32x64xbf16>
    %56 = vector.shape_cast %55 : vector<1x32x64xbf16> to vector<32x64xbf16>
    %cst_73 = arith.constant dense<0.000000e+00> : vector<9x64xf32>
    %57 = tpu.matmul %54, %56, %cst_73 {dimension_numbers = #tpu.dot_dimension_numbers<[1], [0], [0], [1], [0, 0, 1, 1], [], []>} : vector<9x32xbf16>, vector<32x64xbf16>, vector<9x64xf32> -> vector<9x64xf32>
    %58 = arith.addf %34, %57 : vector<9x64xf32>
    %c2_74 = arith.constant 2 : index
    %c0_75 = arith.constant 0 : index
    %59 = vector.load %arg13[%c2_74, %c0_75] : memref<64x32xf32, #tpu.memory_space<vmem>>, vector<1x32xf32>
    %c0_76 = arith.constant 0 : index
    %c0_77 = arith.constant 0 : index
    %60 = vector.load %arg15[%c0_76, %c0_77] : memref<9x32xf32, #tpu.memory_space<vmem>>, vector<1x32xf32>
    tpu.vector_store %arg15[%c0_76, %c0_77], %59 {strides = array<i32>} : memref<9x32xf32, #tpu.memory_space<vmem>>, vector<1x32xf32>,
    %c4_78 = arith.constant 4 : index
    %c0_79 = arith.constant 0 : index
    %61 = vector.load %arg13[%c4_78, %c0_79] : memref<64x32xf32, #tpu.memory_space<vmem>>, vector<1x32xf32>
    %c1_80 = arith.constant 1 : index
    %c0_81 = arith.constant 0 : index
    %62 = vector.load %arg15[%c1_80, %c0_81] : memref<9x32xf32, #tpu.memory_space<vmem>>, vector<1x32xf32>
    tpu.vector_store %arg15[%c1_80, %c0_81], %61 {strides = array<i32>} : memref<9x32xf32, #tpu.memory_space<vmem>>, vector<1x32xf32>,
    %c6_82 = arith.constant 6 : index
    %c0_83 = arith.constant 0 : index
    %63 = vector.load %arg13[%c6_82, %c0_83] : memref<64x32xf32, #tpu.memory_space<vmem>>, vector<1x32xf32>
    %c2_84 = arith.constant 2 : index
    %c0_85 = arith.constant 0 : index
    %64 = vector.load %arg15[%c2_84, %c0_85] : memref<9x32xf32, #tpu.memory_space<vmem>>, vector<1x32xf32>
    tpu.vector_store %arg15[%c2_84, %c0_85], %63 {strides = array<i32>} : memref<9x32xf32, #tpu.memory_space<vmem>>, vector<1x32xf32>,
    %c18_86 = arith.constant 18 : index
    %c0_87 = arith.constant 0 : index
    %65 = vector.load %arg13[%c18_86, %c0_87] : memref<64x32xf32, #tpu.memory_space<vmem>>, vector<1x32xf32>
    %c3_88 = arith.constant 3 : index
    %c0_89 = arith.constant 0 : index
    %66 = vector.load %arg15[%c3_88, %c0_89] : memref<9x32xf32, #tpu.memory_space<vmem>>, vector<1x32xf32>
    tpu.vector_store %arg15[%c3_88, %c0_89], %65 {strides = array<i32>} : memref<9x32xf32, #tpu.memory_space<vmem>>, vector<1x32xf32>,
    %c20_90 = arith.constant 20 : index
    %c0_91 = arith.constant 0 : index
    %67 = vector.load %arg13[%c20_90, %c0_91] : memref<64x32xf32, #tpu.memory_space<vmem>>, vector<1x32xf32>
    %c4_92 = arith.constant 4 : index
    %c0_93 = arith.constant 0 : index
    %68 = vector.load %arg15[%c4_92, %c0_93] : memref<9x32xf32, #tpu.memory_space<vmem>>, vector<1x32xf32>
    tpu.vector_store %arg15[%c4_92, %c0_93], %67 {strides = array<i32>} : memref<9x32xf32, #tpu.memory_space<vmem>>, vector<1x32xf32>,
    %c22 = arith.constant 22 : index
    %c0_94 = arith.constant 0 : index
    %69 = vector.load %arg13[%c22, %c0_94] : memref<64x32xf32, #tpu.memory_space<vmem>>, vector<1x32xf32>
    %c5_95 = arith.constant 5 : index
    %c0_96 = arith.constant 0 : index
    %70 = vector.load %arg15[%c5_95, %c0_96] : memref<9x32xf32, #tpu.memory_space<vmem>>, vector<1x32xf32>
    tpu.vector_store %arg15[%c5_95, %c0_96], %69 {strides = array<i32>} : memref<9x32xf32, #tpu.memory_space<vmem>>, vector<1x32xf32>,
    %c34_97 = arith.constant 34 : index
    %c0_98 = arith.constant 0 : index
    %71 = vector.load %arg13[%c34_97, %c0_98] : memref<64x32xf32, #tpu.memory_space<vmem>>, vector<1x32xf32>
    %c6_99 = arith.constant 6 : index
    %c0_100 = arith.constant 0 : index
    %72 = vector.load %arg15[%c6_99, %c0_100] : memref<9x32xf32, #tpu.memory_space<vmem>>, vector<1x32xf32>
    tpu.vector_store %arg15[%c6_99, %c0_100], %71 {strides = array<i32>} : memref<9x32xf32, #tpu.memory_space<vmem>>, vector<1x32xf32>,
    %c36_101 = arith.constant 36 : index
    %c0_102 = arith.constant 0 : index
    %73 = vector.load %arg13[%c36_101, %c0_102] : memref<64x32xf32, #tpu.memory_space<vmem>>, vector<1x32xf32>
    %c7_103 = arith.constant 7 : index
    %c0_104 = arith.constant 0 : index
    %74 = vector.load %arg15[%c7_103, %c0_104] : memref<9x32xf32, #tpu.memory_space<vmem>>, vector<1x32xf32>
    tpu.vector_store %arg15[%c7_103, %c0_104], %73 {strides = array<i32>} : memref<9x32xf32, #tpu.memory_space<vmem>>, vector<1x32xf32>,
    %c38 = arith.constant 38 : index
    %c0_105 = arith.constant 0 : index
    %75 = vector.load %arg13[%c38, %c0_105] : memref<64x32xf32, #tpu.memory_space<vmem>>, vector<1x32xf32>
    %c8_106 = arith.constant 8 : index
    %c0_107 = arith.constant 0 : index
    %76 = vector.load %arg15[%c8_106, %c0_107] : memref<9x32xf32, #tpu.memory_space<vmem>>, vector<1x32xf32>
    tpu.vector_store %arg15[%c8_106, %c0_107], %75 {strides = array<i32>} : memref<9x32xf32, #tpu.memory_space<vmem>>, vector<1x32xf32>,
    %c0_108 = arith.constant 0 : index
    %c0_109 = arith.constant 0 : index
    %77 = vector.load %arg15[%c0_108, %c0_109] : memref<9x32xf32, #tpu.memory_space<vmem>>, vector<9x32xf32>
    %78 = arith.truncf %77 : vector<9x32xf32> to vector<9x32xbf16>
    %c2_110 = arith.constant 2 : index
    %c0_111 = arith.constant 0 : index
    %c0_112 = arith.constant 0 : index
    %79 = vector.load %arg4[%c2_110, %c0_111, %c0_112] : memref<16x32x64xbf16, #tpu.memory_space<vmem>>, vector<1x32x64xbf16>
    %80 = vector.shape_cast %79 : vector<1x32x64xbf16> to vector<32x64xbf16>
    %cst_113 = arith.constant dense<0.000000e+00> : vector<9x64xf32>
    %81 = tpu.matmul %78, %80, %cst_113 {dimension_numbers = #tpu.dot_dimension_numbers<[1], [0], [0], [1], [0, 0, 1, 1], [], []>} : vector<9x32xbf16>, vector<32x64xbf16>, vector<9x64xf32> -> vector<9x64xf32>
    %82 = arith.addf %58, %81 : vector<9x64xf32>
    %c3_114 = arith.constant 3 : index
    %c0_115 = arith.constant 0 : index
    %83 = vector.load %arg13[%c3_114, %c0_115] : memref<64x32xf32, #tpu.memory_space<vmem>>, vector<1x32xf32>
    %c0_116 = arith.constant 0 : index
    %c0_117 = arith.constant 0 : index
    %84 = vector.load %arg15[%c0_116, %c0_117] : memref<9x32xf32, #tpu.memory_space<vmem>>, vector<1x32xf32>
    tpu.vector_store %arg15[%c0_116, %c0_117], %83 {strides = array<i32>} : memref<9x32xf32, #tpu.memory_space<vmem>>, vector<1x32xf32>,
    %c5_118 = arith.constant 5 : index
    %c0_119 = arith.constant 0 : index
    %85 = vector.load %arg13[%c5_118, %c0_119] : memref<64x32xf32, #tpu.memory_space<vmem>>, vector<1x32xf32>
    %c1_120 = arith.constant 1 : index
    %c0_121 = arith.constant 0 : index
    %86 = vector.load %arg15[%c1_120, %c0_121] : memref<9x32xf32, #tpu.memory_space<vmem>>, vector<1x32xf32>
    tpu.vector_store %arg15[%c1_120, %c0_121], %85 {strides = array<i32>} : memref<9x32xf32, #tpu.memory_space<vmem>>, vector<1x32xf32>,
    %c7_122 = arith.constant 7 : index
    %c0_123 = arith.constant 0 : index
    %87 = vector.load %arg13[%c7_122, %c0_123] : memref<64x32xf32, #tpu.memory_space<vmem>>, vector<1x32xf32>
    %c2_124 = arith.constant 2 : index
    %c0_125 = arith.constant 0 : index
    %88 = vector.load %arg15[%c2_124, %c0_125] : memref<9x32xf32, #tpu.memory_space<vmem>>, vector<1x32xf32>
    tpu.vector_store %arg15[%c2_124, %c0_125], %87 {strides = array<i32>} : memref<9x32xf32, #tpu.memory_space<vmem>>, vector<1x32xf32>,
    %c19_126 = arith.constant 19 : index
    %c0_127 = arith.constant 0 : index
    %89 = vector.load %arg13[%c19_126, %c0_127] : memref<64x32xf32, #tpu.memory_space<vmem>>, vector<1x32xf32>
    %c3_128 = arith.constant 3 : index
    %c0_129 = arith.constant 0 : index
    %90 = vector.load %arg15[%c3_128, %c0_129] : memref<9x32xf32, #tpu.memory_space<vmem>>, vector<1x32xf32>
    tpu.vector_store %arg15[%c3_128, %c0_129], %89 {strides = array<i32>} : memref<9x32xf32, #tpu.memory_space<vmem>>, vector<1x32xf32>,
    %c21_130 = arith.constant 21 : index
    %c0_131 = arith.constant 0 : index
    %91 = vector.load %arg13[%c21_130, %c0_131] : memref<64x32xf32, #tpu.memory_space<vmem>>, vector<1x32xf32>
    %c4_132 = arith.constant 4 : index
    %c0_133 = arith.constant 0 : index
    %92 = vector.load %arg15[%c4_132, %c0_133] : memref<9x32xf32, #tpu.memory_space<vmem>>, vector<1x32xf32>
    tpu.vector_store %arg15[%c4_132, %c0_133], %91 {strides = array<i32>} : memref<9x32xf32, #tpu.memory_space<vmem>>, vector<1x32xf32>,
    %c23 = arith.constant 23 : index
    %c0_134 = arith.constant 0 : index
    %93 = vector.load %arg13[%c23, %c0_134] : memref<64x32xf32, #tpu.memory_space<vmem>>, vector<1x32xf32>
    %c5_135 = arith.constant 5 : index
    %c0_136 = arith.constant 0 : index
    %94 = vector.load %arg15[%c5_135, %c0_136] : memref<9x32xf32, #tpu.memory_space<vmem>>, vector<1x32xf32>
    tpu.vector_store %arg15[%c5_135, %c0_136], %93 {strides = array<i32>} : memref<9x32xf32, #tpu.memory_space<vmem>>, vector<1x32xf32>,
    %c35_137 = arith.constant 35 : index
    %c0_138 = arith.constant 0 : index
    %95 = vector.load %arg13[%c35_137, %c0_138] : memref<64x32xf32, #tpu.memory_space<vmem>>, vector<1x32xf32>
    %c6_139 = arith.constant 6 : index
    %c0_140 = arith.constant 0 : index
    %96 = vector.load %arg15[%c6_139, %c0_140] : memref<9x32xf32, #tpu.memory_space<vmem>>, vector<1x32xf32>
    tpu.vector_store %arg15[%c6_139, %c0_140], %95 {strides = array<i32>} : memref<9x32xf32, #tpu.memory_space<vmem>>, vector<1x32xf32>,
    %c37_141 = arith.constant 37 : index
    %c0_142 = arith.constant 0 : index
    %97 = vector.load %arg13[%c37_141, %c0_142] : memref<64x32xf32, #tpu.memory_space<vmem>>, vector<1x32xf32>
    %c7_143 = arith.constant 7 : index
    %c0_144 = arith.constant 0 : index
    %98 = vector.load %arg15[%c7_143, %c0_144] : memref<9x32xf32, #tpu.memory_space<vmem>>, vector<1x32xf32>
    tpu.vector_store %arg15[%c7_143, %c0_144], %97 {strides = array<i32>} : memref<9x32xf32, #tpu.memory_space<vmem>>, vector<1x32xf32>,
    %c39 = arith.constant 39 : index
    %c0_145 = arith.constant 0 : index
    %99 = vector.load %arg13[%c39, %c0_145] : memref<64x32xf32, #tpu.memory_space<vmem>>, vector<1x32xf32>
    %c8_146 = arith.constant 8 : index
    %c0_147 = arith.constant 0 : index
    %100 = vector.load %arg15[%c8_146, %c0_147] : memref<9x32xf32, #tpu.memory_space<vmem>>, vector<1x32xf32>
    tpu.vector_store %arg15[%c8_146, %c0_147], %99 {strides = array<i32>} : memref<9x32xf32, #tpu.memory_space<vmem>>, vector<1x32xf32>,
    %c0_148 = arith.constant 0 : index
    %c0_149 = arith.constant 0 : index
    %101 = vector.load %arg15[%c0_148, %c0_149] : memref<9x32xf32, #tpu.memory_space<vmem>>, vector<9x32xf32>
    %102 = arith.truncf %101 : vector<9x32xf32> to vector<9x32xbf16>
    %c3_150 = arith.constant 3 : index
    %c0_151 = arith.constant 0 : index
    %c0_152 = arith.constant 0 : index
    %103 = vector.load %arg4[%c3_150, %c0_151, %c0_152] : memref<16x32x64xbf16, #tpu.memory_space<vmem>>, vector<1x32x64xbf16>
    %104 = vector.shape_cast %103 : vector<1x32x64xbf16> to vector<32x64xbf16>
    %cst_153 = arith.constant dense<0.000000e+00> : vector<9x64xf32>
    %105 = tpu.matmul %102, %104, %cst_153 {dimension_numbers = #tpu.dot_dimension_numbers<[1], [0], [0], [1], [0, 0, 1, 1], [], []>} : vector<9x32xbf16>, vector<32x64xbf16>, vector<9x64xf32> -> vector<9x64xf32>
    %106 = arith.addf %82, %105 : vector<9x64xf32>
    %c8_154 = arith.constant 8 : index
    %c0_155 = arith.constant 0 : index
    %107 = vector.load %arg13[%c8_154, %c0_155] : memref<64x32xf32, #tpu.memory_space<vmem>>, vector<1x32xf32>
    %c0_156 = arith.constant 0 : index
    %c0_157 = arith.constant 0 : index
    %108 = vector.load %arg15[%c0_156, %c0_157] : memref<9x32xf32, #tpu.memory_space<vmem>>, vector<1x32xf32>
    tpu.vector_store %arg15[%c0_156, %c0_157], %107 {strides = array<i32>} : memref<9x32xf32, #tpu.memory_space<vmem>>, vector<1x32xf32>,
    %c10 = arith.constant 10 : index
    %c0_158 = arith.constant 0 : index
    %109 = vector.load %arg13[%c10, %c0_158] : memref<64x32xf32, #tpu.memory_space<vmem>>, vector<1x32xf32>
    %c1_159 = arith.constant 1 : index
    %c0_160 = arith.constant 0 : index
    %110 = vector.load %arg15[%c1_159, %c0_160] : memref<9x32xf32, #tpu.memory_space<vmem>>, vector<1x32xf32>
    tpu.vector_store %arg15[%c1_159, %c0_160], %109 {strides = array<i32>} : memref<9x32xf32, #tpu.memory_space<vmem>>, vector<1x32xf32>,
    %c12 = arith.constant 12 : index
    %c0_161 = arith.constant 0 : index
    %111 = vector.load %arg13[%c12, %c0_161] : memref<64x32xf32, #tpu.memory_space<vmem>>, vector<1x32xf32>
    %c2_162 = arith.constant 2 : index
    %c0_163 = arith.constant 0 : index
    %112 = vector.load %arg15[%c2_162, %c0_163] : memref<9x32xf32, #tpu.memory_space<vmem>>, vector<1x32xf32>
    tpu.vector_store %arg15[%c2_162, %c0_163], %111 {strides = array<i32>} : memref<9x32xf32, #tpu.memory_space<vmem>>, vector<1x32xf32>,
    %c24 = arith.constant 24 : index
    %c0_164 = arith.constant 0 : index
    %113 = vector.load %arg13[%c24, %c0_164] : memref<64x32xf32, #tpu.memory_space<vmem>>, vector<1x32xf32>
    %c3_165 = arith.constant 3 : index
    %c0_166 = arith.constant 0 : index
    %114 = vector.load %arg15[%c3_165, %c0_166] : memref<9x32xf32, #tpu.memory_space<vmem>>, vector<1x32xf32>
    tpu.vector_store %arg15[%c3_165, %c0_166], %113 {strides = array<i32>} : memref<9x32xf32, #tpu.memory_space<vmem>>, vector<1x32xf32>,
    %c26 = arith.constant 26 : index
    %c0_167 = arith.constant 0 : index
    %115 = vector.load %arg13[%c26, %c0_167] : memref<64x32xf32, #tpu.memory_space<vmem>>, vector<1x32xf32>
    %c4_168 = arith.constant 4 : index
    %c0_169 = arith.constant 0 : index
    %116 = vector.load %arg15[%c4_168, %c0_169] : memref<9x32xf32, #tpu.memory_space<vmem>>, vector<1x32xf32>
    tpu.vector_store %arg15[%c4_168, %c0_169], %115 {strides = array<i32>} : memref<9x32xf32, #tpu.memory_space<vmem>>, vector<1x32xf32>,
    %c28 = arith.constant 28 : index
    %c0_170 = arith.constant 0 : index
    %117 = vector.load %arg13[%c28, %c0_170] : memref<64x32xf32, #tpu.memory_space<vmem>>, vector<1x32xf32>
    %c5_171 = arith.constant 5 : index
    %c0_172 = arith.constant 0 : index
    %118 = vector.load %arg15[%c5_171, %c0_172] : memref<9x32xf32, #tpu.memory_space<vmem>>, vector<1x32xf32>
    tpu.vector_store %arg15[%c5_171, %c0_172], %117 {strides = array<i32>} : memref<9x32xf32, #tpu.memory_space<vmem>>, vector<1x32xf32>,
    %c40 = arith.constant 40 : index
    %c0_173 = arith.constant 0 : index
    %119 = vector.load %arg13[%c40, %c0_173] : memref<64x32xf32, #tpu.memory_space<vmem>>, vector<1x32xf32>
    %c6_174 = arith.constant 6 : index
    %c0_175 = arith.constant 0 : index
    %120 = vector.load %arg15[%c6_174, %c0_175] : memref<9x32xf32, #tpu.memory_space<vmem>>, vector<1x32xf32>
    tpu.vector_store %arg15[%c6_174, %c0_175], %119 {strides = array<i32>} : memref<9x32xf32, #tpu.memory_space<vmem>>, vector<1x32xf32>,
    %c42 = arith.constant 42 : index
    %c0_176 = arith.constant 0 : index
    %121 = vector.load %arg13[%c42, %c0_176] : memref<64x32xf32, #tpu.memory_space<vmem>>, vector<1x32xf32>
    %c7_177 = arith.constant 7 : index
    %c0_178 = arith.constant 0 : index
    %122 = vector.load %arg15[%c7_177, %c0_178] : memref<9x32xf32, #tpu.memory_space<vmem>>, vector<1x32xf32>
    tpu.vector_store %arg15[%c7_177, %c0_178], %121 {strides = array<i32>} : memref<9x32xf32, #tpu.memory_space<vmem>>, vector<1x32xf32>,
    %c44 = arith.constant 44 : index
    %c0_179 = arith.constant 0 : index
    %123 = vector.load %arg13[%c44, %c0_179] : memref<64x32xf32, #tpu.memory_space<vmem>>, vector<1x32xf32>
    %c8_180 = arith.constant 8 : index
    %c0_181 = arith.constant 0 : index
    %124 = vector.load %arg15[%c8_180, %c0_181] : memref<9x32xf32, #tpu.memory_space<vmem>>, vector<1x32xf32>
    tpu.vector_store %arg15[%c8_180, %c0_181], %123 {strides = array<i32>} : memref<9x32xf32, #tpu.memory_space<vmem>>, vector<1x32xf32>,
    %c0_182 = arith.constant 0 : index
    %c0_183 = arith.constant 0 : index
    %125 = vector.load %arg15[%c0_182, %c0_183] : memref<9x32xf32, #tpu.memory_space<vmem>>, vector<9x32xf32>
    %126 = arith.truncf %125 : vector<9x32xf32> to vector<9x32xbf16>
    %c4_184 = arith.constant 4 : index
    %c0_185 = arith.constant 0 : index
    %c0_186 = arith.constant 0 : index
    %127 = vector.load %arg4[%c4_184, %c0_185, %c0_186] : memref<16x32x64xbf16, #tpu.memory_space<vmem>>, vector<1x32x64xbf16>
    %128 = vector.shape_cast %127 : vector<1x32x64xbf16> to vector<32x64xbf16>
    %cst_187 = arith.constant dense<0.000000e+00> : vector<9x64xf32>
    %129 = tpu.matmul %126, %128, %cst_187 {dimension_numbers = #tpu.dot_dimension_numbers<[1], [0], [0], [1], [0, 0, 1, 1], [], []>} : vector<9x32xbf16>, vector<32x64xbf16>, vector<9x64xf32> -> vector<9x64xf32>
    %130 = arith.addf %106, %129 : vector<9x64xf32>
    %c9 = arith.constant 9 : index
    %c0_188 = arith.constant 0 : index
    %131 = vector.load %arg13[%c9, %c0_188] : memref<64x32xf32, #tpu.memory_space<vmem>>, vector<1x32xf32>
    %c0_189 = arith.constant 0 : index
    %c0_190 = arith.constant 0 : index
    %132 = vector.load %arg15[%c0_189, %c0_190] : memref<9x32xf32, #tpu.memory_space<vmem>>, vector<1x32xf32>
    tpu.vector_store %arg15[%c0_189, %c0_190], %131 {strides = array<i32>} : memref<9x32xf32, #tpu.memory_space<vmem>>, vector<1x32xf32>,
    %c11 = arith.constant 11 : index
    %c0_191 = arith.constant 0 : index
    %133 = vector.load %arg13[%c11, %c0_191] : memref<64x32xf32, #tpu.memory_space<vmem>>, vector<1x32xf32>
    %c1_192 = arith.constant 1 : index
    %c0_193 = arith.constant 0 : index
    %134 = vector.load %arg15[%c1_192, %c0_193] : memref<9x32xf32, #tpu.memory_space<vmem>>, vector<1x32xf32>
    tpu.vector_store %arg15[%c1_192, %c0_193], %133 {strides = array<i32>} : memref<9x32xf32, #tpu.memory_space<vmem>>, vector<1x32xf32>,
    %c13 = arith.constant 13 : index
    %c0_194 = arith.constant 0 : index
    %135 = vector.load %arg13[%c13, %c0_194] : memref<64x32xf32, #tpu.memory_space<vmem>>, vector<1x32xf32>
    %c2_195 = arith.constant 2 : index
    %c0_196 = arith.constant 0 : index
    %136 = vector.load %arg15[%c2_195, %c0_196] : memref<9x32xf32, #tpu.memory_space<vmem>>, vector<1x32xf32>
    tpu.vector_store %arg15[%c2_195, %c0_196], %135 {strides = array<i32>} : memref<9x32xf32, #tpu.memory_space<vmem>>, vector<1x32xf32>,
    %c25 = arith.constant 25 : index
    %c0_197 = arith.constant 0 : index
    %137 = vector.load %arg13[%c25, %c0_197] : memref<64x32xf32, #tpu.memory_space<vmem>>, vector<1x32xf32>
    %c3_198 = arith.constant 3 : index
    %c0_199 = arith.constant 0 : index
    %138 = vector.load %arg15[%c3_198, %c0_199] : memref<9x32xf32, #tpu.memory_space<vmem>>, vector<1x32xf32>
    tpu.vector_store %arg15[%c3_198, %c0_199], %137 {strides = array<i32>} : memref<9x32xf32, #tpu.memory_space<vmem>>, vector<1x32xf32>,
    %c27 = arith.constant 27 : index
    %c0_200 = arith.constant 0 : index
    %139 = vector.load %arg13[%c27, %c0_200] : memref<64x32xf32, #tpu.memory_space<vmem>>, vector<1x32xf32>
    %c4_201 = arith.constant 4 : index
    %c0_202 = arith.constant 0 : index
    %140 = vector.load %arg15[%c4_201, %c0_202] : memref<9x32xf32, #tpu.memory_space<vmem>>, vector<1x32xf32>
    tpu.vector_store %arg15[%c4_201, %c0_202], %139 {strides = array<i32>} : memref<9x32xf32, #tpu.memory_space<vmem>>, vector<1x32xf32>,
    %c29 = arith.constant 29 : index
    %c0_203 = arith.constant 0 : index
    %141 = vector.load %arg13[%c29, %c0_203] : memref<64x32xf32, #tpu.memory_space<vmem>>, vector<1x32xf32>
    %c5_204 = arith.constant 5 : index
    %c0_205 = arith.constant 0 : index
    %142 = vector.load %arg15[%c5_204, %c0_205] : memref<9x32xf32, #tpu.memory_space<vmem>>, vector<1x32xf32>
    tpu.vector_store %arg15[%c5_204, %c0_205], %141 {strides = array<i32>} : memref<9x32xf32, #tpu.memory_space<vmem>>, vector<1x32xf32>,
    %c41 = arith.constant 41 : index
    %c0_206 = arith.constant 0 : index
    %143 = vector.load %arg13[%c41, %c0_206] : memref<64x32xf32, #tpu.memory_space<vmem>>, vector<1x32xf32>
    %c6_207 = arith.constant 6 : index
    %c0_208 = arith.constant 0 : index
    %144 = vector.load %arg15[%c6_207, %c0_208] : memref<9x32xf32, #tpu.memory_space<vmem>>, vector<1x32xf32>
    tpu.vector_store %arg15[%c6_207, %c0_208], %143 {strides = array<i32>} : memref<9x32xf32, #tpu.memory_space<vmem>>, vector<1x32xf32>,
    %c43 = arith.constant 43 : index
    %c0_209 = arith.constant 0 : index
    %145 = vector.load %arg13[%c43, %c0_209] : memref<64x32xf32, #tpu.memory_space<vmem>>, vector<1x32xf32>
    %c7_210 = arith.constant 7 : index
    %c0_211 = arith.constant 0 : index
    %146 = vector.load %arg15[%c7_210, %c0_211] : memref<9x32xf32, #tpu.memory_space<vmem>>, vector<1x32xf32>
    tpu.vector_store %arg15[%c7_210, %c0_211], %145 {strides = array<i32>} : memref<9x32xf32, #tpu.memory_space<vmem>>, vector<1x32xf32>,
    %c45 = arith.constant 45 : index
    %c0_212 = arith.constant 0 : index
    %147 = vector.load %arg13[%c45, %c0_212] : memref<64x32xf32, #tpu.memory_space<vmem>>, vector<1x32xf32>
    %c8_213 = arith.constant 8 : index
    %c0_214 = arith.constant 0 : index
    %148 = vector.load %arg15[%c8_213, %c0_214] : memref<9x32xf32, #tpu.memory_space<vmem>>, vector<1x32xf32>
    tpu.vector_store %arg15[%c8_213, %c0_214], %147 {strides = array<i32>} : memref<9x32xf32, #tpu.memory_space<vmem>>, vector<1x32xf32>,
    %c0_215 = arith.constant 0 : index
    %c0_216 = arith.constant 0 : index
    %149 = vector.load %arg15[%c0_215, %c0_216] : memref<9x32xf32, #tpu.memory_space<vmem>>, vector<9x32xf32>
    %150 = arith.truncf %149 : vector<9x32xf32> to vector<9x32xbf16>
    %c5_217 = arith.constant 5 : index
    %c0_218 = arith.constant 0 : index
    %c0_219 = arith.constant 0 : index
    %151 = vector.load %arg4[%c5_217, %c0_218, %c0_219] : memref<16x32x64xbf16, #tpu.memory_space<vmem>>, vector<1x32x64xbf16>
    %152 = vector.shape_cast %151 : vector<1x32x64xbf16> to vector<32x64xbf16>
    %cst_220 = arith.constant dense<0.000000e+00> : vector<9x64xf32>
    %153 = tpu.matmul %150, %152, %cst_220 {dimension_numbers = #tpu.dot_dimension_numbers<[1], [0], [0], [1], [0, 0, 1, 1], [], []>} : vector<9x32xbf16>, vector<32x64xbf16>, vector<9x64xf32> -> vector<9x64xf32>
    %154 = arith.addf %130, %153 : vector<9x64xf32>
    %c10_221 = arith.constant 10 : index
    %c0_222 = arith.constant 0 : index
    %155 = vector.load %arg13[%c10_221, %c0_222] : memref<64x32xf32, #tpu.memory_space<vmem>>, vector<1x32xf32>
    %c0_223 = arith.constant 0 : index
    %c0_224 = arith.constant 0 : index
    %156 = vector.load %arg15[%c0_223, %c0_224] : memref<9x32xf32, #tpu.memory_space<vmem>>, vector<1x32xf32>
    tpu.vector_store %arg15[%c0_223, %c0_224], %155 {strides = array<i32>} : memref<9x32xf32, #tpu.memory_space<vmem>>, vector<1x32xf32>,
    %c12_225 = arith.constant 12 : index
    %c0_226 = arith.constant 0 : index
    %157 = vector.load %arg13[%c12_225, %c0_226] : memref<64x32xf32, #tpu.memory_space<vmem>>, vector<1x32xf32>
    %c1_227 = arith.constant 1 : index
    %c0_228 = arith.constant 0 : index
    %158 = vector.load %arg15[%c1_227, %c0_228] : memref<9x32xf32, #tpu.memory_space<vmem>>, vector<1x32xf32>
    tpu.vector_store %arg15[%c1_227, %c0_228], %157 {strides = array<i32>} : memref<9x32xf32, #tpu.memory_space<vmem>>, vector<1x32xf32>,
    %c14 = arith.constant 14 : index
    %c0_229 = arith.constant 0 : index
    %159 = vector.load %arg13[%c14, %c0_229] : memref<64x32xf32, #tpu.memory_space<vmem>>, vector<1x32xf32>
    %c2_230 = arith.constant 2 : index
    %c0_231 = arith.constant 0 : index
    %160 = vector.load %arg15[%c2_230, %c0_231] : memref<9x32xf32, #tpu.memory_space<vmem>>, vector<1x32xf32>
    tpu.vector_store %arg15[%c2_230, %c0_231], %159 {strides = array<i32>} : memref<9x32xf32, #tpu.memory_space<vmem>>, vector<1x32xf32>,
    %c26_232 = arith.constant 26 : index
    %c0_233 = arith.constant 0 : index
    %161 = vector.load %arg13[%c26_232, %c0_233] : memref<64x32xf32, #tpu.memory_space<vmem>>, vector<1x32xf32>
    %c3_234 = arith.constant 3 : index
    %c0_235 = arith.constant 0 : index
    %162 = vector.load %arg15[%c3_234, %c0_235] : memref<9x32xf32, #tpu.memory_space<vmem>>, vector<1x32xf32>
    tpu.vector_store %arg15[%c3_234, %c0_235], %161 {strides = array<i32>} : memref<9x32xf32, #tpu.memory_space<vmem>>, vector<1x32xf32>,
    %c28_236 = arith.constant 28 : index
    %c0_237 = arith.constant 0 : index
    %163 = vector.load %arg13[%c28_236, %c0_237] : memref<64x32xf32, #tpu.memory_space<vmem>>, vector<1x32xf32>
    %c4_238 = arith.constant 4 : index
    %c0_239 = arith.constant 0 : index
    %164 = vector.load %arg15[%c4_238, %c0_239] : memref<9x32xf32, #tpu.memory_space<vmem>>, vector<1x32xf32>
    tpu.vector_store %arg15[%c4_238, %c0_239], %163 {strides = array<i32>} : memref<9x32xf32, #tpu.memory_space<vmem>>, vector<1x32xf32>,
    %c30 = arith.constant 30 : index
    %c0_240 = arith.constant 0 : index
    %165 = vector.load %arg13[%c30, %c0_240] : memref<64x32xf32, #tpu.memory_space<vmem>>, vector<1x32xf32>
    %c5_241 = arith.constant 5 : index
    %c0_242 = arith.constant 0 : index
    %166 = vector.load %arg15[%c5_241, %c0_242] : memref<9x32xf32, #tpu.memory_space<vmem>>, vector<1x32xf32>
    tpu.vector_store %arg15[%c5_241, %c0_242], %165 {strides = array<i32>} : memref<9x32xf32, #tpu.memory_space<vmem>>, vector<1x32xf32>,
    %c42_243 = arith.constant 42 : index
    %c0_244 = arith.constant 0 : index
    %167 = vector.load %arg13[%c42_243, %c0_244] : memref<64x32xf32, #tpu.memory_space<vmem>>, vector<1x32xf32>
    %c6_245 = arith.constant 6 : index
    %c0_246 = arith.constant 0 : index
    %168 = vector.load %arg15[%c6_245, %c0_246] : memref<9x32xf32, #tpu.memory_space<vmem>>, vector<1x32xf32>
    tpu.vector_store %arg15[%c6_245, %c0_246], %167 {strides = array<i32>} : memref<9x32xf32, #tpu.memory_space<vmem>>, vector<1x32xf32>,
    %c44_247 = arith.constant 44 : index
    %c0_248 = arith.constant 0 : index
    %169 = vector.load %arg13[%c44_247, %c0_248] : memref<64x32xf32, #tpu.memory_space<vmem>>, vector<1x32xf32>
    %c7_249 = arith.constant 7 : index
    %c0_250 = arith.constant 0 : index
    %170 = vector.load %arg15[%c7_249, %c0_250] : memref<9x32xf32, #tpu.memory_space<vmem>>, vector<1x32xf32>
    tpu.vector_store %arg15[%c7_249, %c0_250], %169 {strides = array<i32>} : memref<9x32xf32, #tpu.memory_space<vmem>>, vector<1x32xf32>,
    %c46 = arith.constant 46 : index
    %c0_251 = arith.constant 0 : index
    %171 = vector.load %arg13[%c46, %c0_251] : memref<64x32xf32, #tpu.memory_space<vmem>>, vector<1x32xf32>
    %c8_252 = arith.constant 8 : index
    %c0_253 = arith.constant 0 : index
    %172 = vector.load %arg15[%c8_252, %c0_253] : memref<9x32xf32, #tpu.memory_space<vmem>>, vector<1x32xf32>
    tpu.vector_store %arg15[%c8_252, %c0_253], %171 {strides = array<i32>} : memref<9x32xf32, #tpu.memory_space<vmem>>, vector<1x32xf32>,
    %c0_254 = arith.constant 0 : index
    %c0_255 = arith.constant 0 : index
    %173 = vector.load %arg15[%c0_254, %c0_255] : memref<9x32xf32, #tpu.memory_space<vmem>>, vector<9x32xf32>
    %174 = arith.truncf %173 : vector<9x32xf32> to vector<9x32xbf16>
    %c6_256 = arith.constant 6 : index
    %c0_257 = arith.constant 0 : index
    %c0_258 = arith.constant 0 : index
    %175 = vector.load %arg4[%c6_256, %c0_257, %c0_258] : memref<16x32x64xbf16, #tpu.memory_space<vmem>>, vector<1x32x64xbf16>
    %176 = vector.shape_cast %175 : vector<1x32x64xbf16> to vector<32x64xbf16>
    %cst_259 = arith.constant dense<0.000000e+00> : vector<9x64xf32>
    %177 = tpu.matmul %174, %176, %cst_259 {dimension_numbers = #tpu.dot_dimension_numbers<[1], [0], [0], [1], [0, 0, 1, 1], [], []>} : vector<9x32xbf16>, vector<32x64xbf16>, vector<9x64xf32> -> vector<9x64xf32>
    %178 = arith.addf %154, %177 : vector<9x64xf32>
    %c11_260 = arith.constant 11 : index
    %c0_261 = arith.constant 0 : index
    %179 = vector.load %arg13[%c11_260, %c0_261] : memref<64x32xf32, #tpu.memory_space<vmem>>, vector<1x32xf32>
    %c0_262 = arith.constant 0 : index
    %c0_263 = arith.constant 0 : index
    %180 = vector.load %arg15[%c0_262, %c0_263] : memref<9x32xf32, #tpu.memory_space<vmem>>, vector<1x32xf32>
    tpu.vector_store %arg15[%c0_262, %c0_263], %179 {strides = array<i32>} : memref<9x32xf32, #tpu.memory_space<vmem>>, vector<1x32xf32>,
    %c13_264 = arith.constant 13 : index
    %c0_265 = arith.constant 0 : index
    %181 = vector.load %arg13[%c13_264, %c0_265] : memref<64x32xf32, #tpu.memory_space<vmem>>, vector<1x32xf32>
    %c1_266 = arith.constant 1 : index
    %c0_267 = arith.constant 0 : index
    %182 = vector.load %arg15[%c1_266, %c0_267] : memref<9x32xf32, #tpu.memory_space<vmem>>, vector<1x32xf32>
    tpu.vector_store %arg15[%c1_266, %c0_267], %181 {strides = array<i32>} : memref<9x32xf32, #tpu.memory_space<vmem>>, vector<1x32xf32>,
    %c15 = arith.constant 15 : index
    %c0_268 = arith.constant 0 : index
    %183 = vector.load %arg13[%c15, %c0_268] : memref<64x32xf32, #tpu.memory_space<vmem>>, vector<1x32xf32>
    %c2_269 = arith.constant 2 : index
    %c0_270 = arith.constant 0 : index
    %184 = vector.load %arg15[%c2_269, %c0_270] : memref<9x32xf32, #tpu.memory_space<vmem>>, vector<1x32xf32>
    tpu.vector_store %arg15[%c2_269, %c0_270], %183 {strides = array<i32>} : memref<9x32xf32, #tpu.memory_space<vmem>>, vector<1x32xf32>,
    %c27_271 = arith.constant 27 : index
    %c0_272 = arith.constant 0 : index
    %185 = vector.load %arg13[%c27_271, %c0_272] : memref<64x32xf32, #tpu.memory_space<vmem>>, vector<1x32xf32>
    %c3_273 = arith.constant 3 : index
    %c0_274 = arith.constant 0 : index
    %186 = vector.load %arg15[%c3_273, %c0_274] : memref<9x32xf32, #tpu.memory_space<vmem>>, vector<1x32xf32>
    tpu.vector_store %arg15[%c3_273, %c0_274], %185 {strides = array<i32>} : memref<9x32xf32, #tpu.memory_space<vmem>>, vector<1x32xf32>,
    %c29_275 = arith.constant 29 : index
    %c0_276 = arith.constant 0 : index
    %187 = vector.load %arg13[%c29_275, %c0_276] : memref<64x32xf32, #tpu.memory_space<vmem>>, vector<1x32xf32>
    %c4_277 = arith.constant 4 : index
    %c0_278 = arith.constant 0 : index
    %188 = vector.load %arg15[%c4_277, %c0_278] : memref<9x32xf32, #tpu.memory_space<vmem>>, vector<1x32xf32>
    tpu.vector_store %arg15[%c4_277, %c0_278], %187 {strides = array<i32>} : memref<9x32xf32, #tpu.memory_space<vmem>>, vector<1x32xf32>,
    %c31 = arith.constant 31 : index
    %c0_279 = arith.constant 0 : index
    %189 = vector.load %arg13[%c31, %c0_279] : memref<64x32xf32, #tpu.memory_space<vmem>>, vector<1x32xf32>
    %c5_280 = arith.constant 5 : index
    %c0_281 = arith.constant 0 : index
    %190 = vector.load %arg15[%c5_280, %c0_281] : memref<9x32xf32, #tpu.memory_space<vmem>>, vector<1x32xf32>
    tpu.vector_store %arg15[%c5_280, %c0_281], %189 {strides = array<i32>} : memref<9x32xf32, #tpu.memory_space<vmem>>, vector<1x32xf32>,
    %c43_282 = arith.constant 43 : index
    %c0_283 = arith.constant 0 : index
    %191 = vector.load %arg13[%c43_282, %c0_283] : memref<64x32xf32, #tpu.memory_space<vmem>>, vector<1x32xf32>
    %c6_284 = arith.constant 6 : index
    %c0_285 = arith.constant 0 : index
    %192 = vector.load %arg15[%c6_284, %c0_285] : memref<9x32xf32, #tpu.memory_space<vmem>>, vector<1x32xf32>
    tpu.vector_store %arg15[%c6_284, %c0_285], %191 {strides = array<i32>} : memref<9x32xf32, #tpu.memory_space<vmem>>, vector<1x32xf32>,
    %c45_286 = arith.constant 45 : index
    %c0_287 = arith.constant 0 : index
    %193 = vector.load %arg13[%c45_286, %c0_287] : memref<64x32xf32, #tpu.memory_space<vmem>>, vector<1x32xf32>
    %c7_288 = arith.constant 7 : index
    %c0_289 = arith.constant 0 : index
    %194 = vector.load %arg15[%c7_288, %c0_289] : memref<9x32xf32, #tpu.memory_space<vmem>>, vector<1x32xf32>
    tpu.vector_store %arg15[%c7_288, %c0_289], %193 {strides = array<i32>} : memref<9x32xf32, #tpu.memory_space<vmem>>, vector<1x32xf32>,
    %c47 = arith.constant 47 : index
    %c0_290 = arith.constant 0 : index
    %195 = vector.load %arg13[%c47, %c0_290] : memref<64x32xf32, #tpu.memory_space<vmem>>, vector<1x32xf32>
    %c8_291 = arith.constant 8 : index
    %c0_292 = arith.constant 0 : index
    %196 = vector.load %arg15[%c8_291, %c0_292] : memref<9x32xf32, #tpu.memory_space<vmem>>, vector<1x32xf32>
    tpu.vector_store %arg15[%c8_291, %c0_292], %195 {strides = array<i32>} : memref<9x32xf32, #tpu.memory_space<vmem>>, vector<1x32xf32>,
    %c0_293 = arith.constant 0 : index
    %c0_294 = arith.constant 0 : index
    %197 = vector.load %arg15[%c0_293, %c0_294] : memref<9x32xf32, #tpu.memory_space<vmem>>, vector<9x32xf32>
    %198 = arith.truncf %197 : vector<9x32xf32> to vector<9x32xbf16>
    %c7_295 = arith.constant 7 : index
    %c0_296 = arith.constant 0 : index
    %c0_297 = arith.constant 0 : index
    %199 = vector.load %arg4[%c7_295, %c0_296, %c0_297] : memref<16x32x64xbf16, #tpu.memory_space<vmem>>, vector<1x32x64xbf16>
    %200 = vector.shape_cast %199 : vector<1x32x64xbf16> to vector<32x64xbf16>
    %cst_298 = arith.constant dense<0.000000e+00> : vector<9x64xf32>
    %201 = tpu.matmul %198, %200, %cst_298 {dimension_numbers = #tpu.dot_dimension_numbers<[1], [0], [0], [1], [0, 0, 1, 1], [], []>} : vector<9x32xbf16>, vector<32x64xbf16>, vector<9x64xf32> -> vector<9x64xf32>
    %202 = arith.addf %178, %201 : vector<9x64xf32>
    %c16_299 = arith.constant 16 : index
    %c0_300 = arith.constant 0 : index
    %203 = vector.load %arg13[%c16_299, %c0_300] : memref<64x32xf32, #tpu.memory_space<vmem>>, vector<1x32xf32>
    %c0_301 = arith.constant 0 : index
    %c0_302 = arith.constant 0 : index
    %204 = vector.load %arg15[%c0_301, %c0_302] : memref<9x32xf32, #tpu.memory_space<vmem>>, vector<1x32xf32>
    tpu.vector_store %arg15[%c0_301, %c0_302], %203 {strides = array<i32>} : memref<9x32xf32, #tpu.memory_space<vmem>>, vector<1x32xf32>,
    %c18_303 = arith.constant 18 : index
    %c0_304 = arith.constant 0 : index
    %205 = vector.load %arg13[%c18_303, %c0_304] : memref<64x32xf32, #tpu.memory_space<vmem>>, vector<1x32xf32>
    %c1_305 = arith.constant 1 : index
    %c0_306 = arith.constant 0 : index
    %206 = vector.load %arg15[%c1_305, %c0_306] : memref<9x32xf32, #tpu.memory_space<vmem>>, vector<1x32xf32>
    tpu.vector_store %arg15[%c1_305, %c0_306], %205 {strides = array<i32>} : memref<9x32xf32, #tpu.memory_space<vmem>>, vector<1x32xf32>,
    %c20_307 = arith.constant 20 : index
    %c0_308 = arith.constant 0 : index
    %207 = vector.load %arg13[%c20_307, %c0_308] : memref<64x32xf32, #tpu.memory_space<vmem>>, vector<1x32xf32>
    %c2_309 = arith.constant 2 : index
    %c0_310 = arith.constant 0 : index
    %208 = vector.load %arg15[%c2_309, %c0_310] : memref<9x32xf32, #tpu.memory_space<vmem>>, vector<1x32xf32>
    tpu.vector_store %arg15[%c2_309, %c0_310], %207 {strides = array<i32>} : memref<9x32xf32, #tpu.memory_space<vmem>>, vector<1x32xf32>,
    %c32_311 = arith.constant 32 : index
    %c0_312 = arith.constant 0 : index
    %209 = vector.load %arg13[%c32_311, %c0_312] : memref<64x32xf32, #tpu.memory_space<vmem>>, vector<1x32xf32>
    %c3_313 = arith.constant 3 : index
    %c0_314 = arith.constant 0 : index
    %210 = vector.load %arg15[%c3_313, %c0_314] : memref<9x32xf32, #tpu.memory_space<vmem>>, vector<1x32xf32>
    tpu.vector_store %arg15[%c3_313, %c0_314], %209 {strides = array<i32>} : memref<9x32xf32, #tpu.memory_space<vmem>>, vector<1x32xf32>,
    %c34_315 = arith.constant 34 : index
    %c0_316 = arith.constant 0 : index
    %211 = vector.load %arg13[%c34_315, %c0_316] : memref<64x32xf32, #tpu.memory_space<vmem>>, vector<1x32xf32>
    %c4_317 = arith.constant 4 : index
    %c0_318 = arith.constant 0 : index
    %212 = vector.load %arg15[%c4_317, %c0_318] : memref<9x32xf32, #tpu.memory_space<vmem>>, vector<1x32xf32>
    tpu.vector_store %arg15[%c4_317, %c0_318], %211 {strides = array<i32>} : memref<9x32xf32, #tpu.memory_space<vmem>>, vector<1x32xf32>,
    %c36_319 = arith.constant 36 : index
    %c0_320 = arith.constant 0 : index
    %213 = vector.load %arg13[%c36_319, %c0_320] : memref<64x32xf32, #tpu.memory_space<vmem>>, vector<1x32xf32>
    %c5_321 = arith.constant 5 : index
    %c0_322 = arith.constant 0 : index
    %214 = vector.load %arg15[%c5_321, %c0_322] : memref<9x32xf32, #tpu.memory_space<vmem>>, vector<1x32xf32>
    tpu.vector_store %arg15[%c5_321, %c0_322], %213 {strides = array<i32>} : memref<9x32xf32, #tpu.memory_space<vmem>>, vector<1x32xf32>,
    %c48 = arith.constant 48 : index
    %c0_323 = arith.constant 0 : index
    %215 = vector.load %arg13[%c48, %c0_323] : memref<64x32xf32, #tpu.memory_space<vmem>>, vector<1x32xf32>
    %c6_324 = arith.constant 6 : index
    %c0_325 = arith.constant 0 : index
    %216 = vector.load %arg15[%c6_324, %c0_325] : memref<9x32xf32, #tpu.memory_space<vmem>>, vector<1x32xf32>
    tpu.vector_store %arg15[%c6_324, %c0_325], %215 {strides = array<i32>} : memref<9x32xf32, #tpu.memory_space<vmem>>, vector<1x32xf32>,
    %c50 = arith.constant 50 : index
    %c0_326 = arith.constant 0 : index
    %217 = vector.load %arg13[%c50, %c0_326] : memref<64x32xf32, #tpu.memory_space<vmem>>, vector<1x32xf32>
    %c7_327 = arith.constant 7 : index
    %c0_328 = arith.constant 0 : index
    %218 = vector.load %arg15[%c7_327, %c0_328] : memref<9x32xf32, #tpu.memory_space<vmem>>, vector<1x32xf32>
    tpu.vector_store %arg15[%c7_327, %c0_328], %217 {strides = array<i32>} : memref<9x32xf32, #tpu.memory_space<vmem>>, vector<1x32xf32>,
    %c52 = arith.constant 52 : index
    %c0_329 = arith.constant 0 : index
    %219 = vector.load %arg13[%c52, %c0_329] : memref<64x32xf32, #tpu.memory_space<vmem>>, vector<1x32xf32>
    %c8_330 = arith.constant 8 : index
    %c0_331 = arith.constant 0 : index
    %220 = vector.load %arg15[%c8_330, %c0_331] : memref<9x32xf32, #tpu.memory_space<vmem>>, vector<1x32xf32>
    tpu.vector_store %arg15[%c8_330, %c0_331], %219 {strides = array<i32>} : memref<9x32xf32, #tpu.memory_space<vmem>>, vector<1x32xf32>,
    %c0_332 = arith.constant 0 : index
    %c0_333 = arith.constant 0 : index
    %221 = vector.load %arg15[%c0_332, %c0_333] : memref<9x32xf32, #tpu.memory_space<vmem>>, vector<9x32xf32>
    %222 = arith.truncf %221 : vector<9x32xf32> to vector<9x32xbf16>
    %c8_334 = arith.constant 8 : index
    %c0_335 = arith.constant 0 : index
    %c0_336 = arith.constant 0 : index
    %223 = vector.load %arg4[%c8_334, %c0_335, %c0_336] : memref<16x32x64xbf16, #tpu.memory_space<vmem>>, vector<1x32x64xbf16>
    %224 = vector.shape_cast %223 : vector<1x32x64xbf16> to vector<32x64xbf16>
    %cst_337 = arith.constant dense<0.000000e+00> : vector<9x64xf32>
    %225 = tpu.matmul %222, %224, %cst_337 {dimension_numbers = #tpu.dot_dimension_numbers<[1], [0], [0], [1], [0, 0, 1, 1], [], []>} : vector<9x32xbf16>, vector<32x64xbf16>, vector<9x64xf32> -> vector<9x64xf32>
    %226 = arith.addf %202, %225 : vector<9x64xf32>
    %c17_338 = arith.constant 17 : index
    %c0_339 = arith.constant 0 : index
    %227 = vector.load %arg13[%c17_338, %c0_339] : memref<64x32xf32, #tpu.memory_space<vmem>>, vector<1x32xf32>
    %c0_340 = arith.constant 0 : index
    %c0_341 = arith.constant 0 : index
    %228 = vector.load %arg15[%c0_340, %c0_341] : memref<9x32xf32, #tpu.memory_space<vmem>>, vector<1x32xf32>
    tpu.vector_store %arg15[%c0_340, %c0_341], %227 {strides = array<i32>} : memref<9x32xf32, #tpu.memory_space<vmem>>, vector<1x32xf32>,
    %c19_342 = arith.constant 19 : index
    %c0_343 = arith.constant 0 : index
    %229 = vector.load %arg13[%c19_342, %c0_343] : memref<64x32xf32, #tpu.memory_space<vmem>>, vector<1x32xf32>
    %c1_344 = arith.constant 1 : index
    %c0_345 = arith.constant 0 : index
    %230 = vector.load %arg15[%c1_344, %c0_345] : memref<9x32xf32, #tpu.memory_space<vmem>>, vector<1x32xf32>
    tpu.vector_store %arg15[%c1_344, %c0_345], %229 {strides = array<i32>} : memref<9x32xf32, #tpu.memory_space<vmem>>, vector<1x32xf32>,
    %c21_346 = arith.constant 21 : index
    %c0_347 = arith.constant 0 : index
    %231 = vector.load %arg13[%c21_346, %c0_347] : memref<64x32xf32, #tpu.memory_space<vmem>>, vector<1x32xf32>
    %c2_348 = arith.constant 2 : index
    %c0_349 = arith.constant 0 : index
    %232 = vector.load %arg15[%c2_348, %c0_349] : memref<9x32xf32, #tpu.memory_space<vmem>>, vector<1x32xf32>
    tpu.vector_store %arg15[%c2_348, %c0_349], %231 {strides = array<i32>} : memref<9x32xf32, #tpu.memory_space<vmem>>, vector<1x32xf32>,
    %c33_350 = arith.constant 33 : index
    %c0_351 = arith.constant 0 : index
    %233 = vector.load %arg13[%c33_350, %c0_351] : memref<64x32xf32, #tpu.memory_space<vmem>>, vector<1x32xf32>
    %c3_352 = arith.constant 3 : index
    %c0_353 = arith.constant 0 : index
    %234 = vector.load %arg15[%c3_352, %c0_353] : memref<9x32xf32, #tpu.memory_space<vmem>>, vector<1x32xf32>
    tpu.vector_store %arg15[%c3_352, %c0_353], %233 {strides = array<i32>} : memref<9x32xf32, #tpu.memory_space<vmem>>, vector<1x32xf32>,
    %c35_354 = arith.constant 35 : index
    %c0_355 = arith.constant 0 : index
    %235 = vector.load %arg13[%c35_354, %c0_355] : memref<64x32xf32, #tpu.memory_space<vmem>>, vector<1x32xf32>
    %c4_356 = arith.constant 4 : index
    %c0_357 = arith.constant 0 : index
    %236 = vector.load %arg15[%c4_356, %c0_357] : memref<9x32xf32, #tpu.memory_space<vmem>>, vector<1x32xf32>
    tpu.vector_store %arg15[%c4_356, %c0_357], %235 {strides = array<i32>} : memref<9x32xf32, #tpu.memory_space<vmem>>, vector<1x32xf32>,
    %c37_358 = arith.constant 37 : index
    %c0_359 = arith.constant 0 : index
    %237 = vector.load %arg13[%c37_358, %c0_359] : memref<64x32xf32, #tpu.memory_space<vmem>>, vector<1x32xf32>
    %c5_360 = arith.constant 5 : index
    %c0_361 = arith.constant 0 : index
    %238 = vector.load %arg15[%c5_360, %c0_361] : memref<9x32xf32, #tpu.memory_space<vmem>>, vector<1x32xf32>
    tpu.vector_store %arg15[%c5_360, %c0_361], %237 {strides = array<i32>} : memref<9x32xf32, #tpu.memory_space<vmem>>, vector<1x32xf32>,
    %c49 = arith.constant 49 : index
    %c0_362 = arith.constant 0 : index
    %239 = vector.load %arg13[%c49, %c0_362] : memref<64x32xf32, #tpu.memory_space<vmem>>, vector<1x32xf32>
    %c6_363 = arith.constant 6 : index
    %c0_364 = arith.constant 0 : index
    %240 = vector.load %arg15[%c6_363, %c0_364] : memref<9x32xf32, #tpu.memory_space<vmem>>, vector<1x32xf32>
    tpu.vector_store %arg15[%c6_363, %c0_364], %239 {strides = array<i32>} : memref<9x32xf32, #tpu.memory_space<vmem>>, vector<1x32xf32>,
    %c51 = arith.constant 51 : index
    %c0_365 = arith.constant 0 : index
    %241 = vector.load %arg13[%c51, %c0_365] : memref<64x32xf32, #tpu.memory_space<vmem>>, vector<1x32xf32>
    %c7_366 = arith.constant 7 : index
    %c0_367 = arith.constant 0 : index
    %242 = vector.load %arg15[%c7_366, %c0_367] : memref<9x32xf32, #tpu.memory_space<vmem>>, vector<1x32xf32>
    tpu.vector_store %arg15[%c7_366, %c0_367], %241 {strides = array<i32>} : memref<9x32xf32, #tpu.memory_space<vmem>>, vector<1x32xf32>,
    %c53 = arith.constant 53 : index
    %c0_368 = arith.constant 0 : index
    %243 = vector.load %arg13[%c53, %c0_368] : memref<64x32xf32, #tpu.memory_space<vmem>>, vector<1x32xf32>
    %c8_369 = arith.constant 8 : index
    %c0_370 = arith.constant 0 : index
    %244 = vector.load %arg15[%c8_369, %c0_370] : memref<9x32xf32, #tpu.memory_space<vmem>>, vector<1x32xf32>
    tpu.vector_store %arg15[%c8_369, %c0_370], %243 {strides = array<i32>} : memref<9x32xf32, #tpu.memory_space<vmem>>, vector<1x32xf32>,
    %c0_371 = arith.constant 0 : index
    %c0_372 = arith.constant 0 : index
    %245 = vector.load %arg15[%c0_371, %c0_372] : memref<9x32xf32, #tpu.memory_space<vmem>>, vector<9x32xf32>
    %246 = arith.truncf %245 : vector<9x32xf32> to vector<9x32xbf16>
    %c9_373 = arith.constant 9 : index
    %c0_374 = arith.constant 0 : index
    %c0_375 = arith.constant 0 : index
    %247 = vector.load %arg4[%c9_373, %c0_374, %c0_375] : memref<16x32x64xbf16, #tpu.memory_space<vmem>>, vector<1x32x64xbf16>
    %248 = vector.shape_cast %247 : vector<1x32x64xbf16> to vector<32x64xbf16>
    %cst_376 = arith.constant dense<0.000000e+00> : vector<9x64xf32>
    %249 = tpu.matmul %246, %248, %cst_376 {dimension_numbers = #tpu.dot_dimension_numbers<[1], [0], [0], [1], [0, 0, 1, 1], [], []>} : vector<9x32xbf16>, vector<32x64xbf16>, vector<9x64xf32> -> vector<9x64xf32>
    %250 = arith.addf %226, %249 : vector<9x64xf32>
    %c18_377 = arith.constant 18 : index
    %c0_378 = arith.constant 0 : index
    %251 = vector.load %arg13[%c18_377, %c0_378] : memref<64x32xf32, #tpu.memory_space<vmem>>, vector<1x32xf32>
    %c0_379 = arith.constant 0 : index
    %c0_380 = arith.constant 0 : index
    %252 = vector.load %arg15[%c0_379, %c0_380] : memref<9x32xf32, #tpu.memory_space<vmem>>, vector<1x32xf32>
    tpu.vector_store %arg15[%c0_379, %c0_380], %251 {strides = array<i32>} : memref<9x32xf32, #tpu.memory_space<vmem>>, vector<1x32xf32>,
    %c20_381 = arith.constant 20 : index
    %c0_382 = arith.constant 0 : index
    %253 = vector.load %arg13[%c20_381, %c0_382] : memref<64x32xf32, #tpu.memory_space<vmem>>, vector<1x32xf32>
    %c1_383 = arith.constant 1 : index
    %c0_384 = arith.constant 0 : index
    %254 = vector.load %arg15[%c1_383, %c0_384] : memref<9x32xf32, #tpu.memory_space<vmem>>, vector<1x32xf32>
    tpu.vector_store %arg15[%c1_383, %c0_384], %253 {strides = array<i32>} : memref<9x32xf32, #tpu.memory_space<vmem>>, vector<1x32xf32>,
    %c22_385 = arith.constant 22 : index
    %c0_386 = arith.constant 0 : index
    %255 = vector.load %arg13[%c22_385, %c0_386] : memref<64x32xf32, #tpu.memory_space<vmem>>, vector<1x32xf32>
    %c2_387 = arith.constant 2 : index
    %c0_388 = arith.constant 0 : index
    %256 = vector.load %arg15[%c2_387, %c0_388] : memref<9x32xf32, #tpu.memory_space<vmem>>, vector<1x32xf32>
    tpu.vector_store %arg15[%c2_387, %c0_388], %255 {strides = array<i32>} : memref<9x32xf32, #tpu.memory_space<vmem>>, vector<1x32xf32>,
    %c34_389 = arith.constant 34 : index
    %c0_390 = arith.constant 0 : index
    %257 = vector.load %arg13[%c34_389, %c0_390] : memref<64x32xf32, #tpu.memory_space<vmem>>, vector<1x32xf32>
    %c3_391 = arith.constant 3 : index
    %c0_392 = arith.constant 0 : index
    %258 = vector.load %arg15[%c3_391, %c0_392] : memref<9x32xf32, #tpu.memory_space<vmem>>, vector<1x32xf32>
    tpu.vector_store %arg15[%c3_391, %c0_392], %257 {strides = array<i32>} : memref<9x32xf32, #tpu.memory_space<vmem>>, vector<1x32xf32>,
    %c36_393 = arith.constant 36 : index
    %c0_394 = arith.constant 0 : index
    %259 = vector.load %arg13[%c36_393, %c0_394] : memref<64x32xf32, #tpu.memory_space<vmem>>, vector<1x32xf32>
    %c4_395 = arith.constant 4 : index
    %c0_396 = arith.constant 0 : index
    %260 = vector.load %arg15[%c4_395, %c0_396] : memref<9x32xf32, #tpu.memory_space<vmem>>, vector<1x32xf32>
    tpu.vector_store %arg15[%c4_395, %c0_396], %259 {strides = array<i32>} : memref<9x32xf32, #tpu.memory_space<vmem>>, vector<1x32xf32>,
    %c38_397 = arith.constant 38 : index
    %c0_398 = arith.constant 0 : index
    %261 = vector.load %arg13[%c38_397, %c0_398] : memref<64x32xf32, #tpu.memory_space<vmem>>, vector<1x32xf32>
    %c5_399 = arith.constant 5 : index
    %c0_400 = arith.constant 0 : index
    %262 = vector.load %arg15[%c5_399, %c0_400] : memref<9x32xf32, #tpu.memory_space<vmem>>, vector<1x32xf32>
    tpu.vector_store %arg15[%c5_399, %c0_400], %261 {strides = array<i32>} : memref<9x32xf32, #tpu.memory_space<vmem>>, vector<1x32xf32>,
    %c50_401 = arith.constant 50 : index
    %c0_402 = arith.constant 0 : index
    %263 = vector.load %arg13[%c50_401, %c0_402] : memref<64x32xf32, #tpu.memory_space<vmem>>, vector<1x32xf32>
    %c6_403 = arith.constant 6 : index
    %c0_404 = arith.constant 0 : index
    %264 = vector.load %arg15[%c6_403, %c0_404] : memref<9x32xf32, #tpu.memory_space<vmem>>, vector<1x32xf32>
    tpu.vector_store %arg15[%c6_403, %c0_404], %263 {strides = array<i32>} : memref<9x32xf32, #tpu.memory_space<vmem>>, vector<1x32xf32>,
    %c52_405 = arith.constant 52 : index
    %c0_406 = arith.constant 0 : index
    %265 = vector.load %arg13[%c52_405, %c0_406] : memref<64x32xf32, #tpu.memory_space<vmem>>, vector<1x32xf32>
    %c7_407 = arith.constant 7 : index
    %c0_408 = arith.constant 0 : index
    %266 = vector.load %arg15[%c7_407, %c0_408] : memref<9x32xf32, #tpu.memory_space<vmem>>, vector<1x32xf32>
    tpu.vector_store %arg15[%c7_407, %c0_408], %265 {strides = array<i32>} : memref<9x32xf32, #tpu.memory_space<vmem>>, vector<1x32xf32>,
    %c54 = arith.constant 54 : index
    %c0_409 = arith.constant 0 : index
    %267 = vector.load %arg13[%c54, %c0_409] : memref<64x32xf32, #tpu.memory_space<vmem>>, vector<1x32xf32>
    %c8_410 = arith.constant 8 : index
    %c0_411 = arith.constant 0 : index
    %268 = vector.load %arg15[%c8_410, %c0_411] : memref<9x32xf32, #tpu.memory_space<vmem>>, vector<1x32xf32>
    tpu.vector_store %arg15[%c8_410, %c0_411], %267 {strides = array<i32>} : memref<9x32xf32, #tpu.memory_space<vmem>>, vector<1x32xf32>,
    %c0_412 = arith.constant 0 : index
    %c0_413 = arith.constant 0 : index
    %269 = vector.load %arg15[%c0_412, %c0_413] : memref<9x32xf32, #tpu.memory_space<vmem>>, vector<9x32xf32>
    %270 = arith.truncf %269 : vector<9x32xf32> to vector<9x32xbf16>
    %c10_414 = arith.constant 10 : index
    %c0_415 = arith.constant 0 : index
    %c0_416 = arith.constant 0 : index
    %271 = vector.load %arg4[%c10_414, %c0_415, %c0_416] : memref<16x32x64xbf16, #tpu.memory_space<vmem>>, vector<1x32x64xbf16>
    %272 = vector.shape_cast %271 : vector<1x32x64xbf16> to vector<32x64xbf16>
    %cst_417 = arith.constant dense<0.000000e+00> : vector<9x64xf32>
    %273 = tpu.matmul %270, %272, %cst_417 {dimension_numbers = #tpu.dot_dimension_numbers<[1], [0], [0], [1], [0, 0, 1, 1], [], []>} : vector<9x32xbf16>, vector<32x64xbf16>, vector<9x64xf32> -> vector<9x64xf32>
    %274 = arith.addf %250, %273 : vector<9x64xf32>
    %c19_418 = arith.constant 19 : index
    %c0_419 = arith.constant 0 : index
    %275 = vector.load %arg13[%c19_418, %c0_419] : memref<64x32xf32, #tpu.memory_space<vmem>>, vector<1x32xf32>
    %c0_420 = arith.constant 0 : index
    %c0_421 = arith.constant 0 : index
    %276 = vector.load %arg15[%c0_420, %c0_421] : memref<9x32xf32, #tpu.memory_space<vmem>>, vector<1x32xf32>
    tpu.vector_store %arg15[%c0_420, %c0_421], %275 {strides = array<i32>} : memref<9x32xf32, #tpu.memory_space<vmem>>, vector<1x32xf32>,
    %c21_422 = arith.constant 21 : index
    %c0_423 = arith.constant 0 : index
    %277 = vector.load %arg13[%c21_422, %c0_423] : memref<64x32xf32, #tpu.memory_space<vmem>>, vector<1x32xf32>
    %c1_424 = arith.constant 1 : index
    %c0_425 = arith.constant 0 : index
    %278 = vector.load %arg15[%c1_424, %c0_425] : memref<9x32xf32, #tpu.memory_space<vmem>>, vector<1x32xf32>
    tpu.vector_store %arg15[%c1_424, %c0_425], %277 {strides = array<i32>} : memref<9x32xf32, #tpu.memory_space<vmem>>, vector<1x32xf32>,
    %c23_426 = arith.constant 23 : index
    %c0_427 = arith.constant 0 : index
    %279 = vector.load %arg13[%c23_426, %c0_427] : memref<64x32xf32, #tpu.memory_space<vmem>>, vector<1x32xf32>
    %c2_428 = arith.constant 2 : index
    %c0_429 = arith.constant 0 : index
    %280 = vector.load %arg15[%c2_428, %c0_429] : memref<9x32xf32, #tpu.memory_space<vmem>>, vector<1x32xf32>
    tpu.vector_store %arg15[%c2_428, %c0_429], %279 {strides = array<i32>} : memref<9x32xf32, #tpu.memory_space<vmem>>, vector<1x32xf32>,
    %c35_430 = arith.constant 35 : index
    %c0_431 = arith.constant 0 : index
    %281 = vector.load %arg13[%c35_430, %c0_431] : memref<64x32xf32, #tpu.memory_space<vmem>>, vector<1x32xf32>
    %c3_432 = arith.constant 3 : index
    %c0_433 = arith.constant 0 : index
    %282 = vector.load %arg15[%c3_432, %c0_433] : memref<9x32xf32, #tpu.memory_space<vmem>>, vector<1x32xf32>
    tpu.vector_store %arg15[%c3_432, %c0_433], %281 {strides = array<i32>} : memref<9x32xf32, #tpu.memory_space<vmem>>, vector<1x32xf32>,
    %c37_434 = arith.constant 37 : index
    %c0_435 = arith.constant 0 : index
    %283 = vector.load %arg13[%c37_434, %c0_435] : memref<64x32xf32, #tpu.memory_space<vmem>>, vector<1x32xf32>
    %c4_436 = arith.constant 4 : index
    %c0_437 = arith.constant 0 : index
    %284 = vector.load %arg15[%c4_436, %c0_437] : memref<9x32xf32, #tpu.memory_space<vmem>>, vector<1x32xf32>
    tpu.vector_store %arg15[%c4_436, %c0_437], %283 {strides = array<i32>} : memref<9x32xf32, #tpu.memory_space<vmem>>, vector<1x32xf32>,
    %c39_438 = arith.constant 39 : index
    %c0_439 = arith.constant 0 : index
    %285 = vector.load %arg13[%c39_438, %c0_439] : memref<64x32xf32, #tpu.memory_space<vmem>>, vector<1x32xf32>
    %c5_440 = arith.constant 5 : index
    %c0_441 = arith.constant 0 : index
    %286 = vector.load %arg15[%c5_440, %c0_441] : memref<9x32xf32, #tpu.memory_space<vmem>>, vector<1x32xf32>
    tpu.vector_store %arg15[%c5_440, %c0_441], %285 {strides = array<i32>} : memref<9x32xf32, #tpu.memory_space<vmem>>, vector<1x32xf32>,
    %c51_442 = arith.constant 51 : index
    %c0_443 = arith.constant 0 : index
    %287 = vector.load %arg13[%c51_442, %c0_443] : memref<64x32xf32, #tpu.memory_space<vmem>>, vector<1x32xf32>
    %c6_444 = arith.constant 6 : index
    %c0_445 = arith.constant 0 : index
    %288 = vector.load %arg15[%c6_444, %c0_445] : memref<9x32xf32, #tpu.memory_space<vmem>>, vector<1x32xf32>
    tpu.vector_store %arg15[%c6_444, %c0_445], %287 {strides = array<i32>} : memref<9x32xf32, #tpu.memory_space<vmem>>, vector<1x32xf32>,
    %c53_446 = arith.constant 53 : index
    %c0_447 = arith.constant 0 : index
    %289 = vector.load %arg13[%c53_446, %c0_447] : memref<64x32xf32, #tpu.memory_space<vmem>>, vector<1x32xf32>
    %c7_448 = arith.constant 7 : index
    %c0_449 = arith.constant 0 : index
    %290 = vector.load %arg15[%c7_448, %c0_449] : memref<9x32xf32, #tpu.memory_space<vmem>>, vector<1x32xf32>
    tpu.vector_store %arg15[%c7_448, %c0_449], %289 {strides = array<i32>} : memref<9x32xf32, #tpu.memory_space<vmem>>, vector<1x32xf32>,
    %c55 = arith.constant 55 : index
    %c0_450 = arith.constant 0 : index
    %291 = vector.load %arg13[%c55, %c0_450] : memref<64x32xf32, #tpu.memory_space<vmem>>, vector<1x32xf32>
    %c8_451 = arith.constant 8 : index
    %c0_452 = arith.constant 0 : index
    %292 = vector.load %arg15[%c8_451, %c0_452] : memref<9x32xf32, #tpu.memory_space<vmem>>, vector<1x32xf32>
    tpu.vector_store %arg15[%c8_451, %c0_452], %291 {strides = array<i32>} : memref<9x32xf32, #tpu.memory_space<vmem>>, vector<1x32xf32>,
    %c0_453 = arith.constant 0 : index
    %c0_454 = arith.constant 0 : index
    %293 = vector.load %arg15[%c0_453, %c0_454] : memref<9x32xf32, #tpu.memory_space<vmem>>, vector<9x32xf32>
    %294 = arith.truncf %293 : vector<9x32xf32> to vector<9x32xbf16>
    %c11_455 = arith.constant 11 : index
    %c0_456 = arith.constant 0 : index
    %c0_457 = arith.constant 0 : index
    %295 = vector.load %arg4[%c11_455, %c0_456, %c0_457] : memref<16x32x64xbf16, #tpu.memory_space<vmem>>, vector<1x32x64xbf16>
    %296 = vector.shape_cast %295 : vector<1x32x64xbf16> to vector<32x64xbf16>
    %cst_458 = arith.constant dense<0.000000e+00> : vector<9x64xf32>
    %297 = tpu.matmul %294, %296, %cst_458 {dimension_numbers = #tpu.dot_dimension_numbers<[1], [0], [0], [1], [0, 0, 1, 1], [], []>} : vector<9x32xbf16>, vector<32x64xbf16>, vector<9x64xf32> -> vector<9x64xf32>
    %298 = arith.addf %274, %297 : vector<9x64xf32>
    %c24_459 = arith.constant 24 : index
    %c0_460 = arith.constant 0 : index
    %299 = vector.load %arg13[%c24_459, %c0_460] : memref<64x32xf32, #tpu.memory_space<vmem>>, vector<1x32xf32>
    %c0_461 = arith.constant 0 : index
    %c0_462 = arith.constant 0 : index
    %300 = vector.load %arg15[%c0_461, %c0_462] : memref<9x32xf32, #tpu.memory_space<vmem>>, vector<1x32xf32>
    tpu.vector_store %arg15[%c0_461, %c0_462], %299 {strides = array<i32>} : memref<9x32xf32, #tpu.memory_space<vmem>>, vector<1x32xf32>,
    %c26_463 = arith.constant 26 : index
    %c0_464 = arith.constant 0 : index
    %301 = vector.load %arg13[%c26_463, %c0_464] : memref<64x32xf32, #tpu.memory_space<vmem>>, vector<1x32xf32>
    %c1_465 = arith.constant 1 : index
    %c0_466 = arith.constant 0 : index
    %302 = vector.load %arg15[%c1_465, %c0_466] : memref<9x32xf32, #tpu.memory_space<vmem>>, vector<1x32xf32>
    tpu.vector_store %arg15[%c1_465, %c0_466], %301 {strides = array<i32>} : memref<9x32xf32, #tpu.memory_space<vmem>>, vector<1x32xf32>,
    %c28_467 = arith.constant 28 : index
    %c0_468 = arith.constant 0 : index
    %303 = vector.load %arg13[%c28_467, %c0_468] : memref<64x32xf32, #tpu.memory_space<vmem>>, vector<1x32xf32>
    %c2_469 = arith.constant 2 : index
    %c0_470 = arith.constant 0 : index
    %304 = vector.load %arg15[%c2_469, %c0_470] : memref<9x32xf32, #tpu.memory_space<vmem>>, vector<1x32xf32>
    tpu.vector_store %arg15[%c2_469, %c0_470], %303 {strides = array<i32>} : memref<9x32xf32, #tpu.memory_space<vmem>>, vector<1x32xf32>,
    %c40_471 = arith.constant 40 : index
    %c0_472 = arith.constant 0 : index
    %305 = vector.load %arg13[%c40_471, %c0_472] : memref<64x32xf32, #tpu.memory_space<vmem>>, vector<1x32xf32>
    %c3_473 = arith.constant 3 : index
    %c0_474 = arith.constant 0 : index
    %306 = vector.load %arg15[%c3_473, %c0_474] : memref<9x32xf32, #tpu.memory_space<vmem>>, vector<1x32xf32>
    tpu.vector_store %arg15[%c3_473, %c0_474], %305 {strides = array<i32>} : memref<9x32xf32, #tpu.memory_space<vmem>>, vector<1x32xf32>,
    %c42_475 = arith.constant 42 : index
    %c0_476 = arith.constant 0 : index
    %307 = vector.load %arg13[%c42_475, %c0_476] : memref<64x32xf32, #tpu.memory_space<vmem>>, vector<1x32xf32>
    %c4_477 = arith.constant 4 : index
    %c0_478 = arith.constant 0 : index
    %308 = vector.load %arg15[%c4_477, %c0_478] : memref<9x32xf32, #tpu.memory_space<vmem>>, vector<1x32xf32>
    tpu.vector_store %arg15[%c4_477, %c0_478], %307 {strides = array<i32>} : memref<9x32xf32, #tpu.memory_space<vmem>>, vector<1x32xf32>,
    %c44_479 = arith.constant 44 : index
    %c0_480 = arith.constant 0 : index
    %309 = vector.load %arg13[%c44_479, %c0_480] : memref<64x32xf32, #tpu.memory_space<vmem>>, vector<1x32xf32>
    %c5_481 = arith.constant 5 : index
    %c0_482 = arith.constant 0 : index
    %310 = vector.load %arg15[%c5_481, %c0_482] : memref<9x32xf32, #tpu.memory_space<vmem>>, vector<1x32xf32>
    tpu.vector_store %arg15[%c5_481, %c0_482], %309 {strides = array<i32>} : memref<9x32xf32, #tpu.memory_space<vmem>>, vector<1x32xf32>,
    %c56 = arith.constant 56 : index
    %c0_483 = arith.constant 0 : index
    %311 = vector.load %arg13[%c56, %c0_483] : memref<64x32xf32, #tpu.memory_space<vmem>>, vector<1x32xf32>
    %c6_484 = arith.constant 6 : index
    %c0_485 = arith.constant 0 : index
    %312 = vector.load %arg15[%c6_484, %c0_485] : memref<9x32xf32, #tpu.memory_space<vmem>>, vector<1x32xf32>
    tpu.vector_store %arg15[%c6_484, %c0_485], %311 {strides = array<i32>} : memref<9x32xf32, #tpu.memory_space<vmem>>, vector<1x32xf32>,
    %c58 = arith.constant 58 : index
    %c0_486 = arith.constant 0 : index
    %313 = vector.load %arg13[%c58, %c0_486] : memref<64x32xf32, #tpu.memory_space<vmem>>, vector<1x32xf32>
    %c7_487 = arith.constant 7 : index
    %c0_488 = arith.constant 0 : index
    %314 = vector.load %arg15[%c7_487, %c0_488] : memref<9x32xf32, #tpu.memory_space<vmem>>, vector<1x32xf32>
    tpu.vector_store %arg15[%c7_487, %c0_488], %313 {strides = array<i32>} : memref<9x32xf32, #tpu.memory_space<vmem>>, vector<1x32xf32>,
    %c60 = arith.constant 60 : index
    %c0_489 = arith.constant 0 : index
    %315 = vector.load %arg13[%c60, %c0_489] : memref<64x32xf32, #tpu.memory_space<vmem>>, vector<1x32xf32>
    %c8_490 = arith.constant 8 : index
    %c0_491 = arith.constant 0 : index
    %316 = vector.load %arg15[%c8_490, %c0_491] : memref<9x32xf32, #tpu.memory_space<vmem>>, vector<1x32xf32>
    tpu.vector_store %arg15[%c8_490, %c0_491], %315 {strides = array<i32>} : memref<9x32xf32, #tpu.memory_space<vmem>>, vector<1x32xf32>,
    %c0_492 = arith.constant 0 : index
    %c0_493 = arith.constant 0 : index
    %317 = vector.load %arg15[%c0_492, %c0_493] : memref<9x32xf32, #tpu.memory_space<vmem>>, vector<9x32xf32>
    %318 = arith.truncf %317 : vector<9x32xf32> to vector<9x32xbf16>
    %c12_494 = arith.constant 12 : index
    %c0_495 = arith.constant 0 : index
    %c0_496 = arith.constant 0 : index
    %319 = vector.load %arg4[%c12_494, %c0_495, %c0_496] : memref<16x32x64xbf16, #tpu.memory_space<vmem>>, vector<1x32x64xbf16>
    %320 = vector.shape_cast %319 : vector<1x32x64xbf16> to vector<32x64xbf16>
    %cst_497 = arith.constant dense<0.000000e+00> : vector<9x64xf32>
    %321 = tpu.matmul %318, %320, %cst_497 {dimension_numbers = #tpu.dot_dimension_numbers<[1], [0], [0], [1], [0, 0, 1, 1], [], []>} : vector<9x32xbf16>, vector<32x64xbf16>, vector<9x64xf32> -> vector<9x64xf32>
    %322 = arith.addf %298, %321 : vector<9x64xf32>
    %c25_498 = arith.constant 25 : index
    %c0_499 = arith.constant 0 : index
    %323 = vector.load %arg13[%c25_498, %c0_499] : memref<64x32xf32, #tpu.memory_space<vmem>>, vector<1x32xf32>
    %c0_500 = arith.constant 0 : index
    %c0_501 = arith.constant 0 : index
    %324 = vector.load %arg15[%c0_500, %c0_501] : memref<9x32xf32, #tpu.memory_space<vmem>>, vector<1x32xf32>
    tpu.vector_store %arg15[%c0_500, %c0_501], %323 {strides = array<i32>} : memref<9x32xf32, #tpu.memory_space<vmem>>, vector<1x32xf32>,
    %c27_502 = arith.constant 27 : index
    %c0_503 = arith.constant 0 : index
    %325 = vector.load %arg13[%c27_502, %c0_503] : memref<64x32xf32, #tpu.memory_space<vmem>>, vector<1x32xf32>
    %c1_504 = arith.constant 1 : index
    %c0_505 = arith.constant 0 : index
    %326 = vector.load %arg15[%c1_504, %c0_505] : memref<9x32xf32, #tpu.memory_space<vmem>>, vector<1x32xf32>
    tpu.vector_store %arg15[%c1_504, %c0_505], %325 {strides = array<i32>} : memref<9x32xf32, #tpu.memory_space<vmem>>, vector<1x32xf32>,
    %c29_506 = arith.constant 29 : index
    %c0_507 = arith.constant 0 : index
    %327 = vector.load %arg13[%c29_506, %c0_507] : memref<64x32xf32, #tpu.memory_space<vmem>>, vector<1x32xf32>
    %c2_508 = arith.constant 2 : index
    %c0_509 = arith.constant 0 : index
    %328 = vector.load %arg15[%c2_508, %c0_509] : memref<9x32xf32, #tpu.memory_space<vmem>>, vector<1x32xf32>
    tpu.vector_store %arg15[%c2_508, %c0_509], %327 {strides = array<i32>} : memref<9x32xf32, #tpu.memory_space<vmem>>, vector<1x32xf32>,
    %c41_510 = arith.constant 41 : index
    %c0_511 = arith.constant 0 : index
    %329 = vector.load %arg13[%c41_510, %c0_511] : memref<64x32xf32, #tpu.memory_space<vmem>>, vector<1x32xf32>
    %c3_512 = arith.constant 3 : index
    %c0_513 = arith.constant 0 : index
    %330 = vector.load %arg15[%c3_512, %c0_513] : memref<9x32xf32, #tpu.memory_space<vmem>>, vector<1x32xf32>
    tpu.vector_store %arg15[%c3_512, %c0_513], %329 {strides = array<i32>} : memref<9x32xf32, #tpu.memory_space<vmem>>, vector<1x32xf32>,
    %c43_514 = arith.constant 43 : index
    %c0_515 = arith.constant 0 : index
    %331 = vector.load %arg13[%c43_514, %c0_515] : memref<64x32xf32, #tpu.memory_space<vmem>>, vector<1x32xf32>
    %c4_516 = arith.constant 4 : index
    %c0_517 = arith.constant 0 : index
    %332 = vector.load %arg15[%c4_516, %c0_517] : memref<9x32xf32, #tpu.memory_space<vmem>>, vector<1x32xf32>
    tpu.vector_store %arg15[%c4_516, %c0_517], %331 {strides = array<i32>} : memref<9x32xf32, #tpu.memory_space<vmem>>, vector<1x32xf32>,
    %c45_518 = arith.constant 45 : index
    %c0_519 = arith.constant 0 : index
    %333 = vector.load %arg13[%c45_518, %c0_519] : memref<64x32xf32, #tpu.memory_space<vmem>>, vector<1x32xf32>
    %c5_520 = arith.constant 5 : index
    %c0_521 = arith.constant 0 : index
    %334 = vector.load %arg15[%c5_520, %c0_521] : memref<9x32xf32, #tpu.memory_space<vmem>>, vector<1x32xf32>
    tpu.vector_store %arg15[%c5_520, %c0_521], %333 {strides = array<i32>} : memref<9x32xf32, #tpu.memory_space<vmem>>, vector<1x32xf32>,
    %c57 = arith.constant 57 : index
    %c0_522 = arith.constant 0 : index
    %335 = vector.load %arg13[%c57, %c0_522] : memref<64x32xf32, #tpu.memory_space<vmem>>, vector<1x32xf32>
    %c6_523 = arith.constant 6 : index
    %c0_524 = arith.constant 0 : index
    %336 = vector.load %arg15[%c6_523, %c0_524] : memref<9x32xf32, #tpu.memory_space<vmem>>, vector<1x32xf32>
    tpu.vector_store %arg15[%c6_523, %c0_524], %335 {strides = array<i32>} : memref<9x32xf32, #tpu.memory_space<vmem>>, vector<1x32xf32>,
    %c59 = arith.constant 59 : index
    %c0_525 = arith.constant 0 : index
    %337 = vector.load %arg13[%c59, %c0_525] : memref<64x32xf32, #tpu.memory_space<vmem>>, vector<1x32xf32>
    %c7_526 = arith.constant 7 : index
    %c0_527 = arith.constant 0 : index
    %338 = vector.load %arg15[%c7_526, %c0_527] : memref<9x32xf32, #tpu.memory_space<vmem>>, vector<1x32xf32>
    tpu.vector_store %arg15[%c7_526, %c0_527], %337 {strides = array<i32>} : memref<9x32xf32, #tpu.memory_space<vmem>>, vector<1x32xf32>,
    %c61 = arith.constant 61 : index
    %c0_528 = arith.constant 0 : index
    %339 = vector.load %arg13[%c61, %c0_528] : memref<64x32xf32, #tpu.memory_space<vmem>>, vector<1x32xf32>
    %c8_529 = arith.constant 8 : index
    %c0_530 = arith.constant 0 : index
    %340 = vector.load %arg15[%c8_529, %c0_530] : memref<9x32xf32, #tpu.memory_space<vmem>>, vector<1x32xf32>
    tpu.vector_store %arg15[%c8_529, %c0_530], %339 {strides = array<i32>} : memref<9x32xf32, #tpu.memory_space<vmem>>, vector<1x32xf32>,
    %c0_531 = arith.constant 0 : index
    %c0_532 = arith.constant 0 : index
    %341 = vector.load %arg15[%c0_531, %c0_532] : memref<9x32xf32, #tpu.memory_space<vmem>>, vector<9x32xf32>
    %342 = arith.truncf %341 : vector<9x32xf32> to vector<9x32xbf16>
    %c13_533 = arith.constant 13 : index
    %c0_534 = arith.constant 0 : index
    %c0_535 = arith.constant 0 : index
    %343 = vector.load %arg4[%c13_533, %c0_534, %c0_535] : memref<16x32x64xbf16, #tpu.memory_space<vmem>>, vector<1x32x64xbf16>
    %344 = vector.shape_cast %343 : vector<1x32x64xbf16> to vector<32x64xbf16>
    %cst_536 = arith.constant dense<0.000000e+00> : vector<9x64xf32>
    %345 = tpu.matmul %342, %344, %cst_536 {dimension_numbers = #tpu.dot_dimension_numbers<[1], [0], [0], [1], [0, 0, 1, 1], [], []>} : vector<9x32xbf16>, vector<32x64xbf16>, vector<9x64xf32> -> vector<9x64xf32>
    %346 = arith.addf %322, %345 : vector<9x64xf32>
    %c26_537 = arith.constant 26 : index
    %c0_538 = arith.constant 0 : index
    %347 = vector.load %arg13[%c26_537, %c0_538] : memref<64x32xf32, #tpu.memory_space<vmem>>, vector<1x32xf32>
    %c0_539 = arith.constant 0 : index
    %c0_540 = arith.constant 0 : index
    %348 = vector.load %arg15[%c0_539, %c0_540] : memref<9x32xf32, #tpu.memory_space<vmem>>, vector<1x32xf32>
    tpu.vector_store %arg15[%c0_539, %c0_540], %347 {strides = array<i32>} : memref<9x32xf32, #tpu.memory_space<vmem>>, vector<1x32xf32>,
    %c28_541 = arith.constant 28 : index
    %c0_542 = arith.constant 0 : index
    %349 = vector.load %arg13[%c28_541, %c0_542] : memref<64x32xf32, #tpu.memory_space<vmem>>, vector<1x32xf32>
    %c1_543 = arith.constant 1 : index
    %c0_544 = arith.constant 0 : index
    %350 = vector.load %arg15[%c1_543, %c0_544] : memref<9x32xf32, #tpu.memory_space<vmem>>, vector<1x32xf32>
    tpu.vector_store %arg15[%c1_543, %c0_544], %349 {strides = array<i32>} : memref<9x32xf32, #tpu.memory_space<vmem>>, vector<1x32xf32>,
    %c30_545 = arith.constant 30 : index
    %c0_546 = arith.constant 0 : index
    %351 = vector.load %arg13[%c30_545, %c0_546] : memref<64x32xf32, #tpu.memory_space<vmem>>, vector<1x32xf32>
    %c2_547 = arith.constant 2 : index
    %c0_548 = arith.constant 0 : index
    %352 = vector.load %arg15[%c2_547, %c0_548] : memref<9x32xf32, #tpu.memory_space<vmem>>, vector<1x32xf32>
    tpu.vector_store %arg15[%c2_547, %c0_548], %351 {strides = array<i32>} : memref<9x32xf32, #tpu.memory_space<vmem>>, vector<1x32xf32>,
    %c42_549 = arith.constant 42 : index
    %c0_550 = arith.constant 0 : index
    %353 = vector.load %arg13[%c42_549, %c0_550] : memref<64x32xf32, #tpu.memory_space<vmem>>, vector<1x32xf32>
    %c3_551 = arith.constant 3 : index
    %c0_552 = arith.constant 0 : index
    %354 = vector.load %arg15[%c3_551, %c0_552] : memref<9x32xf32, #tpu.memory_space<vmem>>, vector<1x32xf32>
    tpu.vector_store %arg15[%c3_551, %c0_552], %353 {strides = array<i32>} : memref<9x32xf32, #tpu.memory_space<vmem>>, vector<1x32xf32>,
    %c44_553 = arith.constant 44 : index
    %c0_554 = arith.constant 0 : index
    %355 = vector.load %arg13[%c44_553, %c0_554] : memref<64x32xf32, #tpu.memory_space<vmem>>, vector<1x32xf32>
    %c4_555 = arith.constant 4 : index
    %c0_556 = arith.constant 0 : index
    %356 = vector.load %arg15[%c4_555, %c0_556] : memref<9x32xf32, #tpu.memory_space<vmem>>, vector<1x32xf32>
    tpu.vector_store %arg15[%c4_555, %c0_556], %355 {strides = array<i32>} : memref<9x32xf32, #tpu.memory_space<vmem>>, vector<1x32xf32>,
    %c46_557 = arith.constant 46 : index
    %c0_558 = arith.constant 0 : index
    %357 = vector.load %arg13[%c46_557, %c0_558] : memref<64x32xf32, #tpu.memory_space<vmem>>, vector<1x32xf32>
    %c5_559 = arith.constant 5 : index
    %c0_560 = arith.constant 0 : index
    %358 = vector.load %arg15[%c5_559, %c0_560] : memref<9x32xf32, #tpu.memory_space<vmem>>, vector<1x32xf32>
    tpu.vector_store %arg15[%c5_559, %c0_560], %357 {strides = array<i32>} : memref<9x32xf32, #tpu.memory_space<vmem>>, vector<1x32xf32>,
    %c58_561 = arith.constant 58 : index
    %c0_562 = arith.constant 0 : index
    %359 = vector.load %arg13[%c58_561, %c0_562] : memref<64x32xf32, #tpu.memory_space<vmem>>, vector<1x32xf32>
    %c6_563 = arith.constant 6 : index
    %c0_564 = arith.constant 0 : index
    %360 = vector.load %arg15[%c6_563, %c0_564] : memref<9x32xf32, #tpu.memory_space<vmem>>, vector<1x32xf32>
    tpu.vector_store %arg15[%c6_563, %c0_564], %359 {strides = array<i32>} : memref<9x32xf32, #tpu.memory_space<vmem>>, vector<1x32xf32>,
    %c60_565 = arith.constant 60 : index
    %c0_566 = arith.constant 0 : index
    %361 = vector.load %arg13[%c60_565, %c0_566] : memref<64x32xf32, #tpu.memory_space<vmem>>, vector<1x32xf32>
    %c7_567 = arith.constant 7 : index
    %c0_568 = arith.constant 0 : index
    %362 = vector.load %arg15[%c7_567, %c0_568] : memref<9x32xf32, #tpu.memory_space<vmem>>, vector<1x32xf32>
    tpu.vector_store %arg15[%c7_567, %c0_568], %361 {strides = array<i32>} : memref<9x32xf32, #tpu.memory_space<vmem>>, vector<1x32xf32>,
    %c62 = arith.constant 62 : index
    %c0_569 = arith.constant 0 : index
    %363 = vector.load %arg13[%c62, %c0_569] : memref<64x32xf32, #tpu.memory_space<vmem>>, vector<1x32xf32>
    %c8_570 = arith.constant 8 : index
    %c0_571 = arith.constant 0 : index
    %364 = vector.load %arg15[%c8_570, %c0_571] : memref<9x32xf32, #tpu.memory_space<vmem>>, vector<1x32xf32>
    tpu.vector_store %arg15[%c8_570, %c0_571], %363 {strides = array<i32>} : memref<9x32xf32, #tpu.memory_space<vmem>>, vector<1x32xf32>,
    %c0_572 = arith.constant 0 : index
    %c0_573 = arith.constant 0 : index
    %365 = vector.load %arg15[%c0_572, %c0_573] : memref<9x32xf32, #tpu.memory_space<vmem>>, vector<9x32xf32>
    %366 = arith.truncf %365 : vector<9x32xf32> to vector<9x32xbf16>
    %c14_574 = arith.constant 14 : index
    %c0_575 = arith.constant 0 : index
    %c0_576 = arith.constant 0 : index
    %367 = vector.load %arg4[%c14_574, %c0_575, %c0_576] : memref<16x32x64xbf16, #tpu.memory_space<vmem>>, vector<1x32x64xbf16>
    %368 = vector.shape_cast %367 : vector<1x32x64xbf16> to vector<32x64xbf16>
    %cst_577 = arith.constant dense<0.000000e+00> : vector<9x64xf32>
    %369 = tpu.matmul %366, %368, %cst_577 {dimension_numbers = #tpu.dot_dimension_numbers<[1], [0], [0], [1], [0, 0, 1, 1], [], []>} : vector<9x32xbf16>, vector<32x64xbf16>, vector<9x64xf32> -> vector<9x64xf32>
    %370 = arith.addf %346, %369 : vector<9x64xf32>
    %c27_578 = arith.constant 27 : index
    %c0_579 = arith.constant 0 : index
    %371 = vector.load %arg13[%c27_578, %c0_579] : memref<64x32xf32, #tpu.memory_space<vmem>>, vector<1x32xf32>
    %c0_580 = arith.constant 0 : index
    %c0_581 = arith.constant 0 : index
    %372 = vector.load %arg15[%c0_580, %c0_581] : memref<9x32xf32, #tpu.memory_space<vmem>>, vector<1x32xf32>
    tpu.vector_store %arg15[%c0_580, %c0_581], %371 {strides = array<i32>} : memref<9x32xf32, #tpu.memory_space<vmem>>, vector<1x32xf32>,
    %c29_582 = arith.constant 29 : index
    %c0_583 = arith.constant 0 : index
    %373 = vector.load %arg13[%c29_582, %c0_583] : memref<64x32xf32, #tpu.memory_space<vmem>>, vector<1x32xf32>
    %c1_584 = arith.constant 1 : index
    %c0_585 = arith.constant 0 : index
    %374 = vector.load %arg15[%c1_584, %c0_585] : memref<9x32xf32, #tpu.memory_space<vmem>>, vector<1x32xf32>
    tpu.vector_store %arg15[%c1_584, %c0_585], %373 {strides = array<i32>} : memref<9x32xf32, #tpu.memory_space<vmem>>, vector<1x32xf32>,
    %c31_586 = arith.constant 31 : index
    %c0_587 = arith.constant 0 : index
    %375 = vector.load %arg13[%c31_586, %c0_587] : memref<64x32xf32, #tpu.memory_space<vmem>>, vector<1x32xf32>
    %c2_588 = arith.constant 2 : index
    %c0_589 = arith.constant 0 : index
    %376 = vector.load %arg15[%c2_588, %c0_589] : memref<9x32xf32, #tpu.memory_space<vmem>>, vector<1x32xf32>
    tpu.vector_store %arg15[%c2_588, %c0_589], %375 {strides = array<i32>} : memref<9x32xf32, #tpu.memory_space<vmem>>, vector<1x32xf32>,
    %c43_590 = arith.constant 43 : index
    %c0_591 = arith.constant 0 : index
    %377 = vector.load %arg13[%c43_590, %c0_591] : memref<64x32xf32, #tpu.memory_space<vmem>>, vector<1x32xf32>
    %c3_592 = arith.constant 3 : index
    %c0_593 = arith.constant 0 : index
    %378 = vector.load %arg15[%c3_592, %c0_593] : memref<9x32xf32, #tpu.memory_space<vmem>>, vector<1x32xf32>
    tpu.vector_store %arg15[%c3_592, %c0_593], %377 {strides = array<i32>} : memref<9x32xf32, #tpu.memory_space<vmem>>, vector<1x32xf32>,
    %c45_594 = arith.constant 45 : index
    %c0_595 = arith.constant 0 : index
    %379 = vector.load %arg13[%c45_594, %c0_595] : memref<64x32xf32, #tpu.memory_space<vmem>>, vector<1x32xf32>
    %c4_596 = arith.constant 4 : index
    %c0_597 = arith.constant 0 : index
    %380 = vector.load %arg15[%c4_596, %c0_597] : memref<9x32xf32, #tpu.memory_space<vmem>>, vector<1x32xf32>
    tpu.vector_store %arg15[%c4_596, %c0_597], %379 {strides = array<i32>} : memref<9x32xf32, #tpu.memory_space<vmem>>, vector<1x32xf32>,
    %c47_598 = arith.constant 47 : index
    %c0_599 = arith.constant 0 : index
    %381 = vector.load %arg13[%c47_598, %c0_599] : memref<64x32xf32, #tpu.memory_space<vmem>>, vector<1x32xf32>
    %c5_600 = arith.constant 5 : index
    %c0_601 = arith.constant 0 : index
    %382 = vector.load %arg15[%c5_600, %c0_601] : memref<9x32xf32, #tpu.memory_space<vmem>>, vector<1x32xf32>
    tpu.vector_store %arg15[%c5_600, %c0_601], %381 {strides = array<i32>} : memref<9x32xf32, #tpu.memory_space<vmem>>, vector<1x32xf32>,
    %c59_602 = arith.constant 59 : index
    %c0_603 = arith.constant 0 : index
    %383 = vector.load %arg13[%c59_602, %c0_603] : memref<64x32xf32, #tpu.memory_space<vmem>>, vector<1x32xf32>
    %c6_604 = arith.constant 6 : index
    %c0_605 = arith.constant 0 : index
    %384 = vector.load %arg15[%c6_604, %c0_605] : memref<9x32xf32, #tpu.memory_space<vmem>>, vector<1x32xf32>
    tpu.vector_store %arg15[%c6_604, %c0_605], %383 {strides = array<i32>} : memref<9x32xf32, #tpu.memory_space<vmem>>, vector<1x32xf32>,
    %c61_606 = arith.constant 61 : index
    %c0_607 = arith.constant 0 : index
    %385 = vector.load %arg13[%c61_606, %c0_607] : memref<64x32xf32, #tpu.memory_space<vmem>>, vector<1x32xf32>
    %c7_608 = arith.constant 7 : index
    %c0_609 = arith.constant 0 : index
    %386 = vector.load %arg15[%c7_608, %c0_609] : memref<9x32xf32, #tpu.memory_space<vmem>>, vector<1x32xf32>
    tpu.vector_store %arg15[%c7_608, %c0_609], %385 {strides = array<i32>} : memref<9x32xf32, #tpu.memory_space<vmem>>, vector<1x32xf32>,
    %c63 = arith.constant 63 : index
    %c0_610 = arith.constant 0 : index
    %387 = vector.load %arg13[%c63, %c0_610] : memref<64x32xf32, #tpu.memory_space<vmem>>, vector<1x32xf32>
    %c8_611 = arith.constant 8 : index
    %c0_612 = arith.constant 0 : index
    %388 = vector.load %arg15[%c8_611, %c0_612] : memref<9x32xf32, #tpu.memory_space<vmem>>, vector<1x32xf32>
    tpu.vector_store %arg15[%c8_611, %c0_612], %387 {strides = array<i32>} : memref<9x32xf32, #tpu.memory_space<vmem>>, vector<1x32xf32>,
    %c0_613 = arith.constant 0 : index
    %c0_614 = arith.constant 0 : index
    %389 = vector.load %arg15[%c0_613, %c0_614] : memref<9x32xf32, #tpu.memory_space<vmem>>, vector<9x32xf32>
    %390 = arith.truncf %389 : vector<9x32xf32> to vector<9x32xbf16>
    %c15_615 = arith.constant 15 : index
    %c0_616 = arith.constant 0 : index
    %c0_617 = arith.constant 0 : index
    %391 = vector.load %arg4[%c15_615, %c0_616, %c0_617] : memref<16x32x64xbf16, #tpu.memory_space<vmem>>, vector<1x32x64xbf16>
    %392 = vector.shape_cast %391 : vector<1x32x64xbf16> to vector<32x64xbf16>
    %cst_618 = arith.constant dense<0.000000e+00> : vector<9x64xf32>
    %393 = tpu.matmul %390, %392, %cst_618 {dimension_numbers = #tpu.dot_dimension_numbers<[1], [0], [0], [1], [0, 0, 1, 1], [], []>} : vector<9x32xbf16>, vector<32x64xbf16>, vector<9x64xf32> -> vector<9x64xf32>
    %394 = arith.addf %370, %393 : vector<9x64xf32>
    %c0_619 = arith.constant 0 : index
    %c0_620 = arith.constant 0 : index
    %395 = vector.load %arg5[%c0_619, %c0_620] : memref<1x64xf32, #tpu.memory_space<vmem>>, vector<1x64xf32>
    %396 = vector.broadcast %395 : vector<1x64xf32> to vector<9x64xf32>
    %397 = arith.addf %394, %396 : vector<9x64xf32>
    %cst_621 = arith.constant 0.000000e+00 : f32
    %398 = vector.broadcast %cst_621 : f32 to vector<9x64xf32>
    %399 = arith.maximumf %397, %398 : vector<9x64xf32>
    %c0_622 = arith.constant 0 : index
    %c0_623 = arith.constant 0 : index
    %400 = vector.load %arg14[%c0_622, %c0_623] : memref<9x64xf32, #tpu.memory_space<vmem>>, vector<9x64xf32>
    tpu.vector_store %arg14[%c0_622, %c0_623], %399 {strides = array<i32>} : memref<9x64xf32, #tpu.memory_space<vmem>>, vector<9x64xf32>,
    %cst_624 = arith.constant 0.000000e+00 : f32
    %401 = vector.broadcast %cst_624 : f32 to vector<1x64xf32>
    %c0_625 = arith.constant 0 : index
    %c0_626 = arith.constant 0 : index
    %402 = vector.load %arg14[%c0_625, %c0_626] : memref<9x64xf32, #tpu.memory_space<vmem>>, vector<1x64xf32>
    %c0_627 = arith.constant 0 : index
    %c0_628 = arith.constant 0 : index
    %403 = vector.load %arg16[%c0_627, %c0_628] : memref<1x64xf32, #tpu.memory_space<vmem>>, vector<1x64xf32>
    tpu.vector_store %arg16[%c0_627, %c0_628], %402 {strides = array<i32>} : memref<1x64xf32, #tpu.memory_space<vmem>>, vector<1x64xf32>,
    %c0_629 = arith.constant 0 : index
    %c0_630 = arith.constant 0 : index
    %404 = vector.load %arg16[%c0_629, %c0_630] : memref<1x64xf32, #tpu.memory_space<vmem>>, vector<1x64xf32>
    %405 = arith.truncf %404 : vector<1x64xf32> to vector<1x64xbf16>
    %c0_631 = arith.constant 0 : index
    %c0_632 = arith.constant 0 : index
    %c0_633 = arith.constant 0 : index
    %406 = vector.load %arg6[%c0_631, %c0_632, %c0_633] : memref<9x64x64xbf16, #tpu.memory_space<vmem>>, vector<1x64x64xbf16>
    %407 = vector.shape_cast %406 : vector<1x64x64xbf16> to vector<64x64xbf16>
    %cst_634 = arith.constant dense<0.000000e+00> : vector<1x64xf32>
    %408 = tpu.matmul %405, %407, %cst_634 {dimension_numbers = #tpu.dot_dimension_numbers<[1], [0], [0], [1], [0, 0, 1, 1], [], []>} : vector<1x64xbf16>, vector<64x64xbf16>, vector<1x64xf32> -> vector<1x64xf32>
    %409 = arith.addf %401, %408 : vector<1x64xf32>
    %c1_635 = arith.constant 1 : index
    %c0_636 = arith.constant 0 : index
    %410 = vector.load %arg14[%c1_635, %c0_636] : memref<9x64xf32, #tpu.memory_space<vmem>>, vector<1x64xf32>
    %c0_637 = arith.constant 0 : index
    %c0_638 = arith.constant 0 : index
    %411 = vector.load %arg16[%c0_637, %c0_638] : memref<1x64xf32, #tpu.memory_space<vmem>>, vector<1x64xf32>
    tpu.vector_store %arg16[%c0_637, %c0_638], %410 {strides = array<i32>} : memref<1x64xf32, #tpu.memory_space<vmem>>, vector<1x64xf32>,
    %c0_639 = arith.constant 0 : index
    %c0_640 = arith.constant 0 : index
    %412 = vector.load %arg16[%c0_639, %c0_640] : memref<1x64xf32, #tpu.memory_space<vmem>>, vector<1x64xf32>
    %413 = arith.truncf %412 : vector<1x64xf32> to vector<1x64xbf16>
    %c1_641 = arith.constant 1 : index
    %c0_642 = arith.constant 0 : index
    %c0_643 = arith.constant 0 : index
    %414 = vector.load %arg6[%c1_641, %c0_642, %c0_643] : memref<9x64x64xbf16, #tpu.memory_space<vmem>>, vector<1x64x64xbf16>
    %415 = vector.shape_cast %414 : vector<1x64x64xbf16> to vector<64x64xbf16>
    %cst_644 = arith.constant dense<0.000000e+00> : vector<1x64xf32>
    %416 = tpu.matmul %413, %415, %cst_644 {dimension_numbers = #tpu.dot_dimension_numbers<[1], [0], [0], [1], [0, 0, 1, 1], [], []>} : vector<1x64xbf16>, vector<64x64xbf16>, vector<1x64xf32> -> vector<1x64xf32>
    %417 = arith.addf %409, %416 : vector<1x64xf32>
    %c2_645 = arith.constant 2 : index
    %c0_646 = arith.constant 0 : index
    %418 = vector.load %arg14[%c2_645, %c0_646] : memref<9x64xf32, #tpu.memory_space<vmem>>, vector<1x64xf32>
    %c0_647 = arith.constant 0 : index
    %c0_648 = arith.constant 0 : index
    %419 = vector.load %arg16[%c0_647, %c0_648] : memref<1x64xf32, #tpu.memory_space<vmem>>, vector<1x64xf32>
    tpu.vector_store %arg16[%c0_647, %c0_648], %418 {strides = array<i32>} : memref<1x64xf32, #tpu.memory_space<vmem>>, vector<1x64xf32>,
    %c0_649 = arith.constant 0 : index
    %c0_650 = arith.constant 0 : index
    %420 = vector.load %arg16[%c0_649, %c0_650] : memref<1x64xf32, #tpu.memory_space<vmem>>, vector<1x64xf32>
    %421 = arith.truncf %420 : vector<1x64xf32> to vector<1x64xbf16>
    %c2_651 = arith.constant 2 : index
    %c0_652 = arith.constant 0 : index
    %c0_653 = arith.constant 0 : index
    %422 = vector.load %arg6[%c2_651, %c0_652, %c0_653] : memref<9x64x64xbf16, #tpu.memory_space<vmem>>, vector<1x64x64xbf16>
    %423 = vector.shape_cast %422 : vector<1x64x64xbf16> to vector<64x64xbf16>
    %cst_654 = arith.constant dense<0.000000e+00> : vector<1x64xf32>
    %424 = tpu.matmul %421, %423, %cst_654 {dimension_numbers = #tpu.dot_dimension_numbers<[1], [0], [0], [1], [0, 0, 1, 1], [], []>} : vector<1x64xbf16>, vector<64x64xbf16>, vector<1x64xf32> -> vector<1x64xf32>
    %425 = arith.addf %417, %424 : vector<1x64xf32>
    %c3_655 = arith.constant 3 : index
    %c0_656 = arith.constant 0 : index
    %426 = vector.load %arg14[%c3_655, %c0_656] : memref<9x64xf32, #tpu.memory_space<vmem>>, vector<1x64xf32>
    %c0_657 = arith.constant 0 : index
    %c0_658 = arith.constant 0 : index
    %427 = vector.load %arg16[%c0_657, %c0_658] : memref<1x64xf32, #tpu.memory_space<vmem>>, vector<1x64xf32>
    tpu.vector_store %arg16[%c0_657, %c0_658], %426 {strides = array<i32>} : memref<1x64xf32, #tpu.memory_space<vmem>>, vector<1x64xf32>,
    %c0_659 = arith.constant 0 : index
    %c0_660 = arith.constant 0 : index
    %428 = vector.load %arg16[%c0_659, %c0_660] : memref<1x64xf32, #tpu.memory_space<vmem>>, vector<1x64xf32>
    %429 = arith.truncf %428 : vector<1x64xf32> to vector<1x64xbf16>
    %c3_661 = arith.constant 3 : index
    %c0_662 = arith.constant 0 : index
    %c0_663 = arith.constant 0 : index
    %430 = vector.load %arg6[%c3_661, %c0_662, %c0_663] : memref<9x64x64xbf16, #tpu.memory_space<vmem>>, vector<1x64x64xbf16>
    %431 = vector.shape_cast %430 : vector<1x64x64xbf16> to vector<64x64xbf16>
    %cst_664 = arith.constant dense<0.000000e+00> : vector<1x64xf32>
    %432 = tpu.matmul %429, %431, %cst_664 {dimension_numbers = #tpu.dot_dimension_numbers<[1], [0], [0], [1], [0, 0, 1, 1], [], []>} : vector<1x64xbf16>, vector<64x64xbf16>, vector<1x64xf32> -> vector<1x64xf32>
    %433 = arith.addf %425, %432 : vector<1x64xf32>
    %c4_665 = arith.constant 4 : index
    %c0_666 = arith.constant 0 : index
    %434 = vector.load %arg14[%c4_665, %c0_666] : memref<9x64xf32, #tpu.memory_space<vmem>>, vector<1x64xf32>
    %c0_667 = arith.constant 0 : index
    %c0_668 = arith.constant 0 : index
    %435 = vector.load %arg16[%c0_667, %c0_668] : memref<1x64xf32, #tpu.memory_space<vmem>>, vector<1x64xf32>
    tpu.vector_store %arg16[%c0_667, %c0_668], %434 {strides = array<i32>} : memref<1x64xf32, #tpu.memory_space<vmem>>, vector<1x64xf32>,
    %c0_669 = arith.constant 0 : index
    %c0_670 = arith.constant 0 : index
    %436 = vector.load %arg16[%c0_669, %c0_670] : memref<1x64xf32, #tpu.memory_space<vmem>>, vector<1x64xf32>
    %437 = arith.truncf %436 : vector<1x64xf32> to vector<1x64xbf16>
    %c4_671 = arith.constant 4 : index
    %c0_672 = arith.constant 0 : index
    %c0_673 = arith.constant 0 : index
    %438 = vector.load %arg6[%c4_671, %c0_672, %c0_673] : memref<9x64x64xbf16, #tpu.memory_space<vmem>>, vector<1x64x64xbf16>
    %439 = vector.shape_cast %438 : vector<1x64x64xbf16> to vector<64x64xbf16>
    %cst_674 = arith.constant dense<0.000000e+00> : vector<1x64xf32>
    %440 = tpu.matmul %437, %439, %cst_674 {dimension_numbers = #tpu.dot_dimension_numbers<[1], [0], [0], [1], [0, 0, 1, 1], [], []>} : vector<1x64xbf16>, vector<64x64xbf16>, vector<1x64xf32> -> vector<1x64xf32>
    %441 = arith.addf %433, %440 : vector<1x64xf32>
    %c5_675 = arith.constant 5 : index
    %c0_676 = arith.constant 0 : index
    %442 = vector.load %arg14[%c5_675, %c0_676] : memref<9x64xf32, #tpu.memory_space<vmem>>, vector<1x64xf32>
    %c0_677 = arith.constant 0 : index
    %c0_678 = arith.constant 0 : index
    %443 = vector.load %arg16[%c0_677, %c0_678] : memref<1x64xf32, #tpu.memory_space<vmem>>, vector<1x64xf32>
    tpu.vector_store %arg16[%c0_677, %c0_678], %442 {strides = array<i32>} : memref<1x64xf32, #tpu.memory_space<vmem>>, vector<1x64xf32>,
    %c0_679 = arith.constant 0 : index
    %c0_680 = arith.constant 0 : index
    %444 = vector.load %arg16[%c0_679, %c0_680] : memref<1x64xf32, #tpu.memory_space<vmem>>, vector<1x64xf32>
    %445 = arith.truncf %444 : vector<1x64xf32> to vector<1x64xbf16>
    %c5_681 = arith.constant 5 : index
    %c0_682 = arith.constant 0 : index
    %c0_683 = arith.constant 0 : index
    %446 = vector.load %arg6[%c5_681, %c0_682, %c0_683] : memref<9x64x64xbf16, #tpu.memory_space<vmem>>, vector<1x64x64xbf16>
    %447 = vector.shape_cast %446 : vector<1x64x64xbf16> to vector<64x64xbf16>
    %cst_684 = arith.constant dense<0.000000e+00> : vector<1x64xf32>
    %448 = tpu.matmul %445, %447, %cst_684 {dimension_numbers = #tpu.dot_dimension_numbers<[1], [0], [0], [1], [0, 0, 1, 1], [], []>} : vector<1x64xbf16>, vector<64x64xbf16>, vector<1x64xf32> -> vector<1x64xf32>
    %449 = arith.addf %441, %448 : vector<1x64xf32>
    %c6_685 = arith.constant 6 : index
    %c0_686 = arith.constant 0 : index
    %450 = vector.load %arg14[%c6_685, %c0_686] : memref<9x64xf32, #tpu.memory_space<vmem>>, vector<1x64xf32>
    %c0_687 = arith.constant 0 : index
    %c0_688 = arith.constant 0 : index
    %451 = vector.load %arg16[%c0_687, %c0_688] : memref<1x64xf32, #tpu.memory_space<vmem>>, vector<1x64xf32>
    tpu.vector_store %arg16[%c0_687, %c0_688], %450 {strides = array<i32>} : memref<1x64xf32, #tpu.memory_space<vmem>>, vector<1x64xf32>,
    %c0_689 = arith.constant 0 : index
    %c0_690 = arith.constant 0 : index
    %452 = vector.load %arg16[%c0_689, %c0_690] : memref<1x64xf32, #tpu.memory_space<vmem>>, vector<1x64xf32>
    %453 = arith.truncf %452 : vector<1x64xf32> to vector<1x64xbf16>
    %c6_691 = arith.constant 6 : index
    %c0_692 = arith.constant 0 : index
    %c0_693 = arith.constant 0 : index
    %454 = vector.load %arg6[%c6_691, %c0_692, %c0_693] : memref<9x64x64xbf16, #tpu.memory_space<vmem>>, vector<1x64x64xbf16>
    %455 = vector.shape_cast %454 : vector<1x64x64xbf16> to vector<64x64xbf16>
    %cst_694 = arith.constant dense<0.000000e+00> : vector<1x64xf32>
    %456 = tpu.matmul %453, %455, %cst_694 {dimension_numbers = #tpu.dot_dimension_numbers<[1], [0], [0], [1], [0, 0, 1, 1], [], []>} : vector<1x64xbf16>, vector<64x64xbf16>, vector<1x64xf32> -> vector<1x64xf32>
    %457 = arith.addf %449, %456 : vector<1x64xf32>
    %c7_695 = arith.constant 7 : index
    %c0_696 = arith.constant 0 : index
    %458 = vector.load %arg14[%c7_695, %c0_696] : memref<9x64xf32, #tpu.memory_space<vmem>>, vector<1x64xf32>
    %c0_697 = arith.constant 0 : index
    %c0_698 = arith.constant 0 : index
    %459 = vector.load %arg16[%c0_697, %c0_698] : memref<1x64xf32, #tpu.memory_space<vmem>>, vector<1x64xf32>
    tpu.vector_store %arg16[%c0_697, %c0_698], %458 {strides = array<i32>} : memref<1x64xf32, #tpu.memory_space<vmem>>, vector<1x64xf32>,
    %c0_699 = arith.constant 0 : index
    %c0_700 = arith.constant 0 : index
    %460 = vector.load %arg16[%c0_699, %c0_700] : memref<1x64xf32, #tpu.memory_space<vmem>>, vector<1x64xf32>
    %461 = arith.truncf %460 : vector<1x64xf32> to vector<1x64xbf16>
    %c7_701 = arith.constant 7 : index
    %c0_702 = arith.constant 0 : index
    %c0_703 = arith.constant 0 : index
    %462 = vector.load %arg6[%c7_701, %c0_702, %c0_703] : memref<9x64x64xbf16, #tpu.memory_space<vmem>>, vector<1x64x64xbf16>
    %463 = vector.shape_cast %462 : vector<1x64x64xbf16> to vector<64x64xbf16>
    %cst_704 = arith.constant dense<0.000000e+00> : vector<1x64xf32>
    %464 = tpu.matmul %461, %463, %cst_704 {dimension_numbers = #tpu.dot_dimension_numbers<[1], [0], [0], [1], [0, 0, 1, 1], [], []>} : vector<1x64xbf16>, vector<64x64xbf16>, vector<1x64xf32> -> vector<1x64xf32>
    %465 = arith.addf %457, %464 : vector<1x64xf32>
    %c8_705 = arith.constant 8 : index
    %c0_706 = arith.constant 0 : index
    %466 = vector.load %arg14[%c8_705, %c0_706] : memref<9x64xf32, #tpu.memory_space<vmem>>, vector<1x64xf32>
    %c0_707 = arith.constant 0 : index
    %c0_708 = arith.constant 0 : index
    %467 = vector.load %arg16[%c0_707, %c0_708] : memref<1x64xf32, #tpu.memory_space<vmem>>, vector<1x64xf32>
    tpu.vector_store %arg16[%c0_707, %c0_708], %466 {strides = array<i32>} : memref<1x64xf32, #tpu.memory_space<vmem>>, vector<1x64xf32>,
    %c0_709 = arith.constant 0 : index
    %c0_710 = arith.constant 0 : index
    %468 = vector.load %arg16[%c0_709, %c0_710] : memref<1x64xf32, #tpu.memory_space<vmem>>, vector<1x64xf32>
    %469 = arith.truncf %468 : vector<1x64xf32> to vector<1x64xbf16>
    %c8_711 = arith.constant 8 : index
    %c0_712 = arith.constant 0 : index
    %c0_713 = arith.constant 0 : index
    %470 = vector.load %arg6[%c8_711, %c0_712, %c0_713] : memref<9x64x64xbf16, #tpu.memory_space<vmem>>, vector<1x64x64xbf16>
    %471 = vector.shape_cast %470 : vector<1x64x64xbf16> to vector<64x64xbf16>
    %cst_714 = arith.constant dense<0.000000e+00> : vector<1x64xf32>
    %472 = tpu.matmul %469, %471, %cst_714 {dimension_numbers = #tpu.dot_dimension_numbers<[1], [0], [0], [1], [0, 0, 1, 1], [], []>} : vector<1x64xbf16>, vector<64x64xbf16>, vector<1x64xf32> -> vector<1x64xf32>
    %473 = arith.addf %465, %472 : vector<1x64xf32>
    %c0_715 = arith.constant 0 : index
    %c0_716 = arith.constant 0 : index
    %474 = vector.load %arg7[%c0_715, %c0_716] : memref<1x64xf32, #tpu.memory_space<vmem>>, vector<1x64xf32>
    %475 = arith.addf %473, %474 : vector<1x64xf32>
    %cst_717 = arith.constant 0.000000e+00 : f32
    %476 = vector.broadcast %cst_717 : f32 to vector<1x64xf32>
    %477 = arith.maximumf %475, %476 : vector<1x64xf32>
    %478 = arith.truncf %477 : vector<1x64xf32> to vector<1x64xbf16>
    %c0_718 = arith.constant 0 : index
    %c0_719 = arith.constant 0 : index
    %479 = vector.load %arg8[%c0_718, %c0_719] : memref<64x512xbf16, #tpu.memory_space<vmem>>, vector<64x512xbf16>
    %cst_720 = arith.constant dense<0.000000e+00> : vector<1x512xf32>
    %480 = tpu.matmul %478, %479, %cst_720 {dimension_numbers = #tpu.dot_dimension_numbers<[1], [0], [0], [1], [0, 0, 1, 1], [], []>} : vector<1x64xbf16>, vector<64x512xbf16>, vector<1x512xf32> -> vector<1x512xf32>
    %c0_721 = arith.constant 0 : index
    %c0_722 = arith.constant 0 : index
    %481 = vector.load %arg9[%c0_721, %c0_722] : memref<1x512xf32, #tpu.memory_space<vmem>>, vector<1x512xf32>
    %482 = arith.addf %480, %481 : vector<1x512xf32>
    %cst_723 = arith.constant 0.000000e+00 : f32
    %483 = vector.broadcast %cst_723 : f32 to vector<1x512xf32>
    %484 = arith.maximumf %482, %483 : vector<1x512xf32>
    %485 = arith.truncf %484 : vector<1x512xf32> to vector<1x512xbf16>
    %c0_724 = arith.constant 0 : index
    %c0_725 = arith.constant 0 : index
    %486 = vector.load %arg10[%c0_724, %c0_725] : memref<512x32xbf16, #tpu.memory_space<vmem>>, vector<512x32xbf16>
    %cst_726 = arith.constant dense<0.000000e+00> : vector<1x32xf32>
    %487 = tpu.matmul %485, %486, %cst_726 {dimension_numbers = #tpu.dot_dimension_numbers<[1], [0], [0], [1], [0, 0, 1, 1], [], []>} : vector<1x512xbf16>, vector<512x32xbf16>, vector<1x32xf32> -> vector<1x32xf32>
    %c0_727 = arith.constant 0 : index
    %c0_728 = arith.constant 0 : index
    %488 = vector.load %arg11[%c0_727, %c0_728] : memref<1x32xf32, #tpu.memory_space<vmem>>, vector<1x32xf32>
    %489 = arith.addf %487, %488 : vector<1x32xf32>
    %c0_729 = arith.constant 0 : index
    %c0_730 = arith.constant 0 : index
    %c0_731 = arith.constant 0 : index
    %490 = vector.load %arg12[%c0_729, %c0_730, %c0_731] : memref<1x1x32xf32, #tpu.memory_space<vmem>>, vector<1x1x32xf32>
    %491 = vector.shape_cast %490 : vector<1x1x32xf32> to vector<1x32xf32>
    %492 = vector.shape_cast %489 : vector<1x32xf32> to vector<1x1x32xf32>
    tpu.vector_store %arg12[%c0_729, %c0_730, %c0_731], %492 {strides = array<i32>} : memref<1x1x32xf32, #tpu.memory_space<vmem>>, vector<1x1x32xf32>,
    return
  }
  func.func @transform_0(%arg0: i32) -> (i32, i32, i32) {
    %c0_i32 = arith.constant 0 : i32
    %c0_i32_0 = arith.constant 0 : i32
    %c0_i32_1 = arith.constant 0 : i32
    return %arg0, %c0_i32, %c0_i32_0 : i32, i32, i32
  }
  func.func @transform_1(%arg0: i32) -> (i32, i32) {
    %c0_i32 = arith.constant 0 : i32
    %c0_i32_0 = arith.constant 0 : i32
    %c0_i32_1 = arith.constant 0 : i32
    return %c0_i32, %c0_i32_0 : i32, i32
  }
  func.func @transform_2(%arg0: i32) -> (i32, i32) {
    %c0_i32 = arith.constant 0 : i32
    %c0_i32_0 = arith.constant 0 : i32
    %c0_i32_1 = arith.constant 0 : i32
    return %c0_i32, %c0_i32_0 : i32, i32
  }
  func.func @transform_3(%arg0: i32) -> (i32, i32, i32) {
    %c0_i32 = arith.constant 0 : i32
    %c0_i32_0 = arith.constant 0 : i32
    %c0_i32_1 = arith.constant 0 : i32
    %c0_i32_2 = arith.constant 0 : i32
    return %c0_i32, %c0_i32_0, %c0_i32_1 : i32, i32, i32
  }
  func.func @transform_4(%arg0: i32) -> (i32, i32) {
    %c0_i32 = arith.constant 0 : i32
    %c0_i32_0 = arith.constant 0 : i32
    %c0_i32_1 = arith.constant 0 : i32
    return %c0_i32, %c0_i32_0 : i32, i32
  }
  func.func @transform_5(%arg0: i32) -> (i32, i32, i32) {
    %c0_i32 = arith.constant 0 : i32
    %c0_i32_0 = arith.constant 0 : i32
    %c0_i32_1 = arith.constant 0 : i32
    %c0_i32_2 = arith.constant 0 : i32
    return %c0_i32, %c0_i32_0, %c0_i32_1 : i32, i32, i32
  }
  func.func @transform_6(%arg0: i32) -> (i32, i32) {
    %c0_i32 = arith.constant 0 : i32
    %c0_i32_0 = arith.constant 0 : i32
    %c0_i32_1 = arith.constant 0 : i32
    return %c0_i32, %c0_i32_0 : i32, i32
  }
  func.func @transform_7(%arg0: i32) -> (i32, i32) {
    %c0_i32 = arith.constant 0 : i32
    %c0_i32_0 = arith.constant 0 : i32
    %c0_i32_1 = arith.constant 0 : i32
    return %c0_i32, %c0_i32_0 : i32, i32
  }
  func.func @transform_8(%arg0: i32) -> (i32, i32) {
    %c0_i32 = arith.constant 0 : i32
    %c0_i32_0 = arith.constant 0 : i32
    %c0_i32_1 = arith.constant 0 : i32
    return %c0_i32, %c0_i32_0 : i32, i32
  }
  func.func @transform_9(%arg0: i32) -> (i32, i32) {
    %c0_i32 = arith.constant 0 : i32
    %c0_i32_0 = arith.constant 0 : i32
    %c0_i32_1 = arith.constant 0 : i32
    return %c0_i32, %c0_i32_0 : i32, i32
  }
  func.func @transform_10(%arg0: i32) -> (i32, i32) {
    %c0_i32 = arith.constant 0 : i32
    %c0_i32_0 = arith.constant 0 : i32
    %c0_i32_1 = arith.constant 0 : i32
    return %c0_i32, %c0_i32_0 : i32, i32
  }
  func.func @transform_11(%arg0: i32) -> (i32, i32, i32) {
    %c0_i32 = arith.constant 0 : i32
    %c0_i32_0 = arith.constant 0 : i32
    %c0_i32_1 = arith.constant 0 : i32
    return %arg0, %c0_i32, %c0_i32_0 : i32, i32, i32
  }
}

</mosaic_0001>

<bundles_post_ra>
// kernel: cdqn_forward.1
= control target key start
LH: loop header
LB: loop body
LE: loop exit
PB: predicated region body
PF: predicated region fallthrough
CT: control target
= control target key end

     0   :  { %s3513_s17 = smov 0   ;;  %s4235_s0 = inlined_call_operand.vmem [shape: bf16[2,64,256], index: 0, kind: input, shape index: {}]   ;;  %s4236_s1 = inlined_call_operand.vmem [shape: bf16[256,32], index: 1, kind: input, shape index: {}]   ;;  %s4237_s2 = inlined_call_operand.vmem [shape: f32[1,32], index: 2, kind: input, shape index: {}]   ;;  %s4238_s3 = inlined_call_operand.vmem [shape: bf16[16,32,64], index: 3, kind: input, shape index: {}]   ;;  %s4239_s4 = inlined_call_operand.vmem [shape: f32[1,64], index: 4, kind: input, shape index: {}]   ;;  %s4240_s5 = inlined_call_operand.vmem [shape: bf16[9,64,64], index: 5, kind: input, shape index: {}]   ;;  %s4241_s6 = inlined_call_operand.vmem [shape: f32[1,64], index: 6, kind: input, shape index: {}]   ;;  %s4242_s7 = inlined_call_operand.vmem [shape: bf16[64,512], index: 7, kind: input, shape index: {}]   ;;  %s4243_s8 = inlined_call_operand.vmem [shape: f32[1,512], index: 8, kind: input, shape index: {}]   ;;  %s4244_s9 = inlined_call_operand.vmem [shape: bf16[512,32], index: 9, kind: input, shape index: {}]   ;;  %s4245_s10 = inlined_call_operand.vmem [shape: f32[1,32], index: 10, kind: input, shape index: {}]   ;;  %s4246_s11 = inlined_call_operand.vmem [shape: f32[2,1,32], index: 11, kind: output, shape index: {}]  }
   0x1 LB: > { %s2572_s18 = sadd.s32 4294967295, %s3451_s17   ;;  %p2576_p0 = scmp.ge.s32.totalorder %s3451_s17, 1  ;;  %s3451_s17 = sphi %s3513_s17, %s21_s17  }
   0x2   : > { %p337_p1 = scmp.lt.s32.totalorder %s3451_s17, 3 }
   0x4   : > { %p338_p2 = pnand %p2576_p0, %p337_p1 }
   0x5   : > { %p375_p3 = scmp.lt.s32.totalorder (!%p338_p2), %s2572_s18, 1 }
   0x6   : > { %341 = sbr.rel (%p338_p2) target bundleno = 1086 (0x43e), region = 64 }
   0xb   : > { %v3310_v0 = vld [vmem:[%s4236_s1 + $0x38] sm:$0xff]  ;;  %v3309_v2 = vld [vmem:[%s4236_s1 + $0x30] sm:$0xff]  ;;  %v3308_v4 = vld [vmem:[%s4236_s1 + $0x28] sm:$0xff]  ;;  %s4248_s18 = smov (!%p375_p3, %s2572_s18), 1  ;;  %vm630_vm0 = vcmask 261120   ;;  %vm640_vm1 = vcmask 253952  }
   0xc   : > { %v3318_v1 = vld [vmem:[%s4236_s1 + $0x78] sm:$0xff]  ;;  %564 = vmatpush.bf16.msra.mxu0 %v3310_v0  ;;  %v3317_v3 = vld [vmem:[%s4236_s1 + $0x70] sm:$0xff]  ;;  %v3316_v5 = vld [vmem:[%s4236_s1 + $0x68] sm:$0xff]  ;;  %s3294_s26 = sshll.u32 %s4248_s18, 6  ;;  %vm1555_vm2 = vcmask 523264   ;;  %vm1557_vm3 = vcmask 516096   ;;  %s382_s25 = scalar_lea.vmem %s4246_s11, %s4248_s18 }
   0xd   : > { %593 = vmatpush.bf16.msra.mxu1 %v3318_v1  ;;  %v3307_v6 = vld [vmem:[%s4236_s1 + $0x20] sm:$0xff]  ;;  %v3306_v8 = vld [vmem:[%s4236_s1 + $0x18] sm:$0xff]  ;;  %v3305_v10 = vld [vmem:[%s4236_s1 + $0x10] sm:$0xff]  ;;  %s3569_s14 = scalar_lea.vmem %s4235_s0, %s3294_s26 }
   0xe   : > { %v3315_v7 = vld [vmem:[%s4236_s1 + $0x60] sm:$0xff]  ;;  %v3314_v9 = vld [vmem:[%s4236_s1 + $0x58] sm:$0xff]  ;;  %v3313_v11 = vld [vmem:[%s4236_s1 + $0x50] sm:$0xff] }
   0xf   : > { %v3304_v12 = vld [vmem:[%s4236_s1 + $0x8] sm:$0xff]  ;;  %v3303_v14 = vld [vmem:[%s4236_s1] sm:$0xff]  ;;  %v2589_v22 = vld [vmem:[%s3569_s14 + $0x10] sm:$0xf] }
  0x10   : > { %565 = vmatpush.bf16.msra.mxu0 %v3309_v2  ;;  %v3312_v13 = vld [vmem:[%s4236_s1 + $0x48] sm:$0xff]  ;;  %v3311_v15 = vld [vmem:[%s4236_s1 + $0x40] sm:$0xff]  ;;  %v3298_v23 = vld [vmem:[%s3569_s14 + $0x14] sm:$0xf0] }
  0x11   : > { %594 = vmatpush.bf16.msra.mxu1 %v3317_v3  ;;  %v2581_v16 = vld [vmem:[%s3569_s14] sm:$0xf]  ;;  %v3296_v17 = vld [vmem:[%s3569_s14 + $0x4] sm:$0xf0]  ;;  %v3295_v18 = vld [vmem:[%s3569_s14 + $0x4] sm:$0xf]  ;;  %v2590_v26 = vor.u32 %v3298_v23, %v2589_v22 }
  0x12   : > { %v2583_v19 = vld [vmem:[%s3569_s14 + $0x8] sm:$0xf0]  ;;  %v2582_v20 = vor.u32 %v3296_v17, %v2581_v16  ;;  %v3297_v24 = vld [vmem:[%s3569_s14 + $0x14] sm:$0xf]  ;;  %v2591_v25 = vld [vmem:[%s3569_s14 + $0x18] sm:$0xf0] }
  0x13   : > { %v2586_v21 = vor.u32 %v3295_v18, %v2583_v19  ;;  %v2594_v27 = vor.u32 %v3297_v24, %v2591_v25  ;;  %v2597_v28 = vld [vmem:[%s3569_s14 + $0x20] sm:$0xf]  ;;  %v3300_v29 = vld [vmem:[%s3569_s14 + $0x24] sm:$0xf0]  ;;  %v3299_v30 = vld [vmem:[%s3569_s14 + $0x24] sm:$0xf] }
  0x14   : > { %566 = vmatpush.bf16.msra.mxu0 %v3308_v4  ;;  %v2599_v31 = vld [vmem:[%s3569_s14 + $0x28] sm:$0xf0]  ;;  %v2598_v32 = vor.u32 %v3300_v29, %v2597_v28  ;;  %v2605_v34 = vld [vmem:[%s3569_s14 + $0x30] sm:$0xf]  ;;  %v3302_v35 = vld [vmem:[%s3569_s14 + $0x34] sm:$0xf0] }
  0x15   : > { %595 = vmatpush.bf16.msra.mxu1 %v3316_v5  ;;  %v2602_v33 = vor.u32 %v3299_v30, %v2599_v31  ;;  %v3301_v36 = vld [vmem:[%s3569_s14 + $0x34] sm:$0xf]  ;;  %v2607_v37 = vld [vmem:[%s3569_s14 + $0x38] sm:$0xf0]  ;;  %v2606_v38 = vor.u32 %v3302_v35, %v2605_v34  ;;  %v3596_v40 = vld [vmem:[%s4237_s2] ss:$0 sm:$0xff] }
  0x16   : > { %v2610_v39 = vor.u32 %v3301_v36, %v2607_v37  ;;  %v3320_v30 = vld [vmem:[%s4238_s3 + $0x8] sm:$0xff] }
  0x17   : > { %741 = vmatpush.bf16.msra.mxu3 %v3320_v30 }
  0x18   : > { %567 = vmatpush.bf16.msra.mxu0 %v3307_v6 }
  0x19   : > { %596 = vmatpush.bf16.msra.mxu1 %v3315_v7 }
  0x1c   : > { %568 = vmatpush.bf16.msra.mxu0 %v3306_v8 }
  0x1d   : > { %597 = vmatpush.bf16.msra.mxu1 %v3314_v9 }
  0x20   : > { %569 = vmatpush.bf16.msra.mxu0 %v3305_v10 }
  0x21   : > { %598 = vmatpush.bf16.msra.mxu1 %v3313_v11 }
  0x24   : > { %570 = vmatpush.bf16.msra.mxu0 %v3304_v12 }
  0x25   : > { %599 = vmatpush.bf16.msra.mxu1 %v3312_v13 }
  0x28   : > { %571 = vmatpush.bf16.msra.mxu0 %v3303_v14 }
  0x29   : > { %600 = vmatpush.bf16.msra.mxu1 %v3311_v15 }
  0x2b   : > { %572 = vmatmul.bf16.vlgmr.msra.gmra.mxu0 %v2582_v20 }
  0x2c   : > { %601 = vmatmul.bf16.vlgmr.msra.gmra.mxu1 %v2586_v21 }
  0x3b   : > { %577 = vmatmul.bf16.gmra.mxu0 %v2590_v26 }
  0x3c   : > { %606 = vmatmul.bf16.gmra.mxu1 %v2594_v27 }
  0x4b   : > { %582 = vmatmul.bf16.gmra.mxu0 %v2598_v32 }
  0x4c   : > { %611 = vmatmul.bf16.gmra.mxu1 %v2602_v33 }
  0x5b   : > { %587 = vmatmul.bf16.gmra.mxu0 %v2606_v38 }
  0x5c   : > { %616 = vmatmul.bf16.gmra.mxu1 %v2610_v39  ;;  %v3319_v39 = vld [vmem:[%s4238_s3] sm:$0xff] }
  0x5d   : > { %742 = vmatpush.bf16.msra.mxu3 %v3319_v39 }
  0xa8   : > { %v573_v41 = vpop.f32.mrf.mxu0 }
  0xa9   : > { %v602_v42 = vpop.f32.mrf.mxu1  ;;  %v574_v43 = vadd.f32 %v3596_v40, %v573_v41 }
  0xab   : > { %v603_v44 = vadd.f32 %v602_v42, %v574_v43  ;;  %v3322_v42 = vld [vmem:[%s4238_s3 + $0x18] sm:$0xff] }
  0xac   : > { %712 = vmatpush.bf16.msra.mxu2 %v3322_v42 }
  0xad   : > { %v622_v45 = vmax.f32 %v603_v44, 0.0 }
  0xaf   : > { %631 = vst.msk [vmem:[#allocation2] sm:$0xff] %vm630_vm0, %v622_v45  ;;  %v3321_v45 = vld [vmem:[%s4238_s3 + $0x10] sm:$0xff] }
  0xb0   : > { %v575_v46 = vpop.f32.mrf.mxu0  ;;  %713 = vmatpush.bf16.msra.mxu2 %v3321_v45 }
  0xb1   : > { %v604_v47 = vpop.f32.mrf.mxu1  ;;  %v576_v48 = vadd.f32 %v3596_v40, %v575_v46 }
  0xb3   : > { %v605_v49 = vadd.f32 %v604_v47, %v576_v48 }
  0xb5   : > { %v623_v53 = vmax.f32 %v605_v49, 0.0 }
  0xb6   : > { %v639_v50 = vld [vmem:[#allocation2] sm:$0x1]  ;;  %v642_v51 = vld [vmem:[#allocation2 + $0x2] sm:$0x1]  ;;  %v644_v52 = vld [vmem:[#allocation2 + $0x4] sm:$0x1] }
  0xb7   : > { %641 = vst.msk [vmem:[#allocation4] sm:$0x1] %vm640_vm1, %v639_v50  ;;  %v665_v13 = vld [vmem:[#allocation2 + $0x1] sm:$0x1]  ;;  %v667_v15 = vld [vmem:[#allocation2 + $0x3] sm:$0x1] }
  0xb8   : > { %643 = vst.msk [vmem:[#allocation4 + $0x1] sm:$0x1] %vm640_vm1, %v642_v51  ;;  %v578_v54 = vpop.f32.mrf.mxu0  ;;  %v669_v17 = vld [vmem:[#allocation2 + $0x5] sm:$0x1]  ;;  %v749_v27 = vld [vmem:[#allocation2 + $0x2] sm:$0x1] }
  0xb9   : > { %v607_v55 = vpop.f32.mrf.mxu1  ;;  %645 = vst.msk [vmem:[#allocation4 + $0x2] sm:$0x1] %vm640_vm1, %v644_v52  ;;  %v579_v56 = vadd.f32 %v3596_v40, %v578_v54  ;;  %v751_v29 = vld [vmem:[#allocation2 + $0x4] sm:$0x1]  ;;  %v753_v31 = vld [vmem:[#allocation2 + $0x6] sm:$0x1] }
  0xba   : > { %632 = vst.msk [vmem:[#allocation2 + $0x8] sm:$0xff] %vm630_vm0, %v623_v53  ;;  %v806_v43 = vld [vmem:[#allocation2 + $0x3] sm:$0x1]  ;;  %v808_v46 = vld [vmem:[#allocation2 + $0x5] sm:$0x1] }
  0xbb   : > { %v608_v57 = vadd.f32 %v607_v55, %v579_v56  ;;  %v810_v47 = vld [vmem:[#allocation2 + $0x7] sm:$0x1]  ;;  %v3324_v56 = vld [vmem:[%s4238_s3 + $0x28] sm:$0xff] }
  0xbc   : > { %796 = vmatpush.bf16.msrb.mxu2 %v3324_v56 }
  0xbd   : > { %v624_v58 = vmax.f32 %v608_v57, 0.0  ;;  %v3326_v57 = vld [vmem:[%s4238_s3 + $0x38] sm:$0xff] }
  0xbe   : > { %853 = vmatpush.bf16.msrb.mxu3 %v3326_v57 }
  0xbf   : > { %633 = vst.msk [vmem:[#allocation2 + $0x10] sm:$0xff] %vm630_vm0, %v624_v58  ;;  %v3323_v58 = vld [vmem:[%s4238_s3 + $0x20] sm:$0xff] }
  0xc0   : > { %v580_v59 = vpop.f32.mrf.mxu0  ;;  %797 = vmatpush.bf16.msrb.mxu2 %v3323_v58 }
  0xc1   : > { %v609_v60 = vpop.f32.mrf.mxu1  ;;  %v581_v0 = vadd.f32 %v3596_v40, %v580_v59  ;;  %v3325_v59 = vld [vmem:[%s4238_s3 + $0x30] sm:$0xff] }
  0xc2   : > { %854 = vmatpush.bf16.msrb.mxu3 %v3325_v59 }
  0xc3   : > { %v610_v4 = vadd.f32 %v609_v60, %v581_v0  ;;  %v863_v60 = vld [vmem:[#allocation2 + $0x8] sm:$0x1]  ;;  %v867_v0 = vld [vmem:[#allocation2 + $0xc] sm:$0x1] }
  0xc5   : > { %v625_v6 = vmax.f32 %v610_v4, 0.0 }
  0xc6   : > { %v646_v61 = vld [vmem:[#allocation2 + $0x10] sm:$0x1]  ;;  %v648_v62 = vld [vmem:[#allocation2 + $0x12] sm:$0x1]  ;;  %v650_v63 = vld [vmem:[#allocation2 + $0x14] sm:$0x1] }
  0xc7   : > { %647 = vst.msk [vmem:[#allocation4 + $0x3] sm:$0x1] %vm640_vm1, %v646_v61  ;;  %v671_v19 = vld [vmem:[#allocation2 + $0x11] sm:$0x1]  ;;  %v673_v20 = vld [vmem:[#allocation2 + $0x13] sm:$0x1] }
  0xc8   : > { %649 = vst.msk [vmem:[#allocation4 + $0x4] sm:$0x1] %vm640_vm1, %v648_v62  ;;  %v583_v1 = vpop.f32.mrf.mxu0  ;;  %v675_v21 = vld [vmem:[#allocation2 + $0x15] sm:$0x1]  ;;  %v755_v32 = vld [vmem:[#allocation2 + $0x12] sm:$0x1] }
  0xc9   : > { %651 = vst.msk [vmem:[#allocation4 + $0x5] sm:$0x1] %vm640_vm1, %v650_v63  ;;  %v584_v2 = vadd.f32 %v3596_v40, %v583_v1  ;;  %v612_v3 = vpop.f32.mrf.mxu1  ;;  %v757_v33 = vld [vmem:[#allocation2 + $0x14] sm:$0x1]  ;;  %v759_v34 = vld [vmem:[#allocation2 + $0x16] sm:$0x1] }
  0xca   : > { %634 = vst.msk [vmem:[#allocation2 + $0x18] sm:$0xff] %vm630_vm0, %v625_v6  ;;  %v812_v48 = vld [vmem:[#allocation2 + $0x13] sm:$0x1]  ;;  %v814_v50 = vld [vmem:[#allocation2 + $0x15] sm:$0x1] }
  0xcb   : > { %v613_v5 = vadd.f32 %v612_v3, %v584_v2  ;;  %v816_v51 = vld [vmem:[#allocation2 + $0x17] sm:$0x1]  ;;  %v865_v62 = vld [vmem:[#allocation2 + $0xa] sm:$0x1]  ;;  %v1091_v56 = vld [vmem:[#allocation2 + $0x10] sm:$0x1] }
  0xcc   : > { %v1093_v58 = vld [vmem:[#allocation2 + $0x12] sm:$0x1]  ;;  %v1095_v59 = vld [vmem:[#allocation2 + $0x14] sm:$0x1] }
  0xcd   : > { %v626_v7 = vmax.f32 %v613_v5, 0.0 }
  0xcf   : > { %635 = vst.msk [vmem:[#allocation2 + $0x20] sm:$0xff] %vm630_vm0, %v626_v7 }
  0xd0   : > { %v585_v11 = vpop.f32.mrf.mxu0 }
  0xd1   : > { %v586_v12 = vadd.f32 %v3596_v40, %v585_v11  ;;  %v614_v16 = vpop.f32.mrf.mxu1  ;;  %v869_v2 = vld [vmem:[#allocation2 + $0x18] sm:$0x1]  ;;  %v871_v3 = vld [vmem:[#allocation2 + $0x1a] sm:$0x1]  ;;  %v873_v4 = vld [vmem:[#allocation2 + $0x1c] sm:$0x1] }
  0xd2   : > { %v922_v11 = vld [vmem:[#allocation2 + $0xb] sm:$0x1] }
  0xd3   : > { %v615_v18 = vadd.f32 %v614_v16, %v586_v12  ;;  %v924_v12 = vld [vmem:[#allocation2 + $0xd] sm:$0x1]  ;;  %v930_v16 = vld [vmem:[#allocation2 + $0x1d] sm:$0x1] }
  0xd5   : > { %v627_v24 = vmax.f32 %v615_v18, 0.0 }
  0xd6   : > { %v652_v8 = vld [vmem:[#allocation2 + $0x20] sm:$0x1]  ;;  %v654_v9 = vld [vmem:[#allocation2 + $0x22] sm:$0x1]  ;;  %v656_v10 = vld [vmem:[#allocation2 + $0x24] sm:$0x1] }
  0xd7   : > { %653 = vst.msk [vmem:[#allocation4 + $0x6] sm:$0x1] %vm640_vm1, %v652_v8  ;;  %v677_v22 = vld [vmem:[#allocation2 + $0x21] sm:$0x1]  ;;  %v679_v25 = vld [vmem:[#allocation2 + $0x23] sm:$0x1] }
  0xd8   : > { %655 = vst.msk [vmem:[#allocation4 + $0x7] sm:$0x1] %vm640_vm1, %v654_v9  ;;  %v681_v26 = vld [vmem:[#allocation2 + $0x25] sm:$0x1]  ;;  %v761_v36 = vld [vmem:[#allocation2 + $0x22] sm:$0x1] }
  0xd9   : > { %657 = vst.msk [vmem:[#allocation4 + $0x8] sm:$0x1] %vm640_vm1, %v656_v10  ;;  %v763_v37 = vld [vmem:[#allocation2 + $0x24] sm:$0x1]  ;;  %v765_v38 = vld [vmem:[#allocation2 + $0x26] sm:$0x1] }
  0xda   : > { %636 = vst.msk [vmem:[#allocation2 + $0x28] sm:$0xff] %vm630_vm0, %v627_v24  ;;  %v818_v53 = vld [vmem:[#allocation2 + $0x23] sm:$0x1]  ;;  %v820_v54 = vld [vmem:[#allocation2 + $0x25] sm:$0x1] }
  0xdb   : > { %v822_v55 = vld [vmem:[#allocation2 + $0x27] sm:$0x1]  ;;  %v920_v9 = vld [vmem:[#allocation2 + $0x9] sm:$0x1] }
  0xdf   : > { %v658_v14 = vld [vmem:[#allocation4] sm:$0xff] }
  0xe0   : > { %666 = vst.msk [vmem:[#allocation4] sm:$0x1] %vm640_vm1, %v665_v13  ;;  %v659_v23 = vld [vmem:[#allocation4 + $0x8] sm:$0x1]  ;;  %v926_v13 = vld [vmem:[#allocation2 + $0x19] sm:$0x1] }
  0xe1   : > { %668 = vst.msk [vmem:[#allocation4 + $0x1] sm:$0x1] %vm640_vm1, %v667_v15  ;;  %v660_v41 = vpack.c.bf16 %v659_v23, %v658_v14  ;;  %v875_v5 = vld [vmem:[#allocation2 + $0x28] sm:$0x1]  ;;  %v877_v7 = vld [vmem:[#allocation2 + $0x2a] sm:$0x1]  ;;  %v588_v15 = vpop.f32.mrf.mxu0 }
  0xe2   : > { %670 = vst.msk [vmem:[#allocation4 + $0x2] sm:$0x1] %vm640_vm1, %v669_v17  ;;  %v879_v8 = vld [vmem:[#allocation2 + $0x2c] sm:$0x1]  ;;  %v928_v14 = vld [vmem:[#allocation2 + $0x1b] sm:$0x1]  ;;  %v589_v17 = vadd.f32 %v3596_v40, %v588_v15 }
  0xe3   : > { %672 = vst.msk [vmem:[#allocation4 + $0x3] sm:$0x1] %vm640_vm1, %v671_v19  ;;  %2696 = vmatmul.msk.bf16.vlgmr.msra.gmra.mxu3 %vm630_vm0, %v660_v41  ;;  %v932_v18 = vld [vmem:[#allocation2 + $0x29] sm:$0x1]  ;;  %v617_v19 = vpop.f32.mrf.mxu1  ;;  %v977_v23 = vld [vmem:[#allocation2 + $0xa] sm:$0x1] }
  0xe4   : > { %674 = vst.msk [vmem:[#allocation4 + $0x4] sm:$0x1] %vm640_vm1, %v673_v20  ;;  %v934_v20 = vld [vmem:[#allocation2 + $0x2b] sm:$0x1]  ;;  %v989_v30 = vld [vmem:[#allocation2 + $0x2a] sm:$0x1] }
  0xe5   : > { %676 = vst.msk [vmem:[#allocation4 + $0x5] sm:$0x1] %vm640_vm1, %v675_v21  ;;  %v618_v21 = vadd.f32 %v617_v19, %v589_v17  ;;  %v1036_v41 = vld [vmem:[#allocation2 + $0xd] sm:$0x1]  ;;  %v1156_v15 = vld [vmem:[#allocation2 + $0x23] sm:$0x1] }
  0xe6   : > { %678 = vst.msk [vmem:[#allocation4 + $0x6] sm:$0x1] %vm640_vm1, %v677_v22  ;;  %v3336_v17 = vld [vmem:[%s4238_s3 + $0x88] sm:$0xff] }
  0xe7   : > { %680 = vst.msk [vmem:[#allocation4 + $0x7] sm:$0x1] %vm640_vm1, %v679_v25  ;;  %v628_v22 = vmax.f32 %v618_v21, 0.0  ;;  %v979_v25 = vld [vmem:[#allocation2 + $0xc] sm:$0x1] }
  0xe8   : > { %682 = vst.msk [vmem:[#allocation4 + $0x8] sm:$0x1] %vm640_vm1, %v681_v26  ;;  %v981_v26 = vld [vmem:[#allocation2 + $0xe] sm:$0x1] }
  0xe9   : > { %637 = vst.msk [vmem:[#allocation2 + $0x30] sm:$0xff] %vm630_vm0, %v628_v22  ;;  %v590_v45 = vpop.f32.mrf.mxu0  ;;  %v3335_v22 = vld [vmem:[%s4238_s3 + $0x80] sm:$0xff] }
  0xee   : > { %v683_v28 = vld [vmem:[#allocation4] sm:$0xff] }
  0xef   : > { %750 = vst.msk [vmem:[#allocation4] sm:$0x1] %vm640_vm1, %v749_v27  ;;  %v684_v35 = vld [vmem:[#allocation4 + $0x8] sm:$0x1]  ;;  %v983_v27 = vld [vmem:[#allocation2 + $0x1a] sm:$0x1] }
  0xf0   : > { %752 = vst.msk [vmem:[#allocation4 + $0x1] sm:$0x1] %vm640_vm1, %v751_v29  ;;  %v685_v49 = vpack.c.bf16 %v684_v35, %v683_v28  ;;  %v985_v28 = vld [vmem:[#allocation2 + $0x1c] sm:$0x1]  ;;  %v987_v29 = vld [vmem:[#allocation2 + $0x1e] sm:$0x1] }
  0xf1   : > { %754 = vst.msk [vmem:[#allocation4 + $0x2] sm:$0x1] %vm640_vm1, %v753_v31  ;;  %v991_v31 = vld [vmem:[#allocation2 + $0x2c] sm:$0x1]  ;;  %v3330_v35 = vld [vmem:[%s4238_s3 + $0x58] sm:$0xff] }
  0xf2   : > { %756 = vst.msk [vmem:[#allocation4 + $0x3] sm:$0x1] %vm640_vm1, %v755_v32  ;;  %2687 = vmatmul.msk.bf16.vlgmr.msra.gmra.mxu2 %vm630_vm0, %v685_v49  ;;  %967 = vmatpush.bf16.msra.mxu3 %v3330_v35  ;;  %v1042_v49 = vld [vmem:[#allocation2 + $0x1d] sm:$0x1]  ;;  %v1107_v19 = vld [vmem:[#allocation2 + $0x34] sm:$0x1] }
  0xf3   : > { %758 = vst.msk [vmem:[#allocation4 + $0x4] sm:$0x1] %vm640_vm1, %v757_v33  ;;  %v936_v33 = vld [vmem:[#allocation2 + $0x2d] sm:$0x1]  ;;  %v1162_v21 = vld [vmem:[#allocation2 + $0x33] sm:$0x1] }
  0xf4   : > { %760 = vst.msk [vmem:[#allocation4 + $0x5] sm:$0x1] %vm640_vm1, %v759_v34  ;;  %v3328_v34 = vld [vmem:[%s4238_s3 + $0x48] sm:$0xff]  ;;  %v3342_v35 = vld [vmem:[%s4238_s3 + $0xb8] sm:$0xff] }
  0xf5   : > { %762 = vst.msk [vmem:[#allocation4 + $0x6] sm:$0x1] %vm640_vm1, %v761_v36  ;;  %910 = vmatpush.bf16.msra.mxu2 %v3328_v34  ;;  %v3327_v36 = vld [vmem:[%s4238_s3 + $0x40] sm:$0xff]  ;;  %v3340_v34 = vld [vmem:[%s4238_s3 + $0xa8] sm:$0xff] }
  0xf6   : > { %764 = vst.msk [vmem:[#allocation4 + $0x7] sm:$0x1] %vm640_vm1, %v763_v37  ;;  %v3329_v37 = vld [vmem:[%s4238_s3 + $0x50] sm:$0xff] }
  0xf7   : > { %766 = vst.msk [vmem:[#allocation4 + $0x8] sm:$0x1] %vm640_vm1, %v765_v38  ;;  %v1034_v38 = vld [vmem:[#allocation2 + $0xb] sm:$0x1]  ;;  %968 = vmatpush.bf16.msra.mxu3 %v3329_v37  ;;  %v1164_v37 = vld [vmem:[#allocation2 + $0x35] sm:$0x1] }
  0xf9   : > { %911 = vmatpush.bf16.msra.mxu2 %v3327_v36  ;;  %v1219_v36 = vld [vmem:[#allocation2 + $0x34] sm:$0x1] }
  0xfd   : > { %v767_v44 = vld [vmem:[#allocation4] sm:$0xff] }
  0xfe   : > { %807 = vst.msk [vmem:[#allocation4] sm:$0x1] %vm640_vm1, %v806_v43  ;;  %v768_v52 = vld [vmem:[#allocation4 + $0x8] sm:$0x1] }
  0xff   : > { %809 = vst.msk [vmem:[#allocation4 + $0x1] sm:$0x1] %vm640_vm1, %v808_v46  ;;  %v769_v6 = vpack.c.bf16 %v768_v52, %v767_v44  ;;  %v1038_v44 = vld [vmem:[#allocation2 + $0xf] sm:$0x1] }
 0x100   : > { %811 = vst.msk [vmem:[#allocation4 + $0x2] sm:$0x1] %vm640_vm1, %v810_v47  ;;  %v1040_v47 = vld [vmem:[#allocation2 + $0x1b] sm:$0x1] }
 0x101   : > { %813 = vst.msk [vmem:[#allocation4 + $0x3] sm:$0x1] %vm640_vm1, %v812_v48  ;;  %v591_v48 = vadd.f32 %v3596_v40, %v590_v45  ;;  %v993_v40 = vld [vmem:[#allocation2 + $0x2e] sm:$0x1] }
 0x102   : > { %815 = vst.msk [vmem:[#allocation4 + $0x4] sm:$0x1] %vm640_vm1, %v814_v50  ;;  %2709 = vmatmul.msk.bf16.vlgmr.msrb.gmra.mxu2 %vm630_vm0, %v769_v6  ;;  %v619_v50 = vpop.f32.mrf.mxu1  ;;  %v3333_v6 = vld [vmem:[%s4238_s3 + $0x70] sm:$0xff] }
 0x103   : > { %817 = vst.msk [vmem:[#allocation4 + $0x5] sm:$0x1] %vm640_vm1, %v816_v51  ;;  %v1044_v51 = vld [vmem:[#allocation2 + $0x1f] sm:$0x1]  ;;  %v620_v52 = vadd.f32 %v619_v50, %v591_v48  ;;  %v1268_v48 = vld [vmem:[#allocation2 + $0x23] sm:$0x1] }
 0x104   : > { %819 = vst.msk [vmem:[#allocation4 + $0x6] sm:$0x1] %vm640_vm1, %v818_v53  ;;  %v1046_v53 = vld [vmem:[#allocation2 + $0x2b] sm:$0x1]  ;;  %v1272_v50 = vld [vmem:[#allocation2 + $0x27] sm:$0x1] }
 0x105   : > { %821 = vst.msk [vmem:[#allocation4 + $0x7] sm:$0x1] %vm640_vm1, %v820_v54  ;;  %v1048_v54 = vld [vmem:[#allocation2 + $0x2d] sm:$0x1] }
 0x106   : > { %823 = vst.msk [vmem:[#allocation4 + $0x8] sm:$0x1] %vm640_vm1, %v822_v55  ;;  %v629_v55 = vmax.f32 %v620_v52, 0.0  ;;  %v3346_v52 = vld [vmem:[%s4238_s3 + $0xd8] sm:$0xff] }
 0x107   : > { %1423 = vmatpush.bf16.msrb.mxu1 %v3346_v52 }
 0x108   : > { %638 = vst.msk [vmem:[#allocation2 + $0x38] sm:$0xff] %vm630_vm0, %v629_v55  ;;  %v1221_v55 = vld [vmem:[#allocation2 + $0x36] sm:$0x1] }
 0x10c   : > { %v824_v61 = vld [vmem:[#allocation4] sm:$0xff] }
 0x10d   : > { %v825_v63 = vld [vmem:[#allocation4 + $0x8] sm:$0x1]  ;;  %864 = vst.msk [vmem:[#allocation4] sm:$0x1] %vm640_vm1, %v863_v60  ;;  %v1097_v60 = vld [vmem:[#allocation2 + $0x20] sm:$0x1] }
 0x10e   : > { %866 = vst.msk [vmem:[#allocation4 + $0x1] sm:$0x1] %vm640_vm1, %v865_v62  ;;  %v826_v1 = vpack.c.bf16 %v825_v63, %v824_v61  ;;  %v1099_v61 = vld [vmem:[#allocation2 + $0x22] sm:$0x1]  ;;  %v1103_v62 = vld [vmem:[#allocation2 + $0x30] sm:$0x1] }
 0x10f   : > { %868 = vst.msk [vmem:[#allocation4 + $0x2] sm:$0x1] %vm640_vm1, %v867_v0  ;;  %v1101_v63 = vld [vmem:[#allocation2 + $0x24] sm:$0x1]  ;;  %v1105_v0 = vld [vmem:[#allocation2 + $0x32] sm:$0x1] }
 0x110   : > { %870 = vst.msk [vmem:[#allocation4 + $0x3] sm:$0x1] %vm640_vm1, %v869_v2  ;;  %2722 = vmatmul.msk.bf16.vlgmr.msrb.gmra.mxu3 %vm630_vm0, %v826_v1  ;;  %v3332_v1 = vld [vmem:[%s4238_s3 + $0x68] sm:$0xff]  ;;  %v3334_v2 = vld [vmem:[%s4238_s3 + $0x78] sm:$0xff] }
 0x111   : > { %872 = vst.msk [vmem:[#allocation4 + $0x4] sm:$0x1] %vm640_vm1, %v871_v3  ;;  %v1050_v3 = vld [vmem:[#allocation2 + $0x2f] sm:$0x1]  ;;  %1024 = vmatpush.bf16.msrb.mxu2 %v3332_v1  ;;  %1081 = vmatpush.bf16.msrb.mxu3 %v3334_v2  ;;  %v1329_v1 = vld [vmem:[#allocation2 + $0x2c] sm:$0x1] }
 0x112   : > { %874 = vst.msk [vmem:[#allocation4 + $0x5] sm:$0x1] %vm640_vm1, %v873_v4  ;;  %v1331_v2 = vld [vmem:[#allocation2 + $0x38] sm:$0x1]  ;;  %v1504_v52 = vld [vmem:[#allocation2 + $0x3d] sm:$0x1] }
 0x113   : > { %876 = vst.msk [vmem:[#allocation4 + $0x6] sm:$0x1] %vm640_vm1, %v875_v5  ;;  %v3331_v5 = vld [vmem:[%s4238_s3 + $0x60] sm:$0xff] }
 0x114   : > { %878 = vst.msk [vmem:[#allocation4 + $0x7] sm:$0x1] %vm640_vm1, %v877_v7  ;;  %v1148_v7 = vld [vmem:[#allocation2 + $0x11] sm:$0x1] }
 0x115   : > { %880 = vst.msk [vmem:[#allocation4 + $0x8] sm:$0x1] %vm640_vm1, %v879_v8  ;;  %1025 = vmatpush.bf16.msrb.mxu2 %v3331_v5  ;;  %1082 = vmatpush.bf16.msrb.mxu3 %v3333_v6  ;;  %v3350_v5 = vld [vmem:[%s4238_s3 + $0xf8] sm:$0xff]  ;;  %v3347_v6 = vld [vmem:[%s4238_s3 + $0xe0] sm:$0xff] }
 0x11b   : > { %v3683_v10 = vld [vmem:[#allocation4] sm:$0xff] }
 0x11c   : > { %921 = vst.msk [vmem:[#allocation4] sm:$0x1] %vm640_vm1, %v920_v9  ;;  %v882_v32 = vld [vmem:[#allocation4 + $0x8] sm:$0x1] }
 0x11d   : > { %923 = vst.msk [vmem:[#allocation4 + $0x1] sm:$0x1] %vm640_vm1, %v922_v11  ;;  %v883_v42 = vpack.c.bf16 %v882_v32, %v3683_v10  ;;  %v1150_v10 = vld [vmem:[#allocation2 + $0x13] sm:$0x1]  ;;  %v1152_v11 = vld [vmem:[#allocation2 + $0x15] sm:$0x1] }
 0x11e   : > { %925 = vst.msk [vmem:[#allocation4 + $0x2] sm:$0x1] %vm640_vm1, %v924_v12  ;;  %v1215_v32 = vld [vmem:[#allocation2 + $0x26] sm:$0x1] }
 0x11f   : > { %927 = vst.msk [vmem:[#allocation4 + $0x3] sm:$0x1] %vm640_vm1, %v926_v13  ;;  %2735 = vmatmul.msk.bf16.vlgmr.msra.gmra.mxu2 %vm630_vm0, %v883_v42  ;;  %v1154_v13 = vld [vmem:[#allocation2 + $0x21] sm:$0x1]  ;;  %v1262_v42 = vld [vmem:[#allocation2 + $0x13] sm:$0x1] }
 0x120   : > { %929 = vst.msk [vmem:[#allocation4 + $0x4] sm:$0x1] %vm640_vm1, %v928_v14  ;;  %1138 = vmatpush.bf16.msra.mxu2 %v3336_v17  ;;  %v1386_v17 = vld [vmem:[#allocation2 + $0x2d] sm:$0x1] }
 0x121   : > { %931 = vst.msk [vmem:[#allocation4 + $0x5] sm:$0x1] %vm640_vm1, %v930_v16  ;;  %v1158_v16 = vld [vmem:[#allocation2 + $0x25] sm:$0x1] }
 0x122   : > { %933 = vst.msk [vmem:[#allocation4 + $0x6] sm:$0x1] %vm640_vm1, %v932_v18  ;;  %v3338_v18 = vld [vmem:[%s4238_s3 + $0x98] sm:$0xff] }
 0x123   : > { %935 = vst.msk [vmem:[#allocation4 + $0x7] sm:$0x1] %vm640_vm1, %v934_v20  ;;  %v1160_v20 = vld [vmem:[#allocation2 + $0x31] sm:$0x1] }
 0x124   : > { %937 = vst.msk [vmem:[#allocation4 + $0x8] sm:$0x1] %vm640_vm1, %v936_v33  ;;  %1139 = vmatpush.bf16.msra.mxu2 %v3335_v22  ;;  %v1217_v33 = vld [vmem:[#allocation2 + $0x32] sm:$0x1]  ;;  %v1392_v22 = vld [vmem:[#allocation2 + $0x3d] sm:$0x1] }
 0x12a   : > { %v938_v24 = vld [vmem:[#allocation4] sm:$0xff] }
 0x12b   : > { %978 = vst.msk [vmem:[#allocation4] sm:$0x1] %vm640_vm1, %v977_v23  ;;  %v939_v43 = vld [vmem:[#allocation4 + $0x8] sm:$0x1]  ;;  %v3337_v23 = vld [vmem:[%s4238_s3 + $0x90] sm:$0xff] }
 0x12c   : > { %980 = vst.msk [vmem:[#allocation4 + $0x1] sm:$0x1] %vm640_vm1, %v979_v25  ;;  %v940_v46 = vpack.c.bf16 %v939_v43, %v938_v24  ;;  %v1205_v24 = vld [vmem:[#allocation2 + $0x12] sm:$0x1] }
 0x12d   : > { %982 = vst.msk [vmem:[#allocation4 + $0x2] sm:$0x1] %vm640_vm1, %v981_v26  ;;  %v1207_v26 = vld [vmem:[#allocation2 + $0x14] sm:$0x1] }
 0x12e   : > { %984 = vst.msk [vmem:[#allocation4 + $0x3] sm:$0x1] %vm640_vm1, %v983_v27  ;;  %2748 = vmatmul.msk.bf16.vlgmr.msra.gmra.mxu3 %vm630_vm0, %v940_v46  ;;  %v1266_v46 = vld [vmem:[#allocation2 + $0x17] sm:$0x1] }
 0x12f   : > { %986 = vst.msk [vmem:[#allocation4 + $0x4] sm:$0x1] %vm640_vm1, %v985_v28  ;;  %1195 = vmatpush.bf16.msra.mxu3 %v3338_v18  ;;  %v1209_v28 = vld [vmem:[#allocation2 + $0x16] sm:$0x1]  ;;  %v1335_v18 = vld [vmem:[#allocation2 + $0x3c] sm:$0x1] }
 0x130   : > { %988 = vst.msk [vmem:[#allocation4 + $0x5] sm:$0x1] %vm640_vm1, %v987_v29 }
 0x131   : > { %990 = vst.msk [vmem:[#allocation4 + $0x6] sm:$0x1] %vm640_vm1, %v989_v30  ;;  %v1211_v30 = vld [vmem:[#allocation2 + $0x22] sm:$0x1] }
 0x132   : > { %992 = vst.msk [vmem:[#allocation4 + $0x7] sm:$0x1] %vm640_vm1, %v991_v31  ;;  %v1213_v31 = vld [vmem:[#allocation2 + $0x24] sm:$0x1] }
 0x133   : > { %994 = vst.msk [vmem:[#allocation4 + $0x8] sm:$0x1] %vm640_vm1, %v993_v40  ;;  %1196 = vmatpush.bf16.msra.mxu3 %v3337_v23  ;;  %v3345_v40 = vld [vmem:[%s4238_s3 + $0xd0] sm:$0xff] }
 0x134   : > { %1424 = vmatpush.bf16.msrb.mxu1 %v3345_v40 }
 0x139   : > { %v3716_v39 = vld [vmem:[#allocation4] sm:$0xff] }
 0x13a   : > { %1035 = vst.msk [vmem:[#allocation4] sm:$0x1] %vm640_vm1, %v1034_v38  ;;  %v996_v4 = vld [vmem:[#allocation4 + $0x8] sm:$0x1]  ;;  %v3339_v38 = vld [vmem:[%s4238_s3 + $0xa0] sm:$0xff] }
 0x13b   : > { %1037 = vst.msk [vmem:[#allocation4 + $0x1] sm:$0x1] %vm640_vm1, %v1036_v41  ;;  %v997_v9 = vpack.c.bf16 %v996_v4, %v3716_v39  ;;  %v3341_v39 = vld [vmem:[%s4238_s3 + $0xb0] sm:$0xff]  ;;  %v3344_v41 = vld [vmem:[%s4238_s3 + $0xc8] sm:$0xff] }
 0x13c   : > { %1039 = vst.msk [vmem:[#allocation4 + $0x2] sm:$0x1] %vm640_vm1, %v1038_v44  ;;  %v1264_v44 = vld [vmem:[#allocation2 + $0x15] sm:$0x1]  ;;  %1366 = vmatpush.bf16.msrb.mxu0 %v3344_v41  ;;  %v1278_v4 = vld [vmem:[#allocation2 + $0x37] sm:$0x1] }
 0x13d   : > { %1041 = vst.msk [vmem:[#allocation4 + $0x3] sm:$0x1] %vm640_vm1, %v1040_v47  ;;  %2761 = vmatmul.msk.bf16.vlgmr.msrb.gmra.mxu2 %vm630_vm0, %v997_v9  ;;  %v1390_v9 = vld [vmem:[#allocation2 + $0x3b] sm:$0x1] }
 0x13e   : > { %1043 = vst.msk [vmem:[#allocation4 + $0x4] sm:$0x1] %vm640_vm1, %v1042_v49  ;;  %1252 = vmatpush.bf16.msrb.mxu2 %v3340_v34  ;;  %v1270_v49 = vld [vmem:[#allocation2 + $0x25] sm:$0x1]  ;;  %v1447_v34 = vld [vmem:[#allocation2 + $0x3c] sm:$0x1] }
 0x13f   : > { %1045 = vst.msk [vmem:[#allocation4 + $0x5] sm:$0x1] %vm640_vm1, %v1044_v51  ;;  %v1274_v51 = vld [vmem:[#allocation2 + $0x33] sm:$0x1] }
 0x140   : > { %1047 = vst.msk [vmem:[#allocation4 + $0x6] sm:$0x1] %vm640_vm1, %v1046_v53  ;;  %v1276_v53 = vld [vmem:[#allocation2 + $0x35] sm:$0x1] }
 0x141   : > { %1049 = vst.msk [vmem:[#allocation4 + $0x7] sm:$0x1] %vm640_vm1, %v1048_v54  ;;  %v3343_v54 = vld [vmem:[%s4238_s3 + $0xc0] sm:$0xff] }
 0x142   : > { %1051 = vst.msk [vmem:[#allocation4 + $0x8] sm:$0x1] %vm640_vm1, %v1050_v3  ;;  %1253 = vmatpush.bf16.msrb.mxu2 %v3339_v38  ;;  %1367 = vmatpush.bf16.msrb.mxu0 %v3343_v54  ;;  %v1333_v3 = vld [vmem:[#allocation2 + $0x3a] sm:$0x1] }
 0x148   : > { %v1052_v57 = vld [vmem:[#allocation4] sm:$0xff] }
 0x149   : > { %1092 = vst.msk [vmem:[#allocation4] sm:$0x1] %vm640_vm1, %v1091_v56  ;;  %v1053_v12 = vld [vmem:[#allocation4 + $0x8] sm:$0x1] }
 0x14a   : > { %1094 = vst.msk [vmem:[#allocation4 + $0x1] sm:$0x1] %vm640_vm1, %v1093_v58  ;;  %v1054_v14 = vpack.c.bf16 %v1053_v12, %v1052_v57  ;;  %v1319_v56 = vld [vmem:[#allocation2 + $0x18] sm:$0x1]  ;;  %v1321_v58 = vld [vmem:[#allocation2 + $0x1a] sm:$0x1] }
 0x14b   : > { %1096 = vst.msk [vmem:[#allocation4 + $0x2] sm:$0x1] %vm640_vm1, %v1095_v59 }
 0x14c   : > { %1098 = vst.msk [vmem:[#allocation4 + $0x3] sm:$0x1] %vm640_vm1, %v1097_v60  ;;  %2774 = vmatmul.msk.bf16.vlgmr.msrb.gmra.mxu3 %vm630_vm0, %v1054_v14  ;;  %v1323_v60 = vld [vmem:[#allocation2 + $0x1c] sm:$0x1]  ;;  %v1380_v14 = vld [vmem:[#allocation2 + $0x1d] sm:$0x1] }
 0x14d   : > { %1100 = vst.msk [vmem:[#allocation4 + $0x4] sm:$0x1] %vm640_vm1, %v1099_v61  ;;  %1309 = vmatpush.bf16.msrb.mxu3 %v3342_v35  ;;  %v1449_v35 = vld [vmem:[#allocation2 + $0x3e] sm:$0x1] }
 0x14e   : > { %1102 = vst.msk [vmem:[#allocation4 + $0x5] sm:$0x1] %vm640_vm1, %v1101_v63  ;;  %v1325_v63 = vld [vmem:[#allocation2 + $0x28] sm:$0x1] }
 0x14f   : > { %1104 = vst.msk [vmem:[#allocation4 + $0x6] sm:$0x1] %vm640_vm1, %v1103_v62  ;;  %v3348_v62 = vld [vmem:[%s4238_s3 + $0xe8] sm:$0xff] }
 0x150   : > { %1106 = vst.msk [vmem:[#allocation4 + $0x7] sm:$0x1] %vm640_vm1, %v1105_v0  ;;  %v1327_v0 = vld [vmem:[#allocation2 + $0x2a] sm:$0x1] }
 0x151   : > { %1108 = vst.msk [vmem:[#allocation4 + $0x8] sm:$0x1] %vm640_vm1, %v1107_v19  ;;  %1310 = vmatpush.bf16.msrb.mxu3 %v3341_v39  ;;  %v3349_v19 = vld [vmem:[%s4238_s3 + $0xf0] sm:$0xff] }
 0x157   : > { %v1109_v8 = vld [vmem:[#allocation4] sm:$0xff] }
 0x158   : > { %1149 = vst.msk [vmem:[#allocation4] sm:$0x1] %vm640_vm1, %v1148_v7  ;;  %v1110_v27 = vld [vmem:[#allocation4 + $0x8] sm:$0x1] }
 0x159   : > { %1151 = vst.msk [vmem:[#allocation4 + $0x1] sm:$0x1] %vm640_vm1, %v1150_v10  ;;  %v1111_v29 = vpack.c.bf16 %v1110_v27, %v1109_v8  ;;  %v1388_v8 = vld [vmem:[#allocation2 + $0x39] sm:$0x1] }
 0x15a   : > { %1153 = vst.msk [vmem:[#allocation4 + $0x2] sm:$0x1] %vm640_vm1, %v1152_v11  ;;  %v1376_v11 = vld [vmem:[#allocation2 + $0x19] sm:$0x1] }
 0x15b   : > { %1155 = vst.msk [vmem:[#allocation4 + $0x3] sm:$0x1] %vm640_vm1, %v1154_v13  ;;  %2787 = vmatmul.msk.bf16.vlgmr.msra.gmra.mxu2 %vm630_vm0, %v1111_v29  ;;  %v1378_v13 = vld [vmem:[#allocation2 + $0x1b] sm:$0x1]  ;;  %v1439_v29 = vld [vmem:[#allocation2 + $0x2a] sm:$0x1] }
 0x15c   : > { %1157 = vst.msk [vmem:[#allocation4 + $0x4] sm:$0x1] %vm640_vm1, %v1156_v15  ;;  %1480 = vmatpush.bf16.msra.mxu2 %v3348_v62  ;;  %v1382_v15 = vld [vmem:[#allocation2 + $0x29] sm:$0x1] }
 0x15d   : > { %1159 = vst.msk [vmem:[#allocation4 + $0x5] sm:$0x1] %vm640_vm1, %v1158_v16  ;;  %v1384_v16 = vld [vmem:[#allocation2 + $0x2b] sm:$0x1] }
 0x15e   : > { %1161 = vst.msk [vmem:[#allocation4 + $0x6] sm:$0x1] %vm640_vm1, %v1160_v20  ;;  %v1433_v20 = vld [vmem:[#allocation2 + $0x1a] sm:$0x1] }
 0x15f   : > { %1163 = vst.msk [vmem:[#allocation4 + $0x7] sm:$0x1] %vm640_vm1, %v1162_v21 }
 0x160   : > { %1165 = vst.msk [vmem:[#allocation4 + $0x8] sm:$0x1] %vm640_vm1, %v1164_v37  ;;  %1481 = vmatpush.bf16.msra.mxu2 %v3347_v6 }
 0x166   : > { %v1166_v25 = vld [vmem:[#allocation4] sm:$0xff]  ;;  %v744_v27 = vpop.f32.mrf.mxu3 }
 0x167   : > { %1206 = vst.msk [vmem:[#allocation4] sm:$0x1] %vm640_vm1, %v1205_v24  ;;  %v1167_v45 = vld [vmem:[#allocation4 + $0x8] sm:$0x1]  ;;  %v1435_v24 = vld [vmem:[#allocation2 + $0x1c] sm:$0x1] }
 0x168   : > { %1208 = vst.msk [vmem:[#allocation4 + $0x1] sm:$0x1] %vm640_vm1, %v1207_v26  ;;  %v1168_v47 = vpack.c.bf16 %v1167_v45, %v1166_v25  ;;  %v1437_v26 = vld [vmem:[#allocation2 + $0x1e] sm:$0x1] }
 0x169   : > { %1210 = vst.msk [vmem:[#allocation4 + $0x2] sm:$0x1] %vm640_vm1, %v1209_v28 }
 0x16a   : > { %1212 = vst.msk [vmem:[#allocation4 + $0x3] sm:$0x1] %vm640_vm1, %v1211_v30  ;;  %2800 = vmatmul.msk.bf16.vlgmr.msra.gmra.mxu3 %vm630_vm0, %v1168_v47 }
 0x16b   : > { %1214 = vst.msk [vmem:[#allocation4 + $0x4] sm:$0x1] %vm640_vm1, %v1213_v31  ;;  %1537 = vmatpush.bf16.msra.mxu3 %v3350_v5  ;;  %v1441_v31 = vld [vmem:[#allocation2 + $0x2c] sm:$0x1] }
 0x16c   : > { %1216 = vst.msk [vmem:[#allocation4 + $0x5] sm:$0x1] %vm640_vm1, %v1215_v32  ;;  %v1443_v32 = vld [vmem:[#allocation2 + $0x2e] sm:$0x1] }
 0x16d   : > { %1218 = vst.msk [vmem:[#allocation4 + $0x6] sm:$0x1] %vm640_vm1, %v1217_v33  ;;  %v1445_v33 = vld [vmem:[#allocation2 + $0x3a] sm:$0x1] }
 0x16e   : > { %1220 = vst.msk [vmem:[#allocation4 + $0x7] sm:$0x1] %vm640_vm1, %v1219_v36  ;;  %v746_v38 = vpop.f32.mrf.mxu3 }
 0x16f   : > { %1222 = vst.msk [vmem:[#allocation4 + $0x8] sm:$0x1] %vm640_vm1, %v1221_v55  ;;  %1538 = vmatpush.bf16.msra.mxu3 %v3349_v19 }
 0x175   : > { %v1223_v43 = vld [vmem:[#allocation4] sm:$0xff]  ;;  %v715_v28 = vpop.f32.mrf.mxu2 }
 0x176   : > { %1263 = vst.msk [vmem:[#allocation4] sm:$0x1] %vm640_vm1, %v1262_v42  ;;  %v1224_v59 = vld [vmem:[#allocation4 + $0x8] sm:$0x1]  ;;  %v745_v30 = vadd.f32 %v744_v27, %v715_v28  ;;  %v1490_v42 = vld [vmem:[#allocation2 + $0x1b] sm:$0x1] }
 0x177   : > { %1265 = vst.msk [vmem:[#allocation4 + $0x1] sm:$0x1] %vm640_vm1, %v1264_v44  ;;  %v1225_v61 = vpack.c.bf16 %v1224_v59, %v1223_v43  ;;  %v1492_v44 = vld [vmem:[#allocation2 + $0x1d] sm:$0x1]  ;;  %v3352_v27 = vld [vmem:[%s4240_s5 + $0x8] sm:$0xff] }
 0x178   : > { %1267 = vst.msk [vmem:[#allocation4 + $0x2] sm:$0x1] %vm640_vm1, %v1266_v46  ;;  %v1494_v46 = vld [vmem:[#allocation2 + $0x1f] sm:$0x1] }
 0x179   : > { %1269 = vst.msk [vmem:[#allocation4 + $0x3] sm:$0x1] %vm640_vm1, %v1268_v48  ;;  %2813 = vmatmul.msk.bf16.vlgmr.msrb.gmra.mxu2 %vm630_vm0, %v1225_v61  ;;  %v1496_v48 = vld [vmem:[#allocation2 + $0x2b] sm:$0x1] }
 0x17a   : > { %1271 = vst.msk [vmem:[#allocation4 + $0x4] sm:$0x1] %vm640_vm1, %v1270_v49  ;;  %v1498_v49 = vld [vmem:[#allocation2 + $0x2d] sm:$0x1] }
 0x17b   : > { %1273 = vst.msk [vmem:[#allocation4 + $0x5] sm:$0x1] %vm640_vm1, %v1272_v50  ;;  %v1500_v50 = vld [vmem:[#allocation2 + $0x2f] sm:$0x1] }
 0x17c   : > { %1275 = vst.msk [vmem:[#allocation4 + $0x6] sm:$0x1] %vm640_vm1, %v1274_v51  ;;  %v1502_v51 = vld [vmem:[#allocation2 + $0x3b] sm:$0x1] }
 0x17d   : > { %1277 = vst.msk [vmem:[#allocation4 + $0x7] sm:$0x1] %vm640_vm1, %v1276_v53  ;;  %v717_v39 = vpop.f32.mrf.mxu2  ;;  %v1506_v53 = vld [vmem:[#allocation2 + $0x3f] sm:$0x1] }
 0x17e   : > { %1279 = vst.msk [vmem:[#allocation4 + $0x8] sm:$0x1] %vm640_vm1, %v1278_v4  ;;  %v747_v41 = vadd.f32 %v746_v38, %v717_v39  ;;  %v3356_v39 = vld [vmem:[%s4240_s5 + $0x28] sm:$0xff] }
 0x184   : > { %v1280_v57 = vld [vmem:[#allocation4] sm:$0xff] }
 0x185   : > { %1320 = vst.msk [vmem:[#allocation4] sm:$0x1] %vm640_vm1, %v1319_v56  ;;  %v1281_v10 = vld [vmem:[#allocation4 + $0x8] sm:$0x1]  ;;  %v799_v56 = vpop.f32.mrf.mxu2 }
 0x186   : > { %1322 = vst.msk [vmem:[#allocation4 + $0x1] sm:$0x1] %vm640_vm1, %v1321_v58  ;;  %v1282_v12 = vpack.c.bf16 %v1281_v10, %v1280_v57  ;;  %v804_v6 = vadd.f32 %v799_v56, %v745_v30 }
 0x187   : > { %1324 = vst.msk [vmem:[#allocation4 + $0x2] sm:$0x1] %vm640_vm1, %v1323_v60 }
 0x188   : > { %1326 = vst.msk [vmem:[#allocation4 + $0x3] sm:$0x1] %vm640_vm1, %v1325_v63  ;;  %2826 = vmatmul.msk.bf16.vlgmr.msrb.gmra.mxu3 %vm630_vm0, %v1282_v12 }
 0x189   : > { %1328 = vst.msk [vmem:[#allocation4 + $0x4] sm:$0x1] %vm640_vm1, %v1327_v0 }
 0x18a   : > { %1330 = vst.msk [vmem:[#allocation4 + $0x5] sm:$0x1] %vm640_vm1, %v1329_v1 }
 0x18b   : > { %1332 = vst.msk [vmem:[#allocation4 + $0x6] sm:$0x1] %vm640_vm1, %v1331_v2 }
 0x18c   : > { %1334 = vst.msk [vmem:[#allocation4 + $0x7] sm:$0x1] %vm640_vm1, %v1333_v3 }
 0x18d   : > { %1336 = vst.msk [vmem:[#allocation4 + $0x8] sm:$0x1] %vm640_vm1, %v1335_v18  ;;  %v801_v58 = vpop.f32.mrf.mxu2 }
 0x18e   : > { %v805_v10 = vadd.f32 %v801_v58, %v747_v41  ;;  %v3362_v41 = vld [vmem:[%s4240_s5 + $0x58] sm:$0xff]  ;;  %v3359_v58 = vld [vmem:[%s4240_s5 + $0x40] sm:$0xff] }
 0x18f   : > { %1708 = vmatpush.bf16.msrb.mxu2 %v3362_v41 }
 0x193   : > { %v1337_v7 = vld [vmem:[#allocation4] sm:$0xff]  ;;  %v856_v57 = vpop.f32.mrf.mxu3 }
 0x194   : > { %1389 = vst.msk [vmem:[#allocation4 + $0x6] sm:$0x1] %vm640_vm1, %v1388_v8  ;;  %v1338_v23 = vld [vmem:[#allocation4 + $0x8] sm:$0x1]  ;;  %v861_v8 = vadd.f32 %v856_v57, %v804_v6 }
 0x195   : > { %1391 = vst.msk [vmem:[#allocation4 + $0x7] sm:$0x1] %vm640_vm1, %v1390_v9  ;;  %v1339_v25 = vpack.c.bf16 %v1338_v23, %v1337_v7 }
 0x196   : > { %1377 = vst.msk [vmem:[#allocation4] sm:$0x1] %vm640_vm1, %v1376_v11 }
 0x197   : > { %1379 = vst.msk [vmem:[#allocation4 + $0x1] sm:$0x1] %vm640_vm1, %v1378_v13  ;;  %2839 = vmatmul.msk.bf16.vlgmr.msrb.gmra.mxu0 %vm630_vm0, %v1339_v25 }
 0x198   : > { %1381 = vst.msk [vmem:[#allocation4 + $0x2] sm:$0x1] %vm640_vm1, %v1380_v14 }
 0x199   : > { %1383 = vst.msk [vmem:[#allocation4 + $0x3] sm:$0x1] %vm640_vm1, %v1382_v15 }
 0x19a   : > { %1385 = vst.msk [vmem:[#allocation4 + $0x4] sm:$0x1] %vm640_vm1, %v1384_v16 }
 0x19b   : > { %1387 = vst.msk [vmem:[#allocation4 + $0x5] sm:$0x1] %vm640_vm1, %v1386_v17  ;;  %v858_v59 = vpop.f32.mrf.mxu3  ;;  %v3354_v17 = vld [vmem:[%s4240_s5 + $0x18] sm:$0xff] }
 0x19c   : > { %1393 = vst.msk [vmem:[#allocation4 + $0x8] sm:$0x1] %vm640_vm1, %v1392_v22  ;;  %v862_v13 = vadd.f32 %v858_v59, %v805_v10  ;;  %1655 = vmatpush.bf16.msra.mxu1 %v3354_v17  ;;  %v3353_v22 = vld [vmem:[%s4240_s5 + $0x10] sm:$0xff]  ;;  %v3367_v10 = vld [vmem:[%s4240_s5 + $0x80] sm:$0xff] }
 0x19d   : > { %v3365_v59 = vld [vmem:[%s4240_s5 + $0x70] sm:$0xff]  ;;  %v3371_v17 = vld [vmem:[%s4240_s5 + $0xa0] sm:$0xff] }
 0x1a0   : > { %1656 = vmatpush.bf16.msra.mxu1 %v3353_v22  ;;  %v3382_v22 = vld [vmem:[%s4240_s5 + $0xf8] sm:$0xff] }
 0x1a2   : > { %v1394_v21 = vld [vmem:[#allocation4] sm:$0xff]  ;;  %v913_v60 = vpop.f32.mrf.mxu2 }
 0x1a3   : > { %1434 = vst.msk [vmem:[#allocation4] sm:$0x1] %vm640_vm1, %v1433_v20  ;;  %v1395_v36 = vld [vmem:[#allocation4 + $0x8] sm:$0x1]  ;;  %v918_v9 = vadd.f32 %v913_v60, %v861_v8  ;;  %v3368_v8 = vld [vmem:[%s4240_s5 + $0x88] sm:$0xff] }
 0x1a4   : > { %1436 = vst.msk [vmem:[#allocation4 + $0x1] sm:$0x1] %vm640_vm1, %v1435_v24  ;;  %v1396_v37 = vpack.c.bf16 %v1395_v36, %v1394_v21  ;;  %1657 = vmatpush.bf16.msra.mxu1 %v3352_v27 }
 0x1a5   : > { %1438 = vst.msk [vmem:[#allocation4 + $0x2] sm:$0x1] %vm640_vm1, %v1437_v26  ;;  %v3358_v26 = vld [vmem:[%s4240_s5 + $0x38] sm:$0xff] }
 0x1a6   : > { %1440 = vst.msk [vmem:[#allocation4 + $0x3] sm:$0x1] %vm640_vm1, %v1439_v29  ;;  %2852 = vmatmul.msk.bf16.vlgmr.msrb.gmra.mxu1 %vm630_vm0, %v1396_v37  ;;  %1615 = vmatpush.bf16.msra.mxu0 %v3358_v26 }
 0x1a7   : > { %1442 = vst.msk [vmem:[#allocation4 + $0x4] sm:$0x1] %vm640_vm1, %v1441_v31  ;;  %v3357_v31 = vld [vmem:[%s4240_s5 + $0x30] sm:$0xff] }
 0x1a8   : > { %1444 = vst.msk [vmem:[#allocation4 + $0x5] sm:$0x1] %vm640_vm1, %v1443_v32  ;;  %v3351_v32 = vld [vmem:[%s4240_s5] sm:$0xff] }
 0x1a9   : > { %1446 = vst.msk [vmem:[#allocation4 + $0x6] sm:$0x1] %vm640_vm1, %v1445_v33  ;;  %1658 = vmatpush.bf16.msra.mxu1 %v3351_v32  ;;  %v3385_v32 = vld [vmem:[%s4240_s5 + $0x110] sm:$0xff] }
 0x1aa   : > { %1448 = vst.msk [vmem:[#allocation4 + $0x7] sm:$0x1] %vm640_vm1, %v1447_v34  ;;  %v915_v62 = vpop.f32.mrf.mxu2  ;;  %1616 = vmatpush.bf16.msra.mxu0 %v3357_v31  ;;  %v3379_v31 = vld [vmem:[%s4240_s5 + $0xe0] sm:$0xff] }
 0x1ab   : > { %1450 = vst.msk [vmem:[#allocation4 + $0x8] sm:$0x1] %vm640_vm1, %v1449_v35  ;;  %v919_v16 = vadd.f32 %v915_v62, %v862_v13 }
 0x1ae   : > { %1617 = vmatpush.bf16.msra.mxu0 %v3356_v39 }
 0x1b1   : > { %v1451_v43 = vld [vmem:[#allocation4] sm:$0xff]  ;;  %v970_v61 = vpop.f32.mrf.mxu3 }
 0x1b2   : > { %v1452_v45 = vld [vmem:[#allocation4 + $0x8] sm:$0x1]  ;;  %1491 = vst.msk [vmem:[#allocation4] sm:$0x1] %vm640_vm1, %v1490_v42  ;;  %v975_v12 = vadd.f32 %v970_v61, %v918_v9 }
 0x1b3   : > { %v1453_v47 = vpack.c.bf16 %v1452_v45, %v1451_v43  ;;  %1493 = vst.msk [vmem:[#allocation4 + $0x1] sm:$0x1] %vm640_vm1, %v1492_v44  ;;  %v3355_v44 = vld [vmem:[%s4240_s5 + $0x20] sm:$0xff]  ;;  %v3361_v45 = vld [vmem:[%s4240_s5 + $0x50] sm:$0xff]  ;;  %v3374_v9 = vld [vmem:[%s4240_s5 + $0xb8] sm:$0xff] }
 0x1b4   : > { %1495 = vst.msk [vmem:[#allocation4 + $0x2] sm:$0x1] %vm640_vm1, %v1494_v46  ;;  %1618 = vmatpush.bf16.msra.mxu0 %v3355_v44  ;;  %1709 = vmatpush.bf16.msrb.mxu2 %v3361_v45 }
 0x1b5   : > { %2865 = vmatmul.msk.bf16.vlgmr.msra.gmra.mxu2 %vm630_vm0, %v1453_v47  ;;  %1497 = vst.msk [vmem:[#allocation4 + $0x3] sm:$0x1] %vm640_vm1, %v1496_v48  ;;  %1870 = vmatpush.bf16.msrb.mxu1 %v3374_v9 }
 0x1b6   : > { %1499 = vst.msk [vmem:[#allocation4 + $0x4] sm:$0x1] %vm640_vm1, %v1498_v49  ;;  %v3444_v49 = vld [vmem:[%s4239_s4] ss:$0 sm:$0xff] }
 0x1b7   : > { %1501 = vst.msk [vmem:[#allocation4 + $0x5] sm:$0x1] %vm640_vm1, %v1500_v50 }
 0x1b8   : > { %1503 = vst.msk [vmem:[#allocation4 + $0x6] sm:$0x1] %vm640_vm1, %v1502_v51 }
 0x1b9   : > { %1505 = vst.msk [vmem:[#allocation4 + $0x7] sm:$0x1] %vm640_vm1, %v1504_v52  ;;  %v972_v63 = vpop.f32.mrf.mxu3 }
 0x1ba   : > { %1507 = vst.msk [vmem:[#allocation4 + $0x8] sm:$0x1] %vm640_vm1, %v1506_v53  ;;  %v976_v19 = vadd.f32 %v972_v63, %v919_v16  ;;  %v3378_v16 = vld [vmem:[%s4240_s5 + $0xd8] sm:$0xff] }
 0x1c0   : > { %v1508_v54 = vld [vmem:[#allocation4] sm:$0xff]  ;;  %v1027_v0 = vpop.f32.mrf.mxu2 }
 0x1c1   : > { %v1509_v55 = vld [vmem:[#allocation4 + $0x8] sm:$0x1]  ;;  %v1032_v14 = vadd.f32 %v1027_v0, %v975_v12 }
 0x1c2   : > { %v1510_v40 = vpack.c.bf16 %v1509_v55, %v1508_v54  ;;  %v3360_v54 = vld [vmem:[%s4240_s5 + $0x48] sm:$0xff]  ;;  %v3366_v55 = vld [vmem:[%s4240_s5 + $0x78] sm:$0xff] }
 0x1c3   : > { %1710 = vmatpush.bf16.msrb.mxu2 %v3360_v54  ;;  %1762 = vmatpush.bf16.msrb.mxu3 %v3366_v55 }
 0x1c4   : > { %2878 = vmatmul.msk.bf16.vlgmr.msra.gmra.mxu3 %vm630_vm0, %v1510_v40 }
 0x1c7   : > { %1711 = vmatpush.bf16.msrb.mxu2 %v3359_v58  ;;  %1763 = vmatpush.bf16.msrb.mxu3 %v3365_v59  ;;  %v3148_v58 = vld [vmem:[%s4242_s7 + $0x70] sm:$0xf0]  ;;  %v3154_v59 = vld [vmem:[%s4242_s7 + $0x68] sm:$0xf] }
 0x1c8   : > { %v1029_v2 = vpop.f32.mrf.mxu2 }
 0x1c9   : > { %v1033_v23 = vadd.f32 %v1029_v2, %v976_v19  ;;  %v3370_v2 = vld [vmem:[%s4240_s5 + $0x98] sm:$0xff] }
 0x1ca   : > { %1816 = vmatpush.bf16.msrb.mxu0 %v3370_v2  ;;  %v3400_v2 = vld [vmem:[%s4242_s7 + $0x6c] sm:$0xf] }
 0x1cb   : > { %1924 = vmatpush.bf16.msra.mxu2 %v3378_v16 }
 0x1cf   : > { %v1084_v1 = vpop.f32.mrf.mxu3 }
 0x1d0   : > { %v1089_v18 = vadd.f32 %v1084_v1, %v1032_v14  ;;  %v3364_v1 = vld [vmem:[%s4240_s5 + $0x68] sm:$0xff] }
 0x1d1   : > { %1764 = vmatpush.bf16.msrb.mxu3 %v3364_v1 }
 0x1d7   : > { %v1086_v3 = vpop.f32.mrf.mxu3 }
 0x1d8   : > { %v1090_v28 = vadd.f32 %v1086_v3, %v1033_v23  ;;  %v3376_v23 = vld [vmem:[%s4240_s5 + $0xc8] sm:$0xff] }
 0x1de   : > { %v1141_v4 = vpop.f32.mrf.mxu2 }
 0x1df   : > { %v1146_v20 = vadd.f32 %v1141_v4, %v1089_v18  ;;  %v3363_v4 = vld [vmem:[%s4240_s5 + $0x60] sm:$0xff]  ;;  %v3377_v18 = vld [vmem:[%s4240_s5 + $0xd0] sm:$0xff] }
 0x1e0   : > { %1765 = vmatpush.bf16.msrb.mxu3 %v3363_v4  ;;  %1925 = vmatpush.bf16.msra.mxu2 %v3377_v18  ;;  %v3395_v4 = vld [vmem:[%s4242_s7 + $0x44] sm:$0xf] }
 0x1e4   : > { %1978 = vmatpush.bf16.msra.mxu3 %v3382_v22  ;;  %1926 = vmatpush.bf16.msra.mxu2 %v3376_v23 }
 0x1e6   : > { %v1143_v7 = vpop.f32.mrf.mxu2 }
 0x1e7   : > { %v1147_v30 = vadd.f32 %v1143_v7, %v1090_v28 }
 0x1ed   : > { %v1198_v5 = vpop.f32.mrf.mxu3 }
 0x1ee   : > { %v1203_v24 = vadd.f32 %v1198_v5, %v1146_v20  ;;  %v3369_v5 = vld [vmem:[%s4240_s5 + $0x90] sm:$0xff] }
 0x1ef   : > { %1817 = vmatpush.bf16.msrb.mxu0 %v3369_v5 }
 0x1f3   : > { %1818 = vmatpush.bf16.msrb.mxu0 %v3368_v8  ;;  %v3398_v8 = vld [vmem:[%s4242_s7 + $0x54] sm:$0xf0] }
 0x1f5   : > { %v1200_v11 = vpop.f32.mrf.mxu3 }
 0x1f6   : > { %v1204_v37 = vadd.f32 %v1200_v11, %v1147_v30  ;;  %v3373_v11 = vld [vmem:[%s4240_s5 + $0xb0] sm:$0xff]  ;;  %v3386_v30 = vld [vmem:[%s4240_s5 + $0x118] sm:$0xff] }
 0x1f7   : > { %1819 = vmatpush.bf16.msrb.mxu0 %v3367_v10  ;;  %1871 = vmatpush.bf16.msrb.mxu1 %v3373_v11  ;;  %v3130_v11 = vld [vmem:[%s4242_s7 + $0x40] sm:$0xf] }
 0x1fc   : > { %v1255_v15 = vpop.f32.mrf.mxu2 }
 0x1fd   : > { %v1260_v29 = vadd.f32 %v1255_v15, %v1203_v24  ;;  %v3372_v15 = vld [vmem:[%s4240_s5 + $0xa8] sm:$0xff]  ;;  %v3381_v24 = vld [vmem:[%s4240_s5 + $0xf0] sm:$0xff] }
 0x1fe   : > { %1872 = vmatpush.bf16.msrb.mxu1 %v3372_v15  ;;  %1979 = vmatpush.bf16.msra.mxu3 %v3381_v24  ;;  %v3140_v15 = vld [vmem:[%s4242_s7 + $0x58] sm:$0xf0]  ;;  %v3394_v24 = vld [vmem:[%s4242_s7 + $0x34] sm:$0xf0] }
 0x202   : > { %1873 = vmatpush.bf16.msrb.mxu1 %v3371_v17 }
 0x204   : > { %v1257_v25 = vpop.f32.mrf.mxu2 }
 0x205   : > { %v1261_v43 = vadd.f32 %v1257_v25, %v1204_v37  ;;  %v3375_v25 = vld [vmem:[%s4240_s5 + $0xc0] sm:$0xff] }
 0x206   : > { %1927 = vmatpush.bf16.msra.mxu2 %v3375_v25  ;;  %v3383_v37 = vld [vmem:[%s4240_s5 + $0x100] sm:$0xff] }
 0x207   : > { %v3114_v25 = vld [vmem:[%s4242_s7 + $0x20] sm:$0xf] }
 0x20b   : > { %v1312_v21 = vpop.f32.mrf.mxu3 }
 0x20c   : > { %v1317_v33 = vadd.f32 %v1312_v21, %v1260_v29  ;;  %v3380_v29 = vld [vmem:[%s4240_s5 + $0xe8] sm:$0xff] }
 0x20d   : > { %1980 = vmatpush.bf16.msra.mxu3 %v3380_v29  ;;  %v3392_v29 = vld [vmem:[%s4242_s7 + $0x2c] sm:$0xf] }
 0x211   : > { %1981 = vmatpush.bf16.msra.mxu3 %v3379_v31 }
 0x213   : > { %v1314_v34 = vpop.f32.mrf.mxu3 }
 0x214   : > { %v1369_v35 = vpop.f32.mrf.mxu0  ;;  %v1318_v47 = vadd.f32 %v1314_v34, %v1261_v43 }
 0x215   : > { %v1374_v42 = vadd.f32 %v1369_v35, %v1317_v33 }
 0x21c   : > { %v1371_v52 = vpop.f32.mrf.mxu0 }
 0x21d   : > { %v1375_v40 = vadd.f32 %v1371_v52, %v1318_v47 }
 0x223   : > { %v1426_v36 = vpop.f32.mrf.mxu1 }
 0x224   : > { %v1431_v46 = vadd.f32 %v1426_v36, %v1374_v42  ;;  %v3384_v36 = vld [vmem:[%s4240_s5 + $0x108] sm:$0xff] }
 0x22b   : > { %v1428_v53 = vpop.f32.mrf.mxu1 }
 0x22c   : > { %v1432_v60 = vadd.f32 %v1428_v53, %v1375_v40 }
 0x238   : > { %v1483_v38 = vpop.f32.mrf.mxu2 }
 0x239   : > { %v1488_v48 = vadd.f32 %v1483_v38, %v1431_v46 }
 0x240   : > { %v1485_v57 = vpop.f32.mrf.mxu2 }
 0x241   : > { %v1489_v62 = vadd.f32 %v1485_v57, %v1432_v60  ;;  %v3399_v57 = vld [vmem:[%s4242_s7 + $0x64] sm:$0xf] }
 0x242   : > { %v3151_v60 = vor.u32 %v3399_v57, %v3148_v58  ;;  %v3425_v57 = vld [vmem:[%s4244_s9 + $0xb0] sm:$0xff] }
 0x247   : > { %v1540_v50 = vpop.f32.mrf.mxu3 }
 0x248   : > { %v1545_v51 = vadd.f32 %v1540_v50, %v1488_v48 }
 0x24a   : > { %v1551_v56 = vadd.f32 %v3444_v49, %v1545_v51 }
 0x24c   : > { %v1553_v61 = vmax.f32 %v1551_v56, 0.0 }
 0x24e   : > { %1556 = vst.msk [vmem:[#allocation3] sm:$0xff] %vm1555_vm2, %v1553_v61  ;;  %v3402_v61 = vld [vmem:[%s4242_s7 + $0x74] sm:$0xf0] }
 0x24f   : > { %v1542_v63 = vpop.f32.mrf.mxu3 }
 0x250   : > { %v1546_v0 = vadd.f32 %v1542_v63, %v1489_v62  ;;  %v3146_v62 = vld [vmem:[%s4242_s7 + $0x60] sm:$0xf]  ;;  %v3401_v63 = vld [vmem:[%s4242_s7 + $0x6c] sm:$0xf0] }
 0x251   : > { %v3147_v1 = vor.u32 %v3401_v63, %v3146_v62  ;;  %v3416_v62 = vld [vmem:[%s4244_s9 + $0x68] sm:$0xff] }
 0x252   : > { %v1552_v3 = vadd.f32 %v3444_v49, %v1546_v0  ;;  %v3155_v0 = vor.u32 %v3402_v61, %v3154_v59  ;;  %v3408_v59 = vld [vmem:[%s4244_s9 + $0x28] sm:$0xff] }
 0x253   : > { %v3424_v63 = vld [vmem:[%s4244_s9 + $0xa8] sm:$0xff] }
 0x254   : > { %v1554_v6 = vmax.f32 %v1552_v3, 0.0  ;;  %v3156_v3 = vld [vmem:[%s4242_s7 + $0x78] sm:$0xf0] }
 0x255   : > { %v1559_v7 = vld [vmem:[#allocation3] sm:$0x1]  ;;  %v1571_v12 = vld [vmem:[#allocation3 + $0x1] sm:$0x1]  ;;  %v1664_v19 = vld [vmem:[#allocation3 + $0x2] sm:$0x1]  ;;  %v3159_v5 = vor.u32 %v3400_v2, %v3156_v3 }
 0x256   : > { %1558 = vst.msk [vmem:[#allocation3 + $0x8] sm:$0x1] %vm1557_vm3, %v1554_v6  ;;  %v1718_v26 = vld [vmem:[#allocation3 + $0x3] sm:$0x1]  ;;  %v1772_v33 = vld [vmem:[#allocation3 + $0x4] sm:$0x1] }
 0x257   : > { %1560 = vst.msk [vmem:[#allocation5] sm:$0x1] %vm1557_vm3, %v1559_v7  ;;  %v1826_v38 = vld [vmem:[#allocation3 + $0x5] sm:$0x1]  ;;  %v1880_v42 = vld [vmem:[#allocation3 + $0x6] sm:$0x1] }
 0x258   : > { %v1934_v45 = vld [vmem:[#allocation3 + $0x7] sm:$0x1]  ;;  %v3132_v6 = vld [vmem:[%s4242_s7 + $0x50] sm:$0xf0]  ;;  %v3138_v7 = vld [vmem:[%s4242_s7 + $0x48] sm:$0xf] }
 0x259   : > { %v3135_v9 = vor.u32 %v3395_v4, %v3132_v6  ;;  %v3139_v10 = vor.u32 %v3398_v8, %v3138_v7  ;;  %v3415_v2 = vld [vmem:[%s4244_s9 + $0x60] sm:$0xff]  ;;  %v3406_v4 = vld [vmem:[%s4244_s9 + $0x18] sm:$0xff] }
 0x25a   : > { %v3414_v7 = vld [vmem:[%s4244_s9 + $0x58] sm:$0xff] }
 0x25b   : > { %v3422_v8 = vld [vmem:[%s4244_s9 + $0x98] sm:$0xff] }
 0x25d   : > { %v1988_v48 = vld [vmem:[#allocation3 + $0x8] sm:$0x1] }
 0x25e   : > { %v1561_v13 = vld [vmem:[#allocation5] sm:$0x1] }
 0x25f   : > { %v1562_v14 = vpack.c.bf16 %v1561_v13, %v1561_v13  ;;  %1572 = vst.msk [vmem:[#allocation5] sm:$0x1] %vm1557_vm3, %v1571_v12  ;;  %v3397_v12 = vld [vmem:[%s4242_s7 + $0x4c] sm:$0xf0]  ;;  %v3396_v13 = vld [vmem:[%s4242_s7 + $0x4c] sm:$0xf] }
 0x260   : > { %v3143_v16 = vor.u32 %v3396_v13, %v3140_v15 }
 0x261   : > { %2920 = vmatmul.msk.bf16.vlgmr.msra.gmra.mxu1 %vm1555_vm2, %v1562_v14  ;;  %v3131_v14 = vor.u32 %v3397_v12, %v3130_v11  ;;  %v3429_v11 = vld [vmem:[%s4244_s9 + $0xd0] sm:$0xff] }
 0x262   : > { %2159 = vmatpush.bf16.msra.mxu1 %v3147_v1  ;;  %v3407_v1 = vld [vmem:[%s4244_s9 + $0x20] sm:$0xff] }
 0x266   : > { %v1573_v20 = vld [vmem:[#allocation5] sm:$0x1]  ;;  %2160 = vmatpush.bf16.msra.mxu1 %v3131_v14 }
 0x267   : > { %v1574_v21 = vpack.c.bf16 %v1573_v20, %v1573_v20  ;;  %1665 = vst.msk [vmem:[#allocation5] sm:$0x1] %vm1557_vm3, %v1664_v19  ;;  %v3391_v19 = vld [vmem:[%s4242_s7 + $0x24] sm:$0xf]  ;;  %v3116_v20 = vld [vmem:[%s4242_s7 + $0x30] sm:$0xf0] }
 0x268   : > { %v3119_v23 = vor.u32 %v3391_v19, %v3116_v20 }
 0x269   : > { %2903 = vmatmul.msk.bf16.vlgmr.msra.gmra.mxu0 %vm1555_vm2, %v1574_v21  ;;  %v3122_v21 = vld [vmem:[%s4242_s7 + $0x28] sm:$0xf] }
 0x26a   : > { %2032 = vmatpush.bf16.msra.mxu0 %v3386_v30  ;;  %v3124_v30 = vld [vmem:[%s4242_s7 + $0x38] sm:$0xf0] }
 0x26b   : > { %v3127_v31 = vor.u32 %v3392_v29, %v3124_v30  ;;  %v3427_v29 = vld [vmem:[%s4244_s9 + $0xc0] sm:$0xff]  ;;  %v3412_v30 = vld [vmem:[%s4244_s9 + $0x48] sm:$0xff] }
 0x26e   : > { %v1666_v27 = vld [vmem:[#allocation5] sm:$0x1]  ;;  %2033 = vmatpush.bf16.msra.mxu0 %v3385_v32  ;;  %v3387_v32 = vld [vmem:[%s4242_s7 + $0x4] sm:$0xf] }
 0x26f   : > { %v1667_v28 = vpack.c.bf16 %v1666_v27, %v1666_v27  ;;  %1719 = vst.msk [vmem:[#allocation5] sm:$0x1] %vm1557_vm3, %v1718_v26  ;;  %v3393_v26 = vld [vmem:[%s4242_s7 + $0x2c] sm:$0xf0]  ;;  %v3123_v27 = vor.u32 %v3394_v24, %v3122_v21  ;;  %v3404_v24 = vld [vmem:[%s4244_s9 + $0x8] sm:$0xff] }
 0x271   : > { %2945 = vmatmul.msk.bf16.vlgmr.msrb.gmra.mxu2 %vm1555_vm2, %v1667_v28  ;;  %v3115_v28 = vor.u32 %v3393_v26, %v3114_v25  ;;  %v3428_v25 = vld [vmem:[%s4244_s9 + $0xc8] sm:$0xff]  ;;  %v3413_v26 = vld [vmem:[%s4244_s9 + $0x50] sm:$0xff] }
 0x272   : > { %2034 = vmatpush.bf16.msra.mxu0 %v3384_v36  ;;  %2172 = vmatpush.bf16.msrb.mxu2 %v3151_v60  ;;  %v3390_v36 = vld [vmem:[%s4242_s7 + $0x14] sm:$0xf0]  ;;  %v3432_v60 = vld [vmem:[%s4244_s9 + $0xe8] sm:$0xff] }
 0x273   : > { %2161 = vmatpush.bf16.msra.mxu1 %v3115_v28  ;;  %v3403_v28 = vld [vmem:[%s4244_s9] sm:$0xff] }
 0x276   : > { %v1720_v34 = vld [vmem:[#allocation5] sm:$0x1]  ;;  %2035 = vmatpush.bf16.msra.mxu0 %v3383_v37  ;;  %2173 = vmatpush.bf16.msrb.mxu2 %v3135_v9 }
 0x277   : > { %v1721_v35 = vpack.c.bf16 %v1720_v34, %v1720_v34  ;;  %1773 = vst.msk [vmem:[#allocation5] sm:$0x1] %vm1557_vm3, %v1772_v33  ;;  %v3100_v33 = vld [vmem:[%s4242_s7 + $0x10] sm:$0xf0]  ;;  %v3106_v34 = vld [vmem:[%s4242_s7 + $0x8] sm:$0xf] }
 0x278   : > { %v3098_v37 = vld [vmem:[%s4242_s7] sm:$0xf] }
 0x279   : > { %2970 = vmatmul.msk.bf16.vlgmr.msrb.gmra.mxu3 %vm1555_vm2, %v1721_v35  ;;  %v3103_v35 = vor.u32 %v3387_v32, %v3100_v33  ;;  %v3411_v32 = vld [vmem:[%s4244_s9 + $0x40] sm:$0xff] }
 0x27a   : > { %2185 = vmatpush.bf16.msrb.mxu3 %v3155_v0  ;;  %2174 = vmatpush.bf16.msrb.mxu2 %v3119_v23  ;;  %v3419_v33 = vld [vmem:[%s4244_s9 + $0x80] sm:$0xff] }
 0x27e   : > { %v1774_v39 = vld [vmem:[#allocation5] sm:$0x1]  ;;  %2186 = vmatpush.bf16.msrb.mxu3 %v3139_v10  ;;  %2175 = vmatpush.bf16.msrb.mxu2 %v3103_v35  ;;  %v3405_v10 = vld [vmem:[%s4244_s9 + $0x10] sm:$0xff] }
 0x27f   : > { %v1775_v41 = vpack.c.bf16 %v1774_v39, %v1774_v39  ;;  %1827 = vst.msk [vmem:[#allocation5] sm:$0x1] %vm1557_vm3, %v1826_v38  ;;  %v3389_v38 = vld [vmem:[%s4242_s7 + $0xc] sm:$0xf0]  ;;  %v3107_v39 = vor.u32 %v3390_v36, %v3106_v34  ;;  %v2062_v34 = vld [vmem:[%s4243_s8] sm:$0xf] }
 0x280   : > { %v2144_v35 = vperm.slane %v2062_v34, 0  ;;  %v2147_v36 = vperm.slane %v2062_v34, 3 }
 0x281   : > { %2995 = vmatmul.msk.bf16.vlgmr.msrb.gmra.mxu0 %vm1555_vm2, %v1775_v41  ;;  %v3099_v41 = vor.u32 %v3389_v38, %v3098_v37 }
 0x282   : > { %2198 = vmatpush.bf16.msrb.mxu0 %v3159_v5  ;;  %2187 = vmatpush.bf16.msrb.mxu3 %v3123_v27  ;;  %v3430_v5 = vld [vmem:[%s4244_s9 + $0xd8] sm:$0xff]  ;;  %v3421_v27 = vld [vmem:[%s4244_s9 + $0x90] sm:$0xff] }
 0x283   : > { %2162 = vmatpush.bf16.msra.mxu1 %v3099_v41 }
 0x286   : > { %v1828_v43 = vld [vmem:[#allocation5] sm:$0x1]  ;;  %2199 = vmatpush.bf16.msrb.mxu0 %v3143_v16  ;;  %2188 = vmatpush.bf16.msrb.mxu3 %v3107_v39 }
 0x287   : > { %v1829_v44 = vpack.c.bf16 %v1828_v43, %v1828_v43  ;;  %1881 = vst.msk [vmem:[#allocation5] sm:$0x1] %vm1557_vm3, %v1880_v42  ;;  %v3388_v42 = vld [vmem:[%s4242_s7 + $0xc] sm:$0xf]  ;;  %v3108_v43 = vld [vmem:[%s4242_s7 + $0x18] sm:$0xf0] }
 0x289   : > { %3020 = vmatmul.msk.bf16.vlgmr.msrb.gmra.mxu1 %vm1555_vm2, %v1829_v44 }
 0x28a   : > { %2200 = vmatpush.bf16.msrb.mxu0 %v3127_v31  ;;  %v3420_v31 = vld [vmem:[%s4244_s9 + $0x88] sm:$0xff] }
 0x28e   : > { %v1882_v46 = vld [vmem:[#allocation5] sm:$0x1] }
 0x28f   : > { %v1883_v47 = vpack.c.bf16 %v1882_v46, %v1882_v46  ;;  %1935 = vst.msk [vmem:[#allocation5] sm:$0x1] %vm1557_vm3, %v1934_v45  ;;  %v3111_v45 = vor.u32 %v3388_v42, %v3108_v43  ;;  %v2145_v43 = vperm.slane %v2062_v34, 1 }
 0x291   : > { %3045 = vmatmul.msk.bf16.vlgmr.msra.gmra.mxu2 %vm1555_vm2, %v1883_v47  ;;  %2201 = vmatpush.bf16.msrb.mxu0 %v3111_v45  ;;  %v2146_v45 = vperm.slane %v2062_v34, 2 }
 0x296   : > { %v1936_v49 = vld [vmem:[#allocation5] sm:$0x1] }
 0x297   : > { %v1937_v50 = vpack.c.bf16 %v1936_v49, %v1936_v49  ;;  %1989 = vst.msk [vmem:[#allocation5] sm:$0x1] %vm1557_vm3, %v1988_v48  ;;  %v3410_v48 = vld [vmem:[%s4244_s9 + $0x38] sm:$0xff] }
 0x298   : > { %v3434_v49 = vld [vmem:[%s4244_s9 + $0xf8] sm:$0xff]  ;;  %2472 = vmatpush.bf16.msrb.mxu1 %v3410_v48 }
 0x299   : > { %3070 = vmatmul.msk.bf16.vlgmr.msra.gmra.mxu3 %vm1555_vm2, %v1937_v50  ;;  %v3418_v50 = vld [vmem:[%s4244_s9 + $0x78] sm:$0xff] }
 0x29a   : > { %2485 = vmatpush.bf16.msra.mxu2 %v3418_v50 }
 0x29e   : > { %v1990_v51 = vld [vmem:[#allocation5] sm:$0x1] }
 0x29f   : > { %v1991_v52 = vpack.c.bf16 %v1990_v51, %v1990_v51  ;;  %v3426_v51 = vld [vmem:[%s4244_s9 + $0xb8] sm:$0xff] }
 0x2a0   : > { %2498 = vmatpush.bf16.msra.mxu3 %v3426_v51 }
 0x2a1   : > { %3095 = vmatmul.msk.bf16.vlgmr.msra.gmra.mxu0 %vm1555_vm2, %v1991_v52  ;;  %v3409_v52 = vld [vmem:[%s4244_s9 + $0x30] sm:$0xff] }
 0x2a2   : > { %2511 = vmatpush.bf16.msra.mxu0 %v3434_v49  ;;  %2473 = vmatpush.bf16.msrb.mxu1 %v3409_v52 }
 0x2a4   : > { %2499 = vmatpush.bf16.msra.mxu3 %v3425_v57 }
 0x2a6   : > { %2474 = vmatpush.bf16.msrb.mxu1 %v3408_v59 }
 0x2a8   : > { %2500 = vmatpush.bf16.msra.mxu3 %v3424_v63 }
 0x2aa   : > { %2475 = vmatpush.bf16.msrb.mxu1 %v3407_v1 }
 0x2ae   : > { %2476 = vmatpush.bf16.msrb.mxu1 %v3406_v4 }
 0x2b2   : > { %2477 = vmatpush.bf16.msrb.mxu1 %v3405_v10 }
 0x2b6   : > { %2478 = vmatpush.bf16.msrb.mxu1 %v3404_v24 }
 0x2ba   : > { %2479 = vmatpush.bf16.msrb.mxu1 %v3403_v28 }
 0x2de   : > { %v4007_v53 = vpop.f32.mrf.mxu1 }
 0x2e6   : > { %v4009_v54 = vpop.f32.mrf.mxu0  ;;  %v1662_v55 = vpop.f32.mrf.mxu1 }
 0x2e7   : > { %v3433_v55 = vld [vmem:[%s4244_s9 + $0xf0] sm:$0xff]  ;;  %v1661_v61 = vadd.f32 %v4007_v53, %v4009_v54  ;;  %v3431_v53 = vld [vmem:[%s4244_s9 + $0xe0] sm:$0xff] }
 0x2e8   : > { %2512 = vmatpush.bf16.msra.mxu0 %v3433_v55 }
 0x2ec   : > { %2513 = vmatpush.bf16.msra.mxu0 %v3432_v60 }
 0x2ee   : > { %v1622_v40 = vpop.f32.mrf.mxu0 }
 0x2ef   : > { %v3417_v40 = vld [vmem:[%s4244_s9 + $0x70] sm:$0xff] }
 0x2f0   : > { %2486 = vmatpush.bf16.msra.mxu2 %v3417_v40  ;;  %2514 = vmatpush.bf16.msra.mxu0 %v3431_v53 }
 0x2f4   : > { %v4011_v56 = vpop.f32.mrf.mxu2  ;;  %2487 = vmatpush.bf16.msra.mxu2 %v3416_v62  ;;  %2515 = vmatpush.bf16.msra.mxu0 %v3430_v5 }
 0x2f5   : > { %v1717_v0 = vadd.f32 %v4011_v56, %v1661_v61  ;;  %v3423_v56 = vld [vmem:[%s4244_s9 + $0xa0] sm:$0xff] }
 0x2f6   : > { %2501 = vmatpush.bf16.msra.mxu3 %v3423_v56 }
 0x2f8   : > { %2488 = vmatpush.bf16.msra.mxu2 %v3415_v2  ;;  %2516 = vmatpush.bf16.msra.mxu0 %v3429_v11 }
 0x2fa   : > { %2502 = vmatpush.bf16.msra.mxu3 %v3422_v8 }
 0x2fc   : > { %v1715_v17 = vpop.f32.mrf.mxu2  ;;  %v4061_v18 = vpop.f32.mrf.mxu3  ;;  %2489 = vmatpush.bf16.msra.mxu2 %v3414_v7  ;;  %2517 = vmatpush.bf16.msra.mxu0 %v3428_v25 }
 0x2fd   : > { %v1771_v54 = vadd.f32 %v4061_v18, %v1717_v0  ;;  %v2042_v17 = vld [vmem:[%s4241_s6] sm:$0x1] }
 0x2fe   : > { %v4072_v22 = vpop.f32.mrf.mxu0  ;;  %2503 = vmatpush.bf16.msra.mxu3 %v3421_v27  ;;  %v2279_v0 = vld [vmem:[%s4245_s10] sm:$0x1] }
 0x2ff   : > { %v1825_v6 = vadd.f32 %v4072_v22, %v1771_v54 }
 0x300   : > { %2490 = vmatpush.bf16.msra.mxu2 %v3413_v26  ;;  %2518 = vmatpush.bf16.msra.mxu0 %v3427_v29 }
 0x302   : > { %2504 = vmatpush.bf16.msra.mxu3 %v3420_v31 }
 0x304   : > { %v1769_v44 = vpop.f32.mrf.mxu3  ;;  %2491 = vmatpush.bf16.msra.mxu2 %v3412_v30 }
 0x306   : > { %v1823_v46 = vpop.f32.mrf.mxu0  ;;  %v1875_v47 = vpop.f32.mrf.mxu1  ;;  %2505 = vmatpush.bf16.msra.mxu3 %v3419_v33 }
 0x307   : > { %v1879_v9 = vadd.f32 %v1875_v47, %v1825_v6 }
 0x308   : > { %2492 = vmatpush.bf16.msra.mxu2 %v3411_v32 }
 0x30e   : > { %v1877_v58 = vpop.f32.mrf.mxu1 }
 0x314   : > { %v1929_v3 = vpop.f32.mrf.mxu2 }
 0x315   : > { %v1933_v12 = vadd.f32 %v1929_v3, %v1879_v9 }
 0x31c   : > { %v1931_v13 = vpop.f32.mrf.mxu2  ;;  %v1983_v14 = vpop.f32.mrf.mxu3 }
 0x31d   : > { %v1987_v15 = vadd.f32 %v1983_v14, %v1933_v12 }
 0x31e   : > { %v2037_v16 = vpop.f32.mrf.mxu0 }
 0x31f   : > { %v2041_v18 = vadd.f32 %v2037_v16, %v1987_v15 }
 0x321   : > { %v2043_v19 = vadd.f32 %v2042_v17, %v2041_v18 }
 0x323   : > { %v2044_v20 = vmax.f32 %v2043_v19, 0.0 }
 0x324   : > { %v1985_v21 = vpop.f32.mrf.mxu3 }
 0x325   : > { %v2045_v22 = vpack.c.bf16 %v2044_v20, %v2044_v20 }
 0x326   : > { %v2039_v23 = vpop.f32.mrf.mxu0 }
 0x327   : > { %3160 = vmatmul.msk.bf16.vlgmr.msra.gmra.mxu1 %vm1555_vm2, %v2045_v22  ;;  %3161 = vmatmul.msk.bf16.vlgmr.msrb.gmra.mxu2 %vm1555_vm2, %v2045_v22 }
 0x328   : > { %3162 = vmatmul.msk.bf16.vlgmr.msrb.gmra.mxu3 %vm1555_vm2, %v2045_v22  ;;  %3163 = vmatmul.msk.bf16.vlgmr.msrb.gmra.mxu0 %vm1555_vm2, %v2045_v22 }
 0x3a4   : > { %v2164_v37 = vpop.f32.mrf.mxu1 }
 0x3a5   : > { %v2165_v38 = vadd.f32 %v2164_v37, %v2144_v35  ;;  %v2203_v39 = vpop.f32.mrf.mxu0 }
 0x3a6   : > { %v2204_v41 = vadd.f32 %v2203_v39, %v2147_v36 }
 0x3a7   : > { %v2207_v42 = vmax.f32 %v2165_v38, 0.0 }
 0x3a8   : > { %v2210_v44 = vmax.f32 %v2204_v41, 0.0 }
 0x3a9   : > { %v2211_v46 = vpack.c.bf16 %v2207_v42, %v2207_v42 }
 0x3aa   : > { %v2214_v47 = vpack.c.bf16 %v2210_v44, %v2210_v44  ;;  %v2177_v48 = vpop.f32.mrf.mxu2 }
 0x3ab   : > { %v2178_v49 = vadd.f32 %v2177_v48, %v2145_v43  ;;  %v2190_v50 = vpop.f32.mrf.mxu3  ;;  %2480 = vmatmul.bf16.vlgmr.msrb.gmra.mxu1 %v2211_v46 }
 0x3ac   : > { %v2191_v51 = vadd.f32 %v2190_v50, %v2146_v45  ;;  %2519 = vmatmul.bf16.vlgmr.msra.gmra.mxu0 %v2214_v47  ;;  %v2166_v52 = vpop.f32.mrf.mxu1 }
 0x3ad   : > { %v2208_v55 = vmax.f32 %v2178_v49, 0.0  ;;  %v2205_v40 = vpop.f32.mrf.mxu0 }
 0x3ae   : > { %v2209_v57 = vmax.f32 %v2191_v51, 0.0 }
 0x3af   : > { %v2212_v58 = vpack.c.bf16 %v2208_v55, %v2208_v55 }
 0x3b0   : > { %v2213_v59 = vpack.c.bf16 %v2209_v57, %v2209_v57 }
 0x3b1   : > { %2493 = vmatmul.bf16.vlgmr.msra.gmra.mxu2 %v2212_v58 }
 0x3b2   : > { %2506 = vmatmul.bf16.vlgmr.msra.gmra.mxu3 %v2213_v59  ;;  %v2179_v60 = vpop.f32.mrf.mxu2 }
 0x3b3   : > { %v2192_v61 = vpop.f32.mrf.mxu3 }
 0x428   : > { %v2481_v62 = vpop.f32.mrf.mxu1 }
 0x429   : > { %v2520_v63 = vpop.f32.mrf.mxu0  ;;  %v2482_v54 = vadd.f32 %v2481_v62, %v2279_v0 }
 0x430   : > { %v2483_v1 = vpop.f32.mrf.mxu1 }
 0x431   : > { %v2522_v53 = vpop.f32.mrf.mxu0 }
 0x434   : > { %v2494_v2 = vpop.f32.mrf.mxu2 }
 0x435   : > { %v2495_v56 = vadd.f32 %v2494_v2, %v2482_v54  ;;  %v2507_v3 = vpop.f32.mrf.mxu3 }
 0x437   : > { %v2508_v4 = vadd.f32 %v2507_v3, %v2495_v56 }
 0x439   : > { %v2521_v5 = vadd.f32 %v2520_v63, %v2508_v4 }
 0x43b   : > { %2524 = vst.msk [vmem:[%s382_s25] sm:$0x1] %vm640_vm1, %v2521_v5 }
 0x43c   : > { %v2496_v6 = vpop.f32.mrf.mxu2 }
 0x43d   : > { %v2509_v7 = vpop.f32.mrf.mxu3 }
 0x43e PF: > { %s21_s17 = sadd.s32 1, %s3451_s17  }
 0x43f   : > { %p18_p4 = scmp.ge.s32.totalorder %s21_s17, 4  }
 0x441   :  { %20 = sbr.rel (!%p18_p4) target bundleno = 1 (0x1), region = 117 }

</bundles_post_ra>
